<compile_context>
chip_gen: v6e
topology: v6e:2x2x1
jax: 0.10.0
libtpu: 0.0.40
codegen_flags: <defaults>
</compile_context>

<pallas_src>
import jax
import jax.numpy as jnp
import numpy as np
from jax import lax
from jax.experimental import pallas as pl
from jax.experimental.pallas import tpu as pltpu


# ConvTranspose2d(k=4, s=2, p=1) parity decomposition:
#   out[2h+ph, 2w+pw] = sum over pad-1 offsets (oh, ow) of
#                       relu_pad[h+oh, w+ow] @ W[KTAP[ph,oh], KTAP[pw,ow]]
# where _KTAP maps (output parity, pad-1 offset) -> 4-tap kernel index, and the
# (parity, offset) pair contributes only when the key exists.
_KTAP = {(0, 0): 3, (0, 1): 1, (1, 1): 2, (1, 2): 0}
_VALID_OFF = {0: (0, 1), 1: (1, 2)}     # valid pad-1 row offsets per parity


# --------------------------------------------------------------------------
# Fused kernel: residual1 + residual2 + ReLU + ConvTranspose2d, one image/step
# --------------------------------------------------------------------------
def _half_decoder_kernel(x_ref,
                         w1a_ref, b1a_ref, w2a_ref, b2a_ref,
                         w1b_ref, b1b_ref, w2b_ref, b2b_ref,
                         wct_ref, bct_ref,
                         out_ref,
                         buf_ref):
    _, H, W, C = x_ref.shape
    HW = H * W
    K = buf_ref.shape[-1]            # 3 * C   (im2col channel packing)
    C2 = out_ref.shape[-1]           # 2 * Cout (pw-interleaved)
    f32 = jnp.float32
    bf16 = jnp.bfloat16

    # Zero only the two halo rows (the column halos are re-written each stage
    # below).  Done every grid step so it stays correct when the batch axis is
    # sharded across TensorCores (scratch is per-core and uninitialized).
    zrow = jnp.zeros((1, W, K), bf16)
    buf_ref[0:1] = zrow
    buf_ref[H + 1:H + 2] = zrow

    def fill_buf(a):
        # ReLU once per stage, cast the MXU operand to bf16 once, and write one
        # full-width im2col slab: buf[i, w, ow*C:(ow+1)*C] = relu_pad[i, w+ow].
        r = jnp.maximum(a, 0.0).astype(bf16)                      # (H, W, C)
        zc = jnp.zeros((H, 1, C), bf16)
        left = jnp.concatenate([zc, r[:, :W - 1, :]], axis=1)     # ow = 0 taps
        right = jnp.concatenate([r[:, 1:, :], zc], axis=1)        # ow = 2 taps
        buf_ref[1:H + 1] = jnp.concatenate([left, r, right], axis=-1)

    def win(oh):
        # Leading-dim-only slice of the slab (no strided window copy).
        return buf_ref[oh:oh + H].reshape(HW, K)

    def residual(x, w1_ref, b1_ref, w2_ref, b2_ref):
        # x + Conv1x1(ReLU(Conv3x3(ReLU(x)))): 3 + 1 bf16 matmuls, f32 accum,
        # f32 bias/ReLU math and f32 residual carry.
        fill_buf(x)
        h = (jnp.dot(win(0), w1_ref[0], preferred_element_type=f32)
             + jnp.dot(win(1), w1_ref[1], preferred_element_type=f32)
             + jnp.dot(win(2), w1_ref[2], preferred_element_type=f32))
        h = jnp.maximum(h + b1_ref[...], 0.0)                     # (HW, C) f32
        t = jnp.dot(h.astype(bf16), w2_ref[...], preferred_element_type=f32)
        return x + (t + b2_ref[...]).reshape(H, W, C)

    x = x_ref[0].astype(f32)                                      # (H, W, C)
    x = residual(x, w1a_ref, b1a_ref, w2a_ref, b2a_ref)
    x = residual(x, w1b_ref, b1b_ref, w2b_ref, b2b_ref)

    # Final ReLU + ConvTranspose2d(4, stride=2, padding=1), decomposed into the
    # two output-row parities; column parities are interleaved in the packed
    # weights' output dim so the store stays lane-dense (2*Cout wide).
    fill_buf(x)
    wins = (win(0), win(1), win(2))
    for ph in (0, 1):
        o0, o1 = _VALID_OFF[ph]
        acc = (jnp.dot(wins[o0], wct_ref[ph, 0], preferred_element_type=f32)
               + jnp.dot(wins[o1], wct_ref[ph, 1], preferred_element_type=f32))
        r = (acc + bct_ref[...]).reshape(H, W, C2)
        out_ref[0, :, ph, :, :] = r.astype(out_ref.dtype)


# --------------------------------------------------------------------------
# Wrapper: weight packing + pallas_call plumbing (NCHW in / NCHW out)
# --------------------------------------------------------------------------
def _pack_params(params):
    bf16 = jnp.bfloat16
    C = params['r1_w2'].shape[0]
    Cout = params['ct_w'].shape[-1]

    def res_block(prefix):
        # (kh, kw, Cin, Cout) -> (kh, kw*Cin, Cout): matches the slab's ow-major
        # channel packing so each 3x3 conv is 3 matmuls with K = 3C.
        w1 = params[prefix + '_w1'].reshape(3, 3 * C, C).astype(bf16)
        b1 = params[prefix + '_b1'].reshape(1, C).astype(jnp.float32)
        w2 = params[prefix + '_w2'].astype(bf16)
        b2 = params[prefix + '_b2'].reshape(1, C).astype(jnp.float32)
        return w1, b1, w2, b2

    w1a, b1a, w2a, b2a = res_block('r1')
    w1b, b1b, w2b, b2b = res_block('r2')

    # Conv-T packing: wct[ph, j, ow*C+cin, pw*Cout+cout] = W[kh, kw, cin, cout]
    # with oh = _VALID_OFF[ph][j], kh = _KTAP[ph, oh], kw = _KTAP[pw, ow]
    # (zero where (pw, ow) has no tap).
    w = params['ct_w'].astype(jnp.float32)                 # (4, 4, Cin, Cout)
    wct = jnp.zeros((2, 2, 3, C, 2, Cout), jnp.float32)
    for ph in (0, 1):
        for j, oh in enumerate(_VALID_OFF[ph]):
            kh = _KTAP[(ph, oh)]
            for pw in (0, 1):
                for ow in (0, 1, 2):
                    if (pw, ow) in _KTAP:
                        wct = wct.at[ph, j, ow, :, pw, :].set(w[kh, _KTAP[(pw, ow)]])
    wct = wct.reshape(2, 2, 3 * C, 2 * Cout).astype(bf16)
    b = params['ct_b'].reshape(1, Cout).astype(jnp.float32)
    bct = jnp.concatenate([b, b], axis=-1)                 # (1, 2*Cout), pw-major
    return (w1a, b1a, w2a, b2a, w1b, b1b, w2b, b2b, wct, bct)


def half_decoder_forward(params, x_nchw):
    N, C, H, W = x_nchw.shape
    packed = _pack_params(params)
    Cout = packed[-1].shape[-1] // 2
    # TODO(synk): keep activations NHWC end-to-end in production; these two
    # transposes are full HBM passes outside the kernel.
    x = jnp.transpose(x_nchw, (0, 2, 3, 1)).astype(jnp.float32)   # NCHW -> NHWC

    def full(a):
        return pl.BlockSpec(a.shape, lambda n, _r=a.ndim: (0,) * _r)

    out = pl.pallas_call(
        _half_decoder_kernel,
        out_shape=jax.ShapeDtypeStruct((N, H, 2, W, 2 * Cout), jnp.float32),
        grid=(N,),
        in_specs=[pl.BlockSpec((1, H, W, C), lambda n: (n, 0, 0, 0))]
                 + [full(a) for a in packed],
        out_specs=pl.BlockSpec((1, H, 2, W, 2 * Cout),
                               lambda n: (n, 0, 0, 0, 0)),
        scratch_shapes=[
            pltpu.VMEM((H + 2, W, 3 * C), jnp.bfloat16),   # im2col slab w/ halo
        ],
        compiler_params=pltpu.CompilerParams(
            dimension_semantics=("parallel",),
            # <= v7x physical VMEM; raise toward 96 MiB on v5e/v6e when running
            # whole-image blocks at production sizes.
            vmem_limit_bytes=64 * 1024 * 1024),
    )(x, *packed)

    # (N, H, 2, W, 2*Cout) -> (N, 2H, 2W, Cout) is a contiguous (free) reshape.
    y = out.reshape(N, 2 * H, 2 * W, Cout)
    return jnp.transpose(y, (0, 3, 1, 2))                         # NHWC -> NCHW


# --------------------------------------------------------------------------
# Deterministic parameter init (synthetic; same shapes as the nn.Module)
# --------------------------------------------------------------------------
def init_params(key, in_channels, out_channels):
    ks = jax.random.split(key, 10)
    s = 0.1
    C = in_channels
    return {
        # residual blocks: conv3x3 weights (kh, kw, Cin, Cout), conv1x1 (Cin, Cout)
        'r1_w1': s * jax.random.normal(ks[0], (3, 3, C, C), jnp.float32),
        'r1_b1': s * jax.random.normal(ks[1], (1, 1, C), jnp.float32),
        'r1_w2': s * jax.random.normal(ks[2], (C, C), jnp.float32),
        'r1_b2': s * jax.random.normal(ks[3], (1, 1, C), jnp.float32),
        'r2_w1': s * jax.random.normal(ks[4], (3, 3, C, C), jnp.float32),
        'r2_b1': s * jax.random.normal(ks[5], (1, 1, C), jnp.float32),
        'r2_w2': s * jax.random.normal(ks[6], (C, C), jnp.float32),
        'r2_b2': s * jax.random.normal(ks[7], (1, 1, C), jnp.float32),
        # transposed conv: stored (kh, kw, Cin, Cout)
        'ct_w': s * jax.random.normal(ks[8], (4, 4, C, out_channels), jnp.float32),
        'ct_b': s * jax.random.normal(ks[9], (1, 1, out_channels), jnp.float32),
    }


# --------------------------------------------------------------------------
# Pure-JAX reference (mirrors the PyTorch module) for numerical verification
# --------------------------------------------------------------------------
def _conv_nchw(x, w_oihw, b, padding):
    y = lax.conv_general_dilated(x, w_oihw, (1, 1), [(padding, padding)] * 2,
                                 dimension_numbers=('NCHW', 'OIHW', 'NCHW'))
    return y + b.reshape(1, -1, 1, 1)


def reference_forward(params, x):
    def residual(x, w1, b1, w2, b2):
        w1_oihw = jnp.transpose(w1, (3, 2, 0, 1))
        w2_oihw = w2.T[:, :, None, None]
        t = jnp.maximum(x, 0.0)
        t = _conv_nchw(t, w1_oihw, b1.reshape(-1), 1)
        t = jnp.maximum(t, 0.0)
        t = _conv_nchw(t, w2_oihw, b2.reshape(-1), 0)
        return t

    x = x + residual(x, params['r1_w1'], params['r1_b1'], params['r1_w2'], params['r1_b2'])
    x = x + residual(x, params['r2_w1'], params['r2_b1'], params['r2_w2'], params['r2_b2'])
    x = jnp.maximum(x, 0.0)
    # ConvTranspose2d(k=4,s=2,p=1) == dilated conv with flipped kernel, pad k-1-p=2
    wd = params['ct_w']                                   # (kh, kw, Cin, Cout)
    w_oihw = jnp.transpose(wd[::-1, ::-1, :, :], (3, 2, 0, 1))
    y = lax.conv_general_dilated(x, w_oihw, (1, 1), [(2, 2), (2, 2)],
                                 lhs_dilation=(2, 2),
                                 dimension_numbers=('NCHW', 'OIHW', 'NCHW'))
    return y + params['ct_b'].reshape(1, -1, 1, 1)


# --------------------------------------------------------------------------
if __name__ == "__main__":
    key = jax.random.PRNGKey(0)
    kx, kp = jax.random.split(key)

    N, Cin, H, W = 2, 4, 16, 16
    Cout = 4

    x = jax.random.normal(kx, (N, Cin, H, W), jnp.float32)     # NCHW, like PyTorch
    params = init_params(kp, Cin, Cout)

    y = jax.jit(half_decoder_forward)(params, x)
    y = jax.block_until_ready(y)
    assert y.shape == (N, Cout, 2 * H, 2 * W), y.shape

    y_ref = reference_forward(params, x)
    # bf16 MXU operands with f32 accumulation: expect ~1e-2-level agreement with
    # the f32 reference (observed error is a few 1e-3 at these magnitudes).
    np.testing.assert_allclose(np.asarray(y), np.asarray(y_ref), rtol=2e-2, atol=2e-2)

    print("KERNEL_OK")
</pallas_src>

<mosaic_0001>
module attributes {stable_mosaic.version = 11 : i64} {
  func.func @_half_decoder_kernel(%arg0: i32, %arg1: memref<1x16x16x4xf32, #tpu.memory_space<vmem>>, %arg2: memref<3x12x4xbf16, #tpu.memory_space<vmem>>, %arg3: memref<1x4xf32, #tpu.memory_space<vmem>>, %arg4: memref<4x4xbf16, #tpu.memory_space<vmem>>, %arg5: memref<1x4xf32, #tpu.memory_space<vmem>>, %arg6: memref<3x12x4xbf16, #tpu.memory_space<vmem>>, %arg7: memref<1x4xf32, #tpu.memory_space<vmem>>, %arg8: memref<4x4xbf16, #tpu.memory_space<vmem>>, %arg9: memref<1x4xf32, #tpu.memory_space<vmem>>, %arg10: memref<2x2x12x8xbf16, #tpu.memory_space<vmem>>, %arg11: memref<1x8xf32, #tpu.memory_space<vmem>>, %arg12: memref<1x16x2x16x8xf32, #tpu.memory_space<vmem>>, %arg13: memref<18x16x12xbf16, #tpu.memory_space<vmem>>) attributes {dimension_semantics = [#tpu.dimension_semantics<parallel>], iteration_bounds = array<i64: 2>, scalar_prefetch = 0 : i64, scratch_operands = 1 : i64, tpu.core_type = #tpu.core_type<tc>, window_params = [{transform_indices = @transform_0, window_bounds = array<i64: 1, 16, 16, 4>}, {pipeline_mode = #tpu.pipeline_mode<synchronous>, transform_indices = @transform_1, window_bounds = array<i64: 3, 12, 4>}, {pipeline_mode = #tpu.pipeline_mode<synchronous>, transform_indices = @transform_2, window_bounds = array<i64: 1, 4>}, {pipeline_mode = #tpu.pipeline_mode<synchronous>, transform_indices = @transform_3, window_bounds = array<i64: 4, 4>}, {pipeline_mode = #tpu.pipeline_mode<synchronous>, transform_indices = @transform_4, window_bounds = array<i64: 1, 4>}, {pipeline_mode = #tpu.pipeline_mode<synchronous>, transform_indices = @transform_5, window_bounds = array<i64: 3, 12, 4>}, {pipeline_mode = #tpu.pipeline_mode<synchronous>, transform_indices = @transform_6, window_bounds = array<i64: 1, 4>}, {pipeline_mode = #tpu.pipeline_mode<synchronous>, transform_indices = @transform_7, window_bounds = array<i64: 4, 4>}, {pipeline_mode = #tpu.pipeline_mode<synchronous>, transform_indices = @transform_8, window_bounds = array<i64: 1, 4>}, {pipeline_mode = #tpu.pipeline_mode<synchronous>, transform_indices = @transform_9, window_bounds = array<i64: 2, 2, 12, 8>}, {pipeline_mode = #tpu.pipeline_mode<synchronous>, transform_indices = @transform_10, window_bounds = array<i64: 1, 8>}, {transform_indices = @transform_11, window_bounds = array<i64: 1, 16, 2, 16, 8>}]} {
    %cst = arith.constant 0.000000e+00 : bf16
    %0 = vector.broadcast %cst : bf16 to vector<1x16x12xbf16>
    %c0 = arith.constant 0 : index
    %c0_0 = arith.constant 0 : index
    %c0_1 = arith.constant 0 : index
    %1 = vector.load %arg13[%c0, %c0_0, %c0_1] : memref<18x16x12xbf16, #tpu.memory_space<vmem>>, vector<1x16x12xbf16>
    tpu.vector_store %arg13[%c0, %c0_0, %c0_1], %0 {strides = array<i32>} : memref<18x16x12xbf16, #tpu.memory_space<vmem>>, vector<1x16x12xbf16>,
    %c17 = arith.constant 17 : index
    %c0_2 = arith.constant 0 : index
    %c0_3 = arith.constant 0 : index
    %2 = vector.load %arg13[%c17, %c0_2, %c0_3] : memref<18x16x12xbf16, #tpu.memory_space<vmem>>, vector<1x16x12xbf16>
    tpu.vector_store %arg13[%c17, %c0_2, %c0_3], %0 {strides = array<i32>} : memref<18x16x12xbf16, #tpu.memory_space<vmem>>, vector<1x16x12xbf16>,
    %c0_4 = arith.constant 0 : index
    %c0_5 = arith.constant 0 : index
    %c0_6 = arith.constant 0 : index
    %c0_7 = arith.constant 0 : index
    %3 = vector.load %arg1[%c0_4, %c0_5, %c0_6, %c0_7] : memref<1x16x16x4xf32, #tpu.memory_space<vmem>>, vector<1x16x16x4xf32>
    %4 = vector.shape_cast %3 : vector<1x16x16x4xf32> to vector<16x16x4xf32>
    %cst_8 = arith.constant 0.000000e+00 : f32
    %5 = vector.broadcast %cst_8 : f32 to vector<16x16x4xf32>
    %6 = arith.maximumf %4, %5 : vector<16x16x4xf32>
    %7 = arith.truncf %6 : vector<16x16x4xf32> to vector<16x16x4xbf16>
    %cst_9 = arith.constant 0.000000e+00 : bf16
    %8 = vector.broadcast %cst_9 : bf16 to vector<16x1x4xbf16>
    %9 = vector.extract_strided_slice %7 {offsets = [0, 0, 0], sizes = [16, 15, 4], strides = [1, 1, 1]} : vector<16x16x4xbf16> to vector<16x15x4xbf16>
    %10 = tpu.concatenate %8, %9 in 1 : vector<16x1x4xbf16>, vector<16x15x4xbf16> -> vector<16x16x4xbf16>
    %11 = vector.extract_strided_slice %7 {offsets = [0, 1, 0], sizes = [16, 15, 4], strides = [1, 1, 1]} : vector<16x16x4xbf16> to vector<16x15x4xbf16>
    %12 = tpu.concatenate %11, %8 in 1 : vector<16x15x4xbf16>, vector<16x1x4xbf16> -> vector<16x16x4xbf16>
    %13 = tpu.concatenate %10, %7, %12 in 2 : vector<16x16x4xbf16>, vector<16x16x4xbf16>, vector<16x16x4xbf16> -> vector<16x16x12xbf16>
    %c1 = arith.constant 1 : index
    %c0_10 = arith.constant 0 : index
    %c0_11 = arith.constant 0 : index
    %14 = vector.load %arg13[%c1, %c0_10, %c0_11] : memref<18x16x12xbf16, #tpu.memory_space<vmem>>, vector<16x16x12xbf16>
    tpu.vector_store %arg13[%c1, %c0_10, %c0_11], %13 {strides = array<i32>} : memref<18x16x12xbf16, #tpu.memory_space<vmem>>, vector<16x16x12xbf16>,
    %c0_12 = arith.constant 0 : index
    %c0_13 = arith.constant 0 : index
    %c0_14 = arith.constant 0 : index
    %15 = vector.load %arg13[%c0_12, %c0_13, %c0_14] : memref<18x16x12xbf16, #tpu.memory_space<vmem>>, vector<16x16x12xbf16>
    %16 = vector.shape_cast %15 : vector<16x16x12xbf16> to vector<256x12xbf16>
    %c0_15 = arith.constant 0 : index
    %c0_16 = arith.constant 0 : index
    %c0_17 = arith.constant 0 : index
    %17 = vector.load %arg2[%c0_15, %c0_16, %c0_17] : memref<3x12x4xbf16, #tpu.memory_space<vmem>>, vector<1x12x4xbf16>
    %18 = vector.shape_cast %17 : vector<1x12x4xbf16> to vector<12x4xbf16>
    %cst_18 = arith.constant dense<0.000000e+00> : vector<256x4xf32>
    %19 = tpu.matmul %16, %18, %cst_18 {dimension_numbers = #tpu.dot_dimension_numbers<[1], [0], [0], [1], [0, 0, 1, 1], [], []>} : vector<256x12xbf16>, vector<12x4xbf16>, vector<256x4xf32> -> vector<256x4xf32>
    %c1_19 = arith.constant 1 : index
    %c0_20 = arith.constant 0 : index
    %c0_21 = arith.constant 0 : index
    %20 = vector.load %arg13[%c1_19, %c0_20, %c0_21] : memref<18x16x12xbf16, #tpu.memory_space<vmem>>, vector<16x16x12xbf16>
    %21 = vector.shape_cast %20 : vector<16x16x12xbf16> to vector<256x12xbf16>
    %c1_22 = arith.constant 1 : index
    %c0_23 = arith.constant 0 : index
    %c0_24 = arith.constant 0 : index
    %22 = vector.load %arg2[%c1_22, %c0_23, %c0_24] : memref<3x12x4xbf16, #tpu.memory_space<vmem>>, vector<1x12x4xbf16>
    %23 = vector.shape_cast %22 : vector<1x12x4xbf16> to vector<12x4xbf16>
    %cst_25 = arith.constant dense<0.000000e+00> : vector<256x4xf32>
    %24 = tpu.matmul %21, %23, %cst_25 {dimension_numbers = #tpu.dot_dimension_numbers<[1], [0], [0], [1], [0, 0, 1, 1], [], []>} : vector<256x12xbf16>, vector<12x4xbf16>, vector<256x4xf32> -> vector<256x4xf32>
    %25 = arith.addf %19, %24 : vector<256x4xf32>
    %c2 = arith.constant 2 : index
    %c0_26 = arith.constant 0 : index
    %c0_27 = arith.constant 0 : index
    %26 = vector.load %arg13[%c2, %c0_26, %c0_27] : memref<18x16x12xbf16, #tpu.memory_space<vmem>>, vector<16x16x12xbf16>
    %27 = vector.shape_cast %26 : vector<16x16x12xbf16> to vector<256x12xbf16>
    %c2_28 = arith.constant 2 : index
    %c0_29 = arith.constant 0 : index
    %c0_30 = arith.constant 0 : index
    %28 = vector.load %arg2[%c2_28, %c0_29, %c0_30] : memref<3x12x4xbf16, #tpu.memory_space<vmem>>, vector<1x12x4xbf16>
    %29 = vector.shape_cast %28 : vector<1x12x4xbf16> to vector<12x4xbf16>
    %cst_31 = arith.constant dense<0.000000e+00> : vector<256x4xf32>
    %30 = tpu.matmul %27, %29, %cst_31 {dimension_numbers = #tpu.dot_dimension_numbers<[1], [0], [0], [1], [0, 0, 1, 1], [], []>} : vector<256x12xbf16>, vector<12x4xbf16>, vector<256x4xf32> -> vector<256x4xf32>
    %31 = arith.addf %25, %30 : vector<256x4xf32>
    %c0_32 = arith.constant 0 : index
    %c0_33 = arith.constant 0 : index
    %32 = vector.load %arg3[%c0_32, %c0_33] : memref<1x4xf32, #tpu.memory_space<vmem>>, vector<1x4xf32>
    %33 = vector.broadcast %32 : vector<1x4xf32> to vector<256x4xf32>
    %34 = arith.addf %31, %33 : vector<256x4xf32>
    %cst_34 = arith.constant 0.000000e+00 : f32
    %35 = vector.broadcast %cst_34 : f32 to vector<256x4xf32>
    %36 = arith.maximumf %34, %35 : vector<256x4xf32>
    %37 = arith.truncf %36 : vector<256x4xf32> to vector<256x4xbf16>
    %c0_35 = arith.constant 0 : index
    %c0_36 = arith.constant 0 : index
    %38 = vector.load %arg4[%c0_35, %c0_36] : memref<4x4xbf16, #tpu.memory_space<vmem>>, vector<4x4xbf16>
    %cst_37 = arith.constant dense<0.000000e+00> : vector<256x4xf32>
    %39 = tpu.matmul %37, %38, %cst_37 {dimension_numbers = #tpu.dot_dimension_numbers<[1], [0], [0], [1], [0, 0, 1, 1], [], []>} : vector<256x4xbf16>, vector<4x4xbf16>, vector<256x4xf32> -> vector<256x4xf32>
    %c0_38 = arith.constant 0 : index
    %c0_39 = arith.constant 0 : index
    %40 = vector.load %arg5[%c0_38, %c0_39] : memref<1x4xf32, #tpu.memory_space<vmem>>, vector<1x4xf32>
    %41 = vector.broadcast %40 : vector<1x4xf32> to vector<256x4xf32>
    %42 = arith.addf %39, %41 : vector<256x4xf32>
    %43 = vector.shape_cast %42 : vector<256x4xf32> to vector<16x16x4xf32>
    %44 = arith.addf %4, %43 : vector<16x16x4xf32>
    %cst_40 = arith.constant 0.000000e+00 : f32
    %45 = vector.broadcast %cst_40 : f32 to vector<16x16x4xf32>
    %46 = arith.maximumf %44, %45 : vector<16x16x4xf32>
    %47 = arith.truncf %46 : vector<16x16x4xf32> to vector<16x16x4xbf16>
    %cst_41 = arith.constant 0.000000e+00 : bf16
    %48 = vector.broadcast %cst_41 : bf16 to vector<16x1x4xbf16>
    %49 = vector.extract_strided_slice %47 {offsets = [0, 0, 0], sizes = [16, 15, 4], strides = [1, 1, 1]} : vector<16x16x4xbf16> to vector<16x15x4xbf16>
    %50 = tpu.concatenate %48, %49 in 1 : vector<16x1x4xbf16>, vector<16x15x4xbf16> -> vector<16x16x4xbf16>
    %51 = vector.extract_strided_slice %47 {offsets = [0, 1, 0], sizes = [16, 15, 4], strides = [1, 1, 1]} : vector<16x16x4xbf16> to vector<16x15x4xbf16>
    %52 = tpu.concatenate %51, %48 in 1 : vector<16x15x4xbf16>, vector<16x1x4xbf16> -> vector<16x16x4xbf16>
    %53 = tpu.concatenate %50, %47, %52 in 2 : vector<16x16x4xbf16>, vector<16x16x4xbf16>, vector<16x16x4xbf16> -> vector<16x16x12xbf16>
    %c1_42 = arith.constant 1 : index
    %c0_43 = arith.constant 0 : index
    %c0_44 = arith.constant 0 : index
    %54 = vector.load %arg13[%c1_42, %c0_43, %c0_44] : memref<18x16x12xbf16, #tpu.memory_space<vmem>>, vector<16x16x12xbf16>
    tpu.vector_store %arg13[%c1_42, %c0_43, %c0_44], %53 {strides = array<i32>} : memref<18x16x12xbf16, #tpu.memory_space<vmem>>, vector<16x16x12xbf16>,
    %c0_45 = arith.constant 0 : index
    %c0_46 = arith.constant 0 : index
    %c0_47 = arith.constant 0 : index
    %55 = vector.load %arg13[%c0_45, %c0_46, %c0_47] : memref<18x16x12xbf16, #tpu.memory_space<vmem>>, vector<16x16x12xbf16>
    %56 = vector.shape_cast %55 : vector<16x16x12xbf16> to vector<256x12xbf16>
    %c0_48 = arith.constant 0 : index
    %c0_49 = arith.constant 0 : index
    %c0_50 = arith.constant 0 : index
    %57 = vector.load %arg6[%c0_48, %c0_49, %c0_50] : memref<3x12x4xbf16, #tpu.memory_space<vmem>>, vector<1x12x4xbf16>
    %58 = vector.shape_cast %57 : vector<1x12x4xbf16> to vector<12x4xbf16>
    %cst_51 = arith.constant dense<0.000000e+00> : vector<256x4xf32>
    %59 = tpu.matmul %56, %58, %cst_51 {dimension_numbers = #tpu.dot_dimension_numbers<[1], [0], [0], [1], [0, 0, 1, 1], [], []>} : vector<256x12xbf16>, vector<12x4xbf16>, vector<256x4xf32> -> vector<256x4xf32>
    %c1_52 = arith.constant 1 : index
    %c0_53 = arith.constant 0 : index
    %c0_54 = arith.constant 0 : index
    %60 = vector.load %arg13[%c1_52, %c0_53, %c0_54] : memref<18x16x12xbf16, #tpu.memory_space<vmem>>, vector<16x16x12xbf16>
    %61 = vector.shape_cast %60 : vector<16x16x12xbf16> to vector<256x12xbf16>
    %c1_55 = arith.constant 1 : index
    %c0_56 = arith.constant 0 : index
    %c0_57 = arith.constant 0 : index
    %62 = vector.load %arg6[%c1_55, %c0_56, %c0_57] : memref<3x12x4xbf16, #tpu.memory_space<vmem>>, vector<1x12x4xbf16>
    %63 = vector.shape_cast %62 : vector<1x12x4xbf16> to vector<12x4xbf16>
    %cst_58 = arith.constant dense<0.000000e+00> : vector<256x4xf32>
    %64 = tpu.matmul %61, %63, %cst_58 {dimension_numbers = #tpu.dot_dimension_numbers<[1], [0], [0], [1], [0, 0, 1, 1], [], []>} : vector<256x12xbf16>, vector<12x4xbf16>, vector<256x4xf32> -> vector<256x4xf32>
    %65 = arith.addf %59, %64 : vector<256x4xf32>
    %c2_59 = arith.constant 2 : index
    %c0_60 = arith.constant 0 : index
    %c0_61 = arith.constant 0 : index
    %66 = vector.load %arg13[%c2_59, %c0_60, %c0_61] : memref<18x16x12xbf16, #tpu.memory_space<vmem>>, vector<16x16x12xbf16>
    %67 = vector.shape_cast %66 : vector<16x16x12xbf16> to vector<256x12xbf16>
    %c2_62 = arith.constant 2 : index
    %c0_63 = arith.constant 0 : index
    %c0_64 = arith.constant 0 : index
    %68 = vector.load %arg6[%c2_62, %c0_63, %c0_64] : memref<3x12x4xbf16, #tpu.memory_space<vmem>>, vector<1x12x4xbf16>
    %69 = vector.shape_cast %68 : vector<1x12x4xbf16> to vector<12x4xbf16>
    %cst_65 = arith.constant dense<0.000000e+00> : vector<256x4xf32>
    %70 = tpu.matmul %67, %69, %cst_65 {dimension_numbers = #tpu.dot_dimension_numbers<[1], [0], [0], [1], [0, 0, 1, 1], [], []>} : vector<256x12xbf16>, vector<12x4xbf16>, vector<256x4xf32> -> vector<256x4xf32>
    %71 = arith.addf %65, %70 : vector<256x4xf32>
    %c0_66 = arith.constant 0 : index
    %c0_67 = arith.constant 0 : index
    %72 = vector.load %arg7[%c0_66, %c0_67] : memref<1x4xf32, #tpu.memory_space<vmem>>, vector<1x4xf32>
    %73 = vector.broadcast %72 : vector<1x4xf32> to vector<256x4xf32>
    %74 = arith.addf %71, %73 : vector<256x4xf32>
    %cst_68 = arith.constant 0.000000e+00 : f32
    %75 = vector.broadcast %cst_68 : f32 to vector<256x4xf32>
    %76 = arith.maximumf %74, %75 : vector<256x4xf32>
    %77 = arith.truncf %76 : vector<256x4xf32> to vector<256x4xbf16>
    %c0_69 = arith.constant 0 : index
    %c0_70 = arith.constant 0 : index
    %78 = vector.load %arg8[%c0_69, %c0_70] : memref<4x4xbf16, #tpu.memory_space<vmem>>, vector<4x4xbf16>
    %cst_71 = arith.constant dense<0.000000e+00> : vector<256x4xf32>
    %79 = tpu.matmul %77, %78, %cst_71 {dimension_numbers = #tpu.dot_dimension_numbers<[1], [0], [0], [1], [0, 0, 1, 1], [], []>} : vector<256x4xbf16>, vector<4x4xbf16>, vector<256x4xf32> -> vector<256x4xf32>
    %c0_72 = arith.constant 0 : index
    %c0_73 = arith.constant 0 : index
    %80 = vector.load %arg9[%c0_72, %c0_73] : memref<1x4xf32, #tpu.memory_space<vmem>>, vector<1x4xf32>
    %81 = vector.broadcast %80 : vector<1x4xf32> to vector<256x4xf32>
    %82 = arith.addf %79, %81 : vector<256x4xf32>
    %83 = vector.shape_cast %82 : vector<256x4xf32> to vector<16x16x4xf32>
    %84 = arith.addf %44, %83 : vector<16x16x4xf32>
    %cst_74 = arith.constant 0.000000e+00 : f32
    %85 = vector.broadcast %cst_74 : f32 to vector<16x16x4xf32>
    %86 = arith.maximumf %84, %85 : vector<16x16x4xf32>
    %87 = arith.truncf %86 : vector<16x16x4xf32> to vector<16x16x4xbf16>
    %cst_75 = arith.constant 0.000000e+00 : bf16
    %88 = vector.broadcast %cst_75 : bf16 to vector<16x1x4xbf16>
    %89 = vector.extract_strided_slice %87 {offsets = [0, 0, 0], sizes = [16, 15, 4], strides = [1, 1, 1]} : vector<16x16x4xbf16> to vector<16x15x4xbf16>
    %90 = tpu.concatenate %88, %89 in 1 : vector<16x1x4xbf16>, vector<16x15x4xbf16> -> vector<16x16x4xbf16>
    %91 = vector.extract_strided_slice %87 {offsets = [0, 1, 0], sizes = [16, 15, 4], strides = [1, 1, 1]} : vector<16x16x4xbf16> to vector<16x15x4xbf16>
    %92 = tpu.concatenate %91, %88 in 1 : vector<16x15x4xbf16>, vector<16x1x4xbf16> -> vector<16x16x4xbf16>
    %93 = tpu.concatenate %90, %87, %92 in 2 : vector<16x16x4xbf16>, vector<16x16x4xbf16>, vector<16x16x4xbf16> -> vector<16x16x12xbf16>
    %c1_76 = arith.constant 1 : index
    %c0_77 = arith.constant 0 : index
    %c0_78 = arith.constant 0 : index
    %94 = vector.load %arg13[%c1_76, %c0_77, %c0_78] : memref<18x16x12xbf16, #tpu.memory_space<vmem>>, vector<16x16x12xbf16>
    tpu.vector_store %arg13[%c1_76, %c0_77, %c0_78], %93 {strides = array<i32>} : memref<18x16x12xbf16, #tpu.memory_space<vmem>>, vector<16x16x12xbf16>,
    %c0_79 = arith.constant 0 : index
    %c0_80 = arith.constant 0 : index
    %c0_81 = arith.constant 0 : index
    %95 = vector.load %arg13[%c0_79, %c0_80, %c0_81] : memref<18x16x12xbf16, #tpu.memory_space<vmem>>, vector<16x16x12xbf16>
    %96 = vector.shape_cast %95 : vector<16x16x12xbf16> to vector<256x12xbf16>
    %c1_82 = arith.constant 1 : index
    %c0_83 = arith.constant 0 : index
    %c0_84 = arith.constant 0 : index
    %97 = vector.load %arg13[%c1_82, %c0_83, %c0_84] : memref<18x16x12xbf16, #tpu.memory_space<vmem>>, vector<16x16x12xbf16>
    %98 = vector.shape_cast %97 : vector<16x16x12xbf16> to vector<256x12xbf16>
    %c2_85 = arith.constant 2 : index
    %c0_86 = arith.constant 0 : index
    %c0_87 = arith.constant 0 : index
    %99 = vector.load %arg13[%c2_85, %c0_86, %c0_87] : memref<18x16x12xbf16, #tpu.memory_space<vmem>>, vector<16x16x12xbf16>
    %100 = vector.shape_cast %99 : vector<16x16x12xbf16> to vector<256x12xbf16>
    %c0_88 = arith.constant 0 : index
    %c0_89 = arith.constant 0 : index
    %c0_90 = arith.constant 0 : index
    %c0_91 = arith.constant 0 : index
    %101 = vector.load %arg10[%c0_88, %c0_89, %c0_90, %c0_91] : memref<2x2x12x8xbf16, #tpu.memory_space<vmem>>, vector<1x1x12x8xbf16>
    %102 = vector.shape_cast %101 : vector<1x1x12x8xbf16> to vector<12x8xbf16>
    %cst_92 = arith.constant dense<0.000000e+00> : vector<256x8xf32>
    %103 = tpu.matmul %96, %102, %cst_92 {dimension_numbers = #tpu.dot_dimension_numbers<[1], [0], [0], [1], [0, 0, 1, 1], [], []>} : vector<256x12xbf16>, vector<12x8xbf16>, vector<256x8xf32> -> vector<256x8xf32>
    %c0_93 = arith.constant 0 : index
    %c1_94 = arith.constant 1 : index
    %c0_95 = arith.constant 0 : index
    %c0_96 = arith.constant 0 : index
    %104 = vector.load %arg10[%c0_93, %c1_94, %c0_95, %c0_96] : memref<2x2x12x8xbf16, #tpu.memory_space<vmem>>, vector<1x1x12x8xbf16>
    %105 = vector.shape_cast %104 : vector<1x1x12x8xbf16> to vector<12x8xbf16>
    %cst_97 = arith.constant dense<0.000000e+00> : vector<256x8xf32>
    %106 = tpu.matmul %98, %105, %cst_97 {dimension_numbers = #tpu.dot_dimension_numbers<[1], [0], [0], [1], [0, 0, 1, 1], [], []>} : vector<256x12xbf16>, vector<12x8xbf16>, vector<256x8xf32> -> vector<256x8xf32>
    %107 = arith.addf %103, %106 : vector<256x8xf32>
    %c0_98 = arith.constant 0 : index
    %c0_99 = arith.constant 0 : index
    %108 = vector.load %arg11[%c0_98, %c0_99] : memref<1x8xf32, #tpu.memory_space<vmem>>, vector<1x8xf32>
    %109 = vector.broadcast %108 : vector<1x8xf32> to vector<256x8xf32>
    %110 = arith.addf %107, %109 : vector<256x8xf32>
    %111 = vector.shape_cast %110 : vector<256x8xf32> to vector<16x16x8xf32>
    %c0_100 = arith.constant 0 : index
    %c0_101 = arith.constant 0 : index
    %c0_102 = arith.constant 0 : index
    %c0_103 = arith.constant 0 : index
    %c0_104 = arith.constant 0 : index
    %112 = vector.load %arg12[%c0_100, %c0_101, %c0_102, %c0_103, %c0_104] : memref<1x16x2x16x8xf32, #tpu.memory_space<vmem>>, vector<1x16x1x16x8xf32>
    %113 = vector.shape_cast %112 : vector<1x16x1x16x8xf32> to vector<16x16x8xf32>
    %114 = vector.shape_cast %111 : vector<16x16x8xf32> to vector<1x16x1x16x8xf32>
    tpu.vector_store %arg12[%c0_100, %c0_101, %c0_102, %c0_103, %c0_104], %114 {strides = array<i32>} : memref<1x16x2x16x8xf32, #tpu.memory_space<vmem>>, vector<1x16x1x16x8xf32>,
    %c1_105 = arith.constant 1 : index
    %c0_106 = arith.constant 0 : index
    %c0_107 = arith.constant 0 : index
    %c0_108 = arith.constant 0 : index
    %115 = vector.load %arg10[%c1_105, %c0_106, %c0_107, %c0_108] : memref<2x2x12x8xbf16, #tpu.memory_space<vmem>>, vector<1x1x12x8xbf16>
    %116 = vector.shape_cast %115 : vector<1x1x12x8xbf16> to vector<12x8xbf16>
    %cst_109 = arith.constant dense<0.000000e+00> : vector<256x8xf32>
    %117 = tpu.matmul %98, %116, %cst_109 {dimension_numbers = #tpu.dot_dimension_numbers<[1], [0], [0], [1], [0, 0, 1, 1], [], []>} : vector<256x12xbf16>, vector<12x8xbf16>, vector<256x8xf32> -> vector<256x8xf32>
    %c1_110 = arith.constant 1 : index
    %c1_111 = arith.constant 1 : index
    %c0_112 = arith.constant 0 : index
    %c0_113 = arith.constant 0 : index
    %118 = vector.load %arg10[%c1_110, %c1_111, %c0_112, %c0_113] : memref<2x2x12x8xbf16, #tpu.memory_space<vmem>>, vector<1x1x12x8xbf16>
    %119 = vector.shape_cast %118 : vector<1x1x12x8xbf16> to vector<12x8xbf16>
    %cst_114 = arith.constant dense<0.000000e+00> : vector<256x8xf32>
    %120 = tpu.matmul %100, %119, %cst_114 {dimension_numbers = #tpu.dot_dimension_numbers<[1], [0], [0], [1], [0, 0, 1, 1], [], []>} : vector<256x12xbf16>, vector<12x8xbf16>, vector<256x8xf32> -> vector<256x8xf32>
    %121 = arith.addf %117, %120 : vector<256x8xf32>
    %c0_115 = arith.constant 0 : index
    %c0_116 = arith.constant 0 : index
    %122 = vector.load %arg11[%c0_115, %c0_116] : memref<1x8xf32, #tpu.memory_space<vmem>>, vector<1x8xf32>
    %123 = vector.broadcast %122 : vector<1x8xf32> to vector<256x8xf32>
    %124 = arith.addf %121, %123 : vector<256x8xf32>
    %125 = vector.shape_cast %124 : vector<256x8xf32> to vector<16x16x8xf32>
    %c0_117 = arith.constant 0 : index
    %c0_118 = arith.constant 0 : index
    %c1_119 = arith.constant 1 : index
    %c0_120 = arith.constant 0 : index
    %c0_121 = arith.constant 0 : index
    %126 = vector.load %arg12[%c0_117, %c0_118, %c1_119, %c0_120, %c0_121] : memref<1x16x2x16x8xf32, #tpu.memory_space<vmem>>, vector<1x16x1x16x8xf32>
    %127 = vector.shape_cast %126 : vector<1x16x1x16x8xf32> to vector<16x16x8xf32>
    %128 = vector.shape_cast %125 : vector<16x16x8xf32> to vector<1x16x1x16x8xf32>
    tpu.vector_store %arg12[%c0_117, %c0_118, %c1_119, %c0_120, %c0_121], %128 {strides = array<i32>} : memref<1x16x2x16x8xf32, #tpu.memory_space<vmem>>, vector<1x16x1x16x8xf32>,
    return
  }
  func.func @transform_0(%arg0: i32) -> (i32, i32, i32, i32) {
    %c0_i32 = arith.constant 0 : i32
    %c0_i32_0 = arith.constant 0 : i32
    %c0_i32_1 = arith.constant 0 : i32
    %c0_i32_2 = arith.constant 0 : i32
    return %arg0, %c0_i32, %c0_i32_0, %c0_i32_1 : i32, i32, i32, i32
  }
  func.func @transform_1(%arg0: i32) -> (i32, i32, i32) {
    %c0_i32 = arith.constant 0 : i32
    %c0_i32_0 = arith.constant 0 : i32
    %c0_i32_1 = arith.constant 0 : i32
    %c0_i32_2 = arith.constant 0 : i32
    return %c0_i32, %c0_i32_0, %c0_i32_1 : i32, i32, i32
  }
  func.func @transform_2(%arg0: i32) -> (i32, i32) {
    %c0_i32 = arith.constant 0 : i32
    %c0_i32_0 = arith.constant 0 : i32
    %c0_i32_1 = arith.constant 0 : i32
    return %c0_i32, %c0_i32_0 : i32, i32
  }
  func.func @transform_3(%arg0: i32) -> (i32, i32) {
    %c0_i32 = arith.constant 0 : i32
    %c0_i32_0 = arith.constant 0 : i32
    %c0_i32_1 = arith.constant 0 : i32
    return %c0_i32, %c0_i32_0 : i32, i32
  }
  func.func @transform_4(%arg0: i32) -> (i32, i32) {
    %c0_i32 = arith.constant 0 : i32
    %c0_i32_0 = arith.constant 0 : i32
    %c0_i32_1 = arith.constant 0 : i32
    return %c0_i32, %c0_i32_0 : i32, i32
  }
  func.func @transform_5(%arg0: i32) -> (i32, i32, i32) {
    %c0_i32 = arith.constant 0 : i32
    %c0_i32_0 = arith.constant 0 : i32
    %c0_i32_1 = arith.constant 0 : i32
    %c0_i32_2 = arith.constant 0 : i32
    return %c0_i32, %c0_i32_0, %c0_i32_1 : i32, i32, i32
  }
  func.func @transform_6(%arg0: i32) -> (i32, i32) {
    %c0_i32 = arith.constant 0 : i32
    %c0_i32_0 = arith.constant 0 : i32
    %c0_i32_1 = arith.constant 0 : i32
    return %c0_i32, %c0_i32_0 : i32, i32
  }
  func.func @transform_7(%arg0: i32) -> (i32, i32) {
    %c0_i32 = arith.constant 0 : i32
    %c0_i32_0 = arith.constant 0 : i32
    %c0_i32_1 = arith.constant 0 : i32
    return %c0_i32, %c0_i32_0 : i32, i32
  }
  func.func @transform_8(%arg0: i32) -> (i32, i32) {
    %c0_i32 = arith.constant 0 : i32
    %c0_i32_0 = arith.constant 0 : i32
    %c0_i32_1 = arith.constant 0 : i32
    return %c0_i32, %c0_i32_0 : i32, i32
  }
  func.func @transform_9(%arg0: i32) -> (i32, i32, i32, i32) {
    %c0_i32 = arith.constant 0 : i32
    %c0_i32_0 = arith.constant 0 : i32
    %c0_i32_1 = arith.constant 0 : i32
    %c0_i32_2 = arith.constant 0 : i32
    %c0_i32_3 = arith.constant 0 : i32
    return %c0_i32, %c0_i32_0, %c0_i32_1, %c0_i32_2 : i32, i32, i32, i32
  }
  func.func @transform_10(%arg0: i32) -> (i32, i32) {
    %c0_i32 = arith.constant 0 : i32
    %c0_i32_0 = arith.constant 0 : i32
    %c0_i32_1 = arith.constant 0 : i32
    return %c0_i32, %c0_i32_0 : i32, i32
  }
  func.func @transform_11(%arg0: i32) -> (i32, i32, i32, i32, i32) {
    %c0_i32 = arith.constant 0 : i32
    %c0_i32_0 = arith.constant 0 : i32
    %c0_i32_1 = arith.constant 0 : i32
    %c0_i32_2 = arith.constant 0 : i32
    %c0_i32_3 = arith.constant 0 : i32
    return %arg0, %c0_i32, %c0_i32_0, %c0_i32_1, %c0_i32_2 : i32, i32, i32, i32, i32
  }
}

</mosaic_0001>

<bundles_post_ra>
// kernel: half_decoder_forward.1
= control target key start
LH: loop header
LB: loop body
LE: loop exit
PB: predicated region body
PF: predicated region fallthrough
CT: control target
= control target key end

     0   :  { %s7663_s17 = smov 0   ;;  %s9550_s0 = inlined_call_operand.vmem [shape: f32[2,16,16,4], index: 0, kind: input, shape index: {}]   ;;  %s9551_s1 = inlined_call_operand.vmem [shape: bf16[3,12,4], index: 1, kind: input, shape index: {}]   ;;  %s9552_s2 = inlined_call_operand.vmem [shape: f32[1,4], index: 2, kind: input, shape index: {}]   ;;  %s9553_s3 = inlined_call_operand.vmem [shape: bf16[4,4], index: 3, kind: input, shape index: {}]   ;;  %s9554_s4 = inlined_call_operand.vmem [shape: f32[1,4], index: 4, kind: input, shape index: {}]   ;;  %s9555_s5 = inlined_call_operand.vmem [shape: bf16[3,12,4], index: 5, kind: input, shape index: {}]   ;;  %s9556_s6 = inlined_call_operand.vmem [shape: f32[1,4], index: 6, kind: input, shape index: {}]   ;;  %s9557_s7 = inlined_call_operand.vmem [shape: bf16[4,4], index: 7, kind: input, shape index: {}]   ;;  %s9558_s8 = inlined_call_operand.vmem [shape: f32[1,4], index: 8, kind: input, shape index: {}]   ;;  %s9559_s9 = inlined_call_operand.vmem [shape: bf16[2,2,12,8], index: 9, kind: input, shape index: {}]   ;;  %s9560_s10 = inlined_call_operand.vmem [shape: f32[1,8], index: 10, kind: input, shape index: {}]   ;;  %s9561_s11 = inlined_call_operand.vmem [shape: f32[2,16,2,16,8], index: 11, kind: output, shape index: {}]  }
   0x1 LB: > { %s6264_s18 = sadd.s32 4294967295, %s7598_s17   ;;  %p6268_p0 = scmp.ge.s32.totalorder %s7598_s17, 1  ;;  %s7598_s17 = sphi %s7663_s17, %s21_s17  }
   0x2   : > { %p337_p1 = scmp.lt.s32.totalorder %s7598_s17, 3 }
   0x4   : > { %p338_p2 = pnand %p6268_p0, %p337_p1 }
   0x6   : > { %341 = sbr.rel (%p338_p2) target bundleno = 1710 (0x6ae), region = 64 }
   0xb   : > { %p377_p3 = scmp.lt.s32.totalorder %s6264_s18, 1  ;;  %vm388_vm0 = vcmask 93184   ;;  %v7600_v9 = vmov 0   ;;  %vm669_vm1 = vcmask 1047552   ;;  %s7601_s23 = smov 4   ;;  %v9600_v35 = vmov 0 }
   0xc   : > { %389 = vst.msk [vmem:[#allocation2] sm:$0xf] %vm388_vm0, %v7600_v9  ;;  %390 = vst.msk [vmem:[#allocation2 + $0x4] sm:$0xf] %vm388_vm0, %v7600_v9  ;;  %vm670_vm2 = vsmask.f32 7424 }
   0xd   : > { %s9679_s18 = smov (!%p377_p3, %s6264_s18), 1  ;;  %392 = vst.msk [vmem:[#allocation2 + $0x88] sm:$0xf] %vm388_vm0, %v7600_v9  ;;  %393 = vst.msk [vmem:[#allocation2 + $0x8c] sm:$0xf] %vm388_vm0, %v7600_v9  ;;  %s7602_s24 = smov 8  }
   0xe   : > { %s6769_s19 = sshll.u32 %s9679_s18, 8  ;;  %vm7716_vm3 = vmand %vm669_vm1, %vm670_vm2  ;;  %vm1214_vm4 = vcmask 1045504   ;;  %vm1165_vm5 = vcmask 97280   ;;  %vm602_vm6 = vcmask 1040384   ;;  %vm603_vm7 = vsmask.f32 256 }
   0xf   : > { %s7677_s22 = scalar_lea.vmem %s9550_s0, %s6769_s19  ;;  %v9601_v35 = vsel %vm7716_vm3, 4294967295, %v9600_v35  ;;  %vm7963_vm8 = vmand %vm602_vm6, %vm603_vm7  ;;  %vm784_vm9 = vcmask 31744   ;;  %vm833_vm10 = vcmask 64512   ;;  %vm2184_vm11 = vcmask 1041408  }
  0x10   : > { %v394_v0 = vld [vmem:[%s7677_s22] sm:$0xff]  ;;  %v395_v1 = vld [vmem:[%s7677_s22 + $0x8] sm:$0xff]  ;;  %v396_v2 = vld [vmem:[%s7677_s22 + $0x10] sm:$0xff]  ;;  %9602 = vst [vmem:[#allocation3_spill] sm:$0xff] %v9601_v35 }
  0x11   : > { %v426_v3 = vmax.f32 %v394_v0, 0.0  ;;  %v427_v4 = vmax.f32 %v395_v1, 0.0  ;;  %v397_v5 = vld [vmem:[%s7677_s22 + $0x18] sm:$0xff]  ;;  %v428_v6 = vmax.f32 %v396_v2, 0.0  ;;  %v398_v7 = vld [vmem:[%s7677_s22 + $0x20] sm:$0xff]  ;;  %v399_v8 = vld [vmem:[%s7677_s22 + $0x28] sm:$0xff] }
  0x12   : > { %v429_v10 = vmax.f32 %v397_v5, 0.0  ;;  %v430_v11 = vmax.f32 %v398_v7, 0.0  ;;  %v431_v12 = vmax.f32 %v399_v8, 0.0  ;;  %v400_v13 = vld [vmem:[%s7677_s22 + $0x30] sm:$0xff]  ;;  %v401_v14 = vld [vmem:[%s7677_s22 + $0x38] sm:$0xff]  ;;  %v402_v15 = vld [vmem:[%s7677_s22 + $0x40] sm:$0xff] }
  0x13   : > { %v7692_v16 = vpack.c.bf16 %v427_v4, %v426_v3  ;;  %v432_v17 = vmax.f32 %v400_v13, 0.0  ;;  %v433_v18 = vmax.f32 %v401_v14, 0.0  ;;  %v403_v19 = vld [vmem:[%s7677_s22 + $0x48] sm:$0xff]  ;;  %v434_v20 = vmax.f32 %v402_v15, 0.0  ;;  %v404_v27 = vld [vmem:[%s7677_s22 + $0x50] sm:$0xff]  ;;  %v405_v28 = vld [vmem:[%s7677_s22 + $0x58] sm:$0xff] }
  0x14   : > { %v7695_v21 = vpack.c.bf16 %v429_v10, %v428_v6  ;;  %v7697_v22 = vpack.c.bf16 %v431_v12, %v430_v11  ;;  %v435_v23 = vmax.f32 %v403_v19, 0.0  ;;  %v436_v38 = vmax.f32 %v404_v27, 0.0  ;;  %v406_v40 = vld [vmem:[%s7677_s22 + $0x60] sm:$0xff]  ;;  %v407_v43 = vld [vmem:[%s7677_s22 + $0x68] sm:$0xff]  ;;  %v408_v47 = vld [vmem:[%s7677_s22 + $0x70] sm:$0xff] }
  0x15   : > { %704 = vrot.lane.b32.xlu0 %v7692_v16, %s7601_s23  ;;  %v475_v24 = vshrl.u32 %v7692_v16, 16  ;;  %v478_v25 = vshll.u32 %v7692_v16, 16  ;;  %v7703_v26 = vpack.c.bf16 %v433_v18, %v432_v17  ;;  %v437_v39 = vmax.f32 %v405_v28, 0.0  ;;  %v409_v51 = vld [vmem:[%s7677_s22 + $0x78] sm:$0xff]  ;;  %v410_v52 = vld [vmem:[%s7677_s22 + $0x80] sm:$0xff]  ;;  %v411_v57 = vld [vmem:[%s7677_s22 + $0x88] sm:$0xff] }
  0x16   : > { %v482_v29 = vshrl.u32 %v7695_v21, 16  ;;  %v485_v30 = vshll.u32 %v7695_v21, 16  ;;  %v489_v31 = vshrl.u32 %v7697_v22, 16  ;;  %v492_v32 = vshll.u32 %v7697_v22, 16  ;;  %v412_v2 = vld [vmem:[%s7677_s22 + $0x90] sm:$0xff]  ;;  %v413_v3 = vld [vmem:[%s7677_s22 + $0x98] sm:$0xff] }
  0x17   : > { %v621_v33 = vrot.slane %v478_v25, 1  ;;  %v7713_v34 = vpack.c.bf16 %v435_v23, %v434_v20  ;;  %v499_v42 = vshll.u32 %v7703_v26, 16  ;;  %v496_v49 = vshrl.u32 %v7703_v26, 16  ;;  %v414_v13 = vld [vmem:[%s7677_s22 + $0xa0] sm:$0xff]  ;;  %v415_v14 = vld [vmem:[%s7677_s22 + $0xa8] sm:$0xff] }
  0x18   : > { %v623_v36 = vrot.slane %v485_v30, 1  ;;  %v625_v37 = vrot.slane %v492_v32, 1  ;;  %v438_v50 = vmax.f32 %v406_v40, 0.0  ;;  %v7746_v55 = vpack.c.bf16 %v437_v39, %v436_v38  ;;  %v7407_v16 = vld [vmem:[%s9551_s1 + $0x8] sm:$0x3f]  }
  0x19   : > { %706 = vrot.lane.b32.xlu0 %v7695_v21, %s7601_s23  ;;  %v622_v41 = vor.u32 %v621_v33, %v475_v24  ;;  %v506_v46 = vshll.u32 %v7713_v34, 16  ;;  %v627_v53 = vrot.slane %v499_v42, 1  ;;  %v503_v54 = vshrl.u32 %v7713_v34, 16  ;;  %7383 = vmatprep.subr.msk.bf16.mxu0 %vm1214_vm4, %v7407_v16 }
  0x1a   : > { %v624_v44 = vor.u32 %v623_v36, %v482_v29  ;;  %v626_v45 = vor.u32 %v625_v37, %v489_v31  ;;  %v439_v56 = vmax.f32 %v407_v43, 0.0  ;;  %v440_v61 = vmax.f32 %v408_v47, 0.0 }
  0x1b   : > { %v672_v48 = vsel %vm7716_vm3, %v622_v41, 0  ;;  %v629_v60 = vrot.slane %v506_v46, 1  ;;  %v441_v63 = vmax.f32 %v409_v51, 0.0  ;;  %v442_v0 = vmax.f32 %v410_v52, 0.0  ;;  %v418_v51 = vld [vmem:[%s7677_s22 + $0xc0] sm:$0xff]  ;;  %v419_v52 = vld [vmem:[%s7677_s22 + $0xc8] sm:$0xff] }
  0x1c   : > { %752 = vrot.lane.b32.xlu1 %v672_v48, %s7602_s24  ;;  %v673_v58 = vsel %vm7716_vm3, %v624_v44, 0  ;;  %v674_v59 = vsel %vm7716_vm3, %v626_v45, 0  ;;  %v7757_v62 = vpack.c.bf16 %v439_v56, %v438_v50  ;;  %v443_v1 = vmax.f32 %v411_v57, 0.0  ;;  %v416_v44 = vld [vmem:[%s7677_s22 + $0xb0] sm:$0xff]  ;;  %v417_v45 = vld [vmem:[%s7677_s22 + $0xb8] sm:$0xff] }
  0x1d   : > { %708 = vrot.lane.b32.xlu0 %v7697_v22, %s7601_s23  ;;  %v628_v4 = vor.u32 %v627_v53, %v496_v49  ;;  %v513_v5 = vshll.u32 %v7746_v55, 16  ;;  %v630_v7 = vor.u32 %v629_v60, %v503_v54  ;;  %v7765_v8 = vpack.c.bf16 %v441_v63, %v440_v61  ;;  %v420_v57 = vld [vmem:[%s7677_s22 + $0xd0] sm:$0xff] }
  0x1e   : > { %v520_v6 = vshll.u32 %v7757_v62, 16  ;;  %v7767_v9 = vpack.c.bf16 %v443_v1, %v442_v0  ;;  %v444_v10 = vmax.f32 %v412_v2, 0.0  ;;  %v445_v11 = vmax.f32 %v413_v3, 0.0  ;;  %v424_v22 = vld [vmem:[%s7677_s22 + $0xf0] sm:$0xff] }
  0x1f   : > { %v510_v12 = vshrl.u32 %v7746_v55, 16  ;;  %v675_v15 = vsel %vm7716_vm3, %v628_v4, 0  ;;  %v631_v17 = vrot.slane %v513_v5, 1  ;;  %v517_v18 = vshrl.u32 %v7757_v62, 16 }
  0x20   : > { %754 = vrot.lane.b32.xlu1 %v673_v58, %s7602_s24  ;;  %v633_v19 = vrot.slane %v520_v6, 1  ;;  %v676_v20 = vsel %vm7716_vm3, %v630_v7, 0  ;;  %v527_v23 = vshll.u32 %v7765_v8, 16  ;;  %v534_v27 = vshll.u32 %v7767_v9, 16  ;;  %v421_v58 = vld [vmem:[%s7677_s22 + $0xd8] sm:$0xff] }
  0x21   : > { %756 = vrot.lane.b32.xlu0 %v674_v59, %s7602_s24  ;;  %v7787_v28 = vpack.c.bf16 %v445_v11, %v444_v10  ;;  %v446_v33 = vmax.f32 %v414_v13, 0.0  ;;  %v447_v36 = vmax.f32 %v415_v14, 0.0  ;;  %v477_v37 = vrot.slane %v475_v24, 7 }
  0x22   : > { %v484_v38 = vrot.slane %v482_v29, 7  ;;  %v491_v39 = vrot.slane %v489_v31, 7  ;;  %v632_v40 = vor.u32 %v631_v17, %v510_v12  ;;  %v634_v41 = vor.u32 %v633_v19, %v517_v18  ;;  %v422_v17 = vld [vmem:[%s7677_s22 + $0xe0] sm:$0xff] }
  0x23   : > { %v524_v43 = vshrl.u32 %v7765_v8, 16  ;;  %v531_v24 = vshrl.u32 %v7767_v9, 16  ;;  %v635_v29 = vrot.slane %v527_v23, 1  ;;  %v637_v31 = vrot.slane %v534_v27, 1 }
  0x24   : > { %710 = vrot.lane.b32.xlu1 %v7703_v26, %s7601_s23  ;;  %v498_v47 = vrot.slane %v496_v49, 7  ;;  %v7805_v48 = vpack.c.bf16 %v447_v36, %v446_v33  ;;  %v541_v50 = vshll.u32 %v7787_v28, 16  ;;  %v505_v53 = vrot.slane %v503_v54, 7  ;;  %v7406_v33 = vld [vmem:[%s9551_s1] sm:$0x3f]  }
  0x25   : > { %712 = vrot.lane.b32.xlu0 %v7713_v34, %s7601_s23  ;;  %v7812_v56 = vrot.slane %v510_v12, 7  ;;  %v677_v49 = vsel %vm7716_vm3, %v632_v40, 0  ;;  %v678_v59 = vsel %vm7716_vm3, %v634_v41, 0  ;;  %v448_v60 = vmax.f32 %v416_v44, 0.0  ;;  %7384 = vmatprep.subr.msk.bf16.mxu1 %vm1214_vm4, %v7406_v33 }
  0x26   : > { %v449_v61 = vmax.f32 %v417_v45, 0.0  ;;  %v636_v63 = vor.u32 %v635_v29, %v524_v43  ;;  %v638_v54 = vor.u32 %v637_v31, %v531_v24  ;;  %v450_v0 = vmax.f32 %v418_v51, 0.0  ;;  %v7408_v29 = vld [vmem:[#allocation2] sm:$0xff]  }
  0x27   : > { %v451_v1 = vmax.f32 %v419_v52, 0.0  ;;  %v519_v2 = vrot.slane %v517_v18, 7  ;;  %v538_v3 = vshrl.u32 %v7787_v28, 16  ;;  %v639_v4 = vrot.slane %v541_v50, 1  ;;  %v423_v18 = vld [vmem:[%s7677_s22 + $0xe8] sm:$0xff]  ;;  %7011 = vmatprep.mubr.msk.bf16.mxu1 %vm1165_vm5, %v7408_v29 }
  0x28   : > { %758 = vrot.lane.b32.xlu1 %v675_v15, %s7602_s24  ;;  %v548_v7 = vshll.u32 %v7805_v48, 16  ;;  %v526_v10 = vrot.slane %v524_v43, 7  ;;  %v533_v11 = vrot.slane %v531_v24, 7  ;;  %v452_v12 = vmax.f32 %v420_v57, 0.0 }
  0x29   : > { %760 = vrot.lane.b32.xlu0 %v676_v20, %s7602_s24  ;;  %v453_v13 = vmax.f32 %v421_v58, 0.0  ;;  %v545_v14 = vshrl.u32 %v7805_v48, 16  ;;  %v7829_v15 = vpack.c.bf16 %v449_v61, %v448_v60  ;;  %v7835_v19 = vor.u32 %v478_v25, %v477_v37 }
  0x2a   : > { %v7839_v20 = vor.u32 %v485_v30, %v484_v38  ;;  %v679_v36 = vsel %vm7716_vm3, %v636_v63, 0  ;;  %v680_v40 = vsel %vm7716_vm3, %v638_v54, 0  ;;  %v540_v41 = vrot.slane %v538_v3, 7 }
  0x2b   : > { %v7848_v43 = vpack.c.bf16 %v451_v1, %v450_v0  ;;  %v640_v21 = vor.u32 %v639_v4, %v538_v3  ;;  %v547_v25 = vrot.slane %v545_v14, 7  ;;  %v641_v30 = vrot.slane %v548_v7, 1 }
  0x2c   : > { %714 = vrot.lane.b32.xlu1 %v7746_v55, %s7601_s23  ;;  %v7857_v37 = vor.u32 %v492_v32, %v491_v39  ;;  %v552_v38 = vshrl.u32 %v7829_v15, 16  ;;  %v7862_v24 = vpack.c.bf16 %v453_v13, %v452_v12  ;;  %v454_v44 = vmax.f32 %v422_v17, 0.0  ;;  %v425_v32 = vld [vmem:[%s7677_s22 + $0xf8] sm:$0xff] }
  0x2d   : > { %716 = vrot.lane.b32.xlu0 %v7757_v62, %s7601_s23  ;;  %v455_v45 = vmax.f32 %v423_v18, 0.0  ;;  %v555_v31 = vshll.u32 %v7829_v15, 16  ;;  %v559_v51 = vshrl.u32 %v7848_v43, 16  ;;  %v7872_v39 = vor.u32 %v499_v42, %v498_v47 }
  0x2e   : > { %v554_v52 = vrot.slane %v552_v38, 7  ;;  %v562_v57 = vshll.u32 %v7848_v43, 16  ;;  %v566_v58 = vshrl.u32 %v7862_v24, 16  ;;  %v7886_v42 = vor.u32 %v506_v46, %v505_v53 }
  0x2f   : > { %v561_v26 = vrot.slane %v559_v51, 7  ;;  %v1216_v47 = vsel %vm1214_vm4, %v7407_v16, 0  ;;  %v472_v60 = vpack.c.bf16 %v455_v45, %v454_v44  ;;  %v456_v63 = vmax.f32 %v424_v22, 0.0 }
  0x30   : > { %762 = vrot.lane.b32.xlu1 %v677_v49, %s7602_s24  ;;  %v1513_v49 = vsel %vm1214_vm4, %v7406_v33, 0  ;;  %v568_v61 = vrot.slane %v566_v58, 7  ;;  %v7894_v54 = vor.u32 %v513_v5, %v7812_v56  ;;  %v457_v34 = vmax.f32 %v425_v32, 0.0  ;;  %6976 = vmatpush3.bf16.msra.mxu0 %v1216_v47 }
  0x31   : > { %764 = vrot.lane.b32.xlu0 %v678_v59, %s7602_s24  ;;  %v7882_v59 = vld [vmem:[%s9551_s1 + $0x10] sm:$0x3f]   ;;  %7010 = vmatpush3.bf16.msra.mxu1 %v1513_v49  ;;  %v7899_v46 = vor.u32 %v520_v6, %v519_v2  ;;  %v7903_v53 = vor.u32 %v527_v23, %v526_v10  ;;  %v7907_v0 = vor.u32 %v534_v27, %v533_v11  ;;  %v573_v55 = vshrl.u32 %v472_v60, 16 }
  0x32   : > { %v642_v1 = vor.u32 %v641_v30, %v545_v14  ;;  %7385 = vmatprep.subr.msk.bf16.mxu0 %vm1214_vm4, %v7882_v59  ;;  %v7913_v5 = vor.u32 %v541_v50, %v540_v41  ;;  %v7917_v62 = vor.u32 %v548_v7, %v547_v25  ;;  %v569_v6 = vshll.u32 %v7862_v24, 16 }
  0x33   : > { %v7924_v23 = vor.u32 %v562_v57, %v561_v26  ;;  %v681_v27 = vsel %vm7716_vm3, %v640_v21, 0  ;;  %v643_v50 = vrot.slane %v555_v31, 1  ;;  %v473_v56 = vpack.c.bf16 %v457_v34, %v456_v63 }
  0x34   : > { %718 = vrot.lane.b32.xlu1 %v7765_v8, %s7601_s23  ;;  %v7920_v8 = vor.u32 %v555_v31, %v554_v52  ;;  %v7930_v2 = vor.u32 %v569_v6, %v568_v61  ;;  %v682_v3 = vsel %vm7716_vm3, %v642_v1, 0  ;;  %v645_v4 = vrot.slane %v562_v57, 1 }
  0x35   : > { %720 = vrot.lane.b32.xlu0 %v7767_v9, %s7601_s23  ;;  %v575_v9 = vrot.slane %v573_v55, 7  ;;  %v576_v7 = vshll.u32 %v472_v60, 16  ;;  %v580_v10 = vshrl.u32 %v473_v56, 16  ;;  %v583_v13 = vshll.u32 %v473_v56, 16 }
  0x36   : > { %v646_v12 = vor.u32 %v645_v4, %v559_v51  ;;  %v647_v17 = vrot.slane %v569_v6, 1  ;;  %v9603_v30 = vmov 0  ;;  %v606_v29 = vsel %vm7963_vm8, 0, %v7839_v20 }
  0x37   : > { %v582_v11 = vrot.slane %v580_v10, 7  ;;  %v9604_v30 = vsel %vm7963_vm8, 4294967295, %v9603_v30  ;;  %v607_v51 = vsel %vm7963_vm8, 0, %v7857_v37  ;;  %v609_v1 = vsel %vm7963_vm8, 0, %v7886_v42 }
  0x38   : > { %766 = vrot.lane.b32.xlu1 %v679_v36, %s7602_s24  ;;  %v684_v33 = vsel %vm7716_vm3, %v646_v12, 0  ;;  %v649_v36 = vrot.slane %v576_v7, 1  ;;  %9605 = vst [vmem:[#allocation4_spill] sm:$0xff] %v9604_v30 }
  0x39   : > { %768 = vrot.lane.b32.xlu0 %v680_v40, %s7602_s24  ;;  %v7944_v18 = vor.u32 %v583_v13, %v582_v11  ;;  %v648_v40 = vor.u32 %v647_v17, %v566_v58 }
  0x3a   : > { %v650_v41 = vor.u32 %v649_v36, %v573_v55  ;;  %v608_v55 = vsel %vm7963_vm8, 0, %v7872_v39  ;;  %v610_v36 = vsel %vm7963_vm8, 0, %v7894_v54 }
  0x3c   : > { %722 = vrot.lane.b32.xlu1 %v7787_v28, %s7601_s23  ;;  %v7935_v28 = vor.u32 %v576_v7, %v575_v9  ;;  %v686_v16 = vsel %vm7716_vm3, %v650_v41, 0 }
  0x3d   : > { %724 = vrot.lane.b32.xlu0 %v7805_v48, %s7601_s23  ;;  %v644_v48 = vor.u32 %v643_v50, %v552_v38 }
  0x3f   : > { %v683_v14 = vsel %vm7716_vm3, %v644_v48, 0 }
  0x40   : > { %770 = vrot.lane.b32.xlu1 %v681_v27, %s7602_s24 }
  0x41   : > { %772 = vrot.lane.b32.xlu0 %v682_v3, %s7602_s24 }
  0x44   : > { %726 = vrot.lane.b32.xlu1 %v7829_v15, %s7601_s23  ;;  %v685_v15 = vsel %vm7716_vm3, %v648_v40, 0 }
  0x45   : > { %728 = vrot.lane.b32.xlu0 %v7848_v43, %s7601_s23  ;;  %v651_v43 = vrot.slane %v583_v13, 1  ;;  %v1846_v13 = vsel %vm1214_vm4, %v7882_v59, 0 }
  0x47   : > { %v652_v21 = vor.u32 %v651_v43, %v580_v10 }
  0x48   : > { %774 = vrot.lane.b32.xlu1 %v683_v14, %s7602_s24 }
  0x49   : > { %776 = vrot.lane.b32.xlu0 %v684_v33, %s7602_s24  ;;  %v687_v25 = vsel %vm7716_vm3, %v652_v21, 0  ;;  %v611_v33 = vsel %vm7963_vm8, 0, %v7899_v46 }
  0x4c   : > { %730 = vrot.lane.b32.xlu1 %v7862_v24, %s7601_s23  ;;  %v605_v24 = vsel %vm7963_vm8, 0, %v7835_v19 }
  0x4d   : > { %732 = vrot.lane.b32.xlu0 %v472_v60, %s7601_s23 }
  0x50   : > { %778 = vrot.lane.b32.xlu1 %v685_v15, %s7602_s24 }
  0x51   : > { %780 = vrot.lane.b32.xlu0 %v686_v16, %s7602_s24 }
  0x54   : > { %734 = vrot.lane.b32.xlu1 %v473_v56, %s7601_s23 }
  0x58   : > { %782 = vrot.lane.b32.xlu1 %v687_v25, %s7602_s24 }
  0x87   : > { %v705_v38 = vpop.permute.xlu0 %704 }
  0x88   : > { %v787_v45 = vsel %vm784_vm9, %v605_v24, %v705_v38 }
  0x8b   : > { %v707_v44 = vpop.permute.xlu0 %706 }
  0x8c   : > { %v790_v52 = vsel %vm784_vm9, %v606_v29, %v707_v44 }
  0x8e   : > { %v753_v31 = vpop.permute.xlu1 %752 }
  0x8f   : > { %v835_v22 = vsel %vm833_vm10, %v787_v45, %v753_v31  ;;  %v709_v32 = vpop.permute.xlu0 %708 }
  0x90   : > { %v6273_v57 = vcombine.low %v835_v22, %v835_v22  ;;  %v6274_v19 = vcombine.high %v835_v22, %v835_v22  ;;  %v793_v58 = vsel %vm784_vm9, %v607_v51, %v709_v32  ;;  %v613_v51 = vsel %vm7963_vm8, 0, %v7907_v0 }
  0x91   : > { %v612_v22 = vsel %vm7963_vm8, 0, %v7903_v53 }
  0x92   : > { %979 = vst.msk [vmem:[#allocation2 + $0x8] sm:$0xf] %vm388_vm0, %v6273_v57  ;;  %980 = vst.msk [vmem:[#allocation2 + $0xc] sm:$0xf] %vm388_vm0, %v6274_v19  ;;  %v755_v49 = vpop.permute.xlu1 %754 }
  0x93   : > { %v837_v20 = vsel %vm833_vm10, %v790_v52, %v755_v49  ;;  %v757_v26 = vpop.permute.xlu0 %756 }
  0x94   : > { %v6275_v47 = vcombine.low %v837_v20, %v837_v20  ;;  %v6276_v60 = vcombine.high %v837_v20, %v837_v20  ;;  %v839_v37 = vsel %vm833_vm10, %v793_v58, %v757_v26 }
  0x95   : > { %v6277_v61 = vcombine.low %v839_v37, %v839_v37  ;;  %v6278_v63 = vcombine.high %v839_v37, %v839_v37 }
  0x96   : > { %981 = vst.msk [vmem:[#allocation2 + $0x10] sm:$0xf] %vm388_vm0, %v6275_v47  ;;  %982 = vst.msk [vmem:[#allocation2 + $0x14] sm:$0xf] %vm388_vm0, %v6276_v60  ;;  %v711_v34 = vpop.permute.xlu1 %710 }
  0x97   : > { %983 = vst.msk [vmem:[#allocation2 + $0x18] sm:$0xf] %vm388_vm0, %v6277_v61  ;;  %984 = vst.msk [vmem:[#allocation2 + $0x1c] sm:$0xf] %vm388_vm0, %v6278_v63  ;;  %v713_v6 = vpop.permute.xlu0 %712  ;;  %v796_v50 = vsel %vm784_vm9, %v608_v55, %v711_v34  ;;  %v614_v55 = vsel %vm7963_vm8, 0, %v7913_v5 }
  0x98   : > { %v799_v9 = vsel %vm784_vm9, %v609_v1, %v713_v6  ;;  %v615_v1 = vsel %vm7963_vm8, 0, %v7917_v62 }
  0x99   : > { %v7409_v27 = vld [vmem:[#allocation2 + $0x8] sm:$0xff]  }
  0x9a   : > { %v759_v56 = vpop.permute.xlu1 %758  ;;  %v7410_v3 = vld [vmem:[#allocation2 + $0x8] sm:$0xff]   ;;  %6977 = vmatprep.mubr.msk.bf16.mxu0 %vm1165_vm5, %v7409_v27 }
  0x9b   : > { %v841_v4 = vsel %vm833_vm10, %v796_v50, %v759_v56  ;;  %v761_v42 = vpop.permute.xlu0 %760  ;;  %7012 = vmatmul.mubr.msk.bf16.vlgmr.msra.gmra.mxu1 %vm1165_vm5, %v7410_v3 }
  0x9c   : > { %v6279_v7 = vcombine.low %v841_v4, %v841_v4  ;;  %v6280_v10 = vcombine.high %v841_v4, %v841_v4  ;;  %v843_v48 = vsel %vm833_vm10, %v799_v9, %v761_v42 }
  0x9d   : > { %v6281_v39 = vcombine.low %v843_v48, %v843_v48  ;;  %v6282_v11 = vcombine.high %v843_v48, %v843_v48  ;;  %v7412_v12 = vld [vmem:[#allocation2 + $0x10] sm:$0xff]  }
  0x9e   : > { %985 = vst.msk [vmem:[#allocation2 + $0x20] sm:$0xf] %vm388_vm0, %v6279_v7  ;;  %986 = vst.msk [vmem:[#allocation2 + $0x24] sm:$0xf] %vm388_vm0, %v6280_v10  ;;  %v715_v14 = vpop.permute.xlu1 %714  ;;  %v7413_v17 = vld [vmem:[#allocation2 + $0x10] sm:$0xff]   ;;  %6978 = vmatmul.mubr.msk.bf16.vlgmr.msra.gmra.mxu0 %vm1165_vm5, %v7412_v12  ;;  %v7414_v40 = vld [vmem:[#allocation2 + $0x18] sm:$0xff]  }
  0x9f   : > { %987 = vst.msk [vmem:[#allocation2 + $0x28] sm:$0xf] %vm388_vm0, %v6281_v39  ;;  %988 = vst.msk [vmem:[#allocation2 + $0x2c] sm:$0xf] %vm388_vm0, %v6282_v11  ;;  %v717_v59 = vpop.permute.xlu0 %716  ;;  %7015 = vmatprep.mubr.msk.bf16.mxu1 %vm1165_vm5, %v7413_v17  ;;  %7044 = vmatpush3.bf16.msra.mxu0 %v1846_v13  ;;  %v7415_v41 = vld [vmem:[#allocation2 + $0x18] sm:$0xff]   ;;  %v802_v46 = vsel %vm784_vm9, %v610_v36, %v715_v14  ;;  %v617_v13 = vsel %vm7963_vm8, 0, %v7924_v23 }
  0xa0   : > { %v805_v15 = vsel %vm784_vm9, %v611_v33, %v717_v59  ;;  %6981 = vmatprep.mubr.msk.bf16.mxu0 %vm1165_vm5, %v7414_v40  ;;  %v616_v14 = vsel %vm7963_vm8, 0, %v7920_v8 }
  0xa2   : > { %v763_v43 = vpop.permute.xlu1 %762 }
  0xa3   : > { %v845_v16 = vsel %vm833_vm10, %v802_v46, %v763_v43  ;;  %v765_v21 = vpop.permute.xlu0 %764  ;;  %7016 = vmatmul.mubr.msk.bf16.gmra.mxu1 %vm1165_vm5, %v7415_v41 }
  0xa4   : > { %v6283_v25 = vcombine.low %v845_v16, %v845_v16  ;;  %v6284_v54 = vcombine.high %v845_v16, %v845_v16  ;;  %v847_v38 = vsel %vm833_vm10, %v805_v15, %v765_v21 }
  0xa5   : > { %v6285_v24 = vcombine.low %v847_v38, %v847_v38  ;;  %v6286_v44 = vcombine.high %v847_v38, %v847_v38  ;;  %v7416_v45 = vld [vmem:[#allocation2 + $0x20] sm:$0xff]  }
  0xa6   : > { %989 = vst.msk [vmem:[#allocation2 + $0x30] sm:$0xf] %vm388_vm0, %v6283_v25  ;;  %990 = vst.msk [vmem:[#allocation2 + $0x34] sm:$0xf] %vm388_vm0, %v6284_v54  ;;  %v719_v29 = vpop.permute.xlu1 %718  ;;  %v7417_v31 = vld [vmem:[#allocation2 + $0x20] sm:$0xff]   ;;  %6982 = vmatmul.mubr.msk.bf16.gmra.mxu0 %vm1165_vm5, %v7416_v45  ;;  %v7418_v52 = vld [vmem:[#allocation2 + $0x28] sm:$0xff]  }
  0xa7   : > { %991 = vst.msk [vmem:[#allocation2 + $0x38] sm:$0xf] %vm388_vm0, %v6285_v24  ;;  %992 = vst.msk [vmem:[#allocation2 + $0x3c] sm:$0xf] %vm388_vm0, %v6286_v44  ;;  %v721_v32 = vpop.permute.xlu0 %720  ;;  %7019 = vmatprep.mubr.msk.bf16.mxu1 %vm1165_vm5, %v7417_v31  ;;  %v7419_v57 = vld [vmem:[#allocation2 + $0x28] sm:$0xff]   ;;  %6985 = vmatprep.mubr.msk.bf16.mxu0 %vm1165_vm5, %v7418_v52  ;;  %v808_v0 = vsel %vm784_vm9, %v612_v22, %v719_v29  ;;  %v619_v24 = vsel %vm7963_vm8, 0, %v7935_v28 }
  0xa8   : > { %v811_v19 = vsel %vm784_vm9, %v613_v51, %v721_v32  ;;  %v618_v44 = vsel %vm7963_vm8, 0, %v7930_v2 }
  0xaa   : > { %v767_v58 = vpop.permute.xlu1 %766 }
  0xab   : > { %v849_v49 = vsel %vm833_vm10, %v808_v0, %v767_v58  ;;  %v769_v20 = vpop.permute.xlu0 %768  ;;  %7020 = vmatmul.mubr.msk.bf16.gmra.mxu1 %vm1165_vm5, %v7419_v57 }
  0xac   : > { %v6287_v26 = vcombine.low %v849_v49, %v849_v49  ;;  %v6288_v47 = vcombine.high %v849_v49, %v849_v49  ;;  %v851_v53 = vsel %vm833_vm10, %v811_v19, %v769_v20 }
  0xad   : > { %v6289_v60 = vcombine.low %v851_v53, %v851_v53  ;;  %v6290_v37 = vcombine.high %v851_v53, %v851_v53  ;;  %v7420_v61 = vld [vmem:[#allocation2 + $0x30] sm:$0xff]  }
  0xae   : > { %993 = vst.msk [vmem:[#allocation2 + $0x40] sm:$0xf] %vm388_vm0, %v6287_v26  ;;  %994 = vst.msk [vmem:[#allocation2 + $0x44] sm:$0xf] %vm388_vm0, %v6288_v47  ;;  %v723_v63 = vpop.permute.xlu1 %722  ;;  %v7421_v34 = vld [vmem:[#allocation2 + $0x30] sm:$0xff]   ;;  %6986 = vmatmul.mubr.msk.bf16.gmra.mxu0 %vm1165_vm5, %v7420_v61  ;;  %v7422_v9 = vld [vmem:[#allocation2 + $0x38] sm:$0xff]  }
  0xaf   : > { %995 = vst.msk [vmem:[#allocation2 + $0x48] sm:$0xf] %vm388_vm0, %v6289_v60  ;;  %996 = vst.msk [vmem:[#allocation2 + $0x4c] sm:$0xf] %vm388_vm0, %v6290_v37  ;;  %v725_v6 = vpop.permute.xlu0 %724  ;;  %7023 = vmatprep.mubr.msk.bf16.mxu1 %vm1165_vm5, %v7421_v34  ;;  %v7423_v27 = vld [vmem:[#allocation2 + $0x38] sm:$0xff]   ;;  %6989 = vmatprep.mubr.msk.bf16.mxu0 %vm1165_vm5, %v7422_v9  ;;  %v814_v62 = vsel %vm784_vm9, %v614_v55, %v723_v63  ;;  %v620_v47 = vsel %vm7963_vm8, 0, %v7944_v18 }
  0xb0   : > { %v817_v50 = vsel %vm784_vm9, %v615_v1, %v725_v6 }
  0xb2   : > { %v771_v56 = vpop.permute.xlu1 %770 }
  0xb3   : > { %v853_v3 = vsel %vm833_vm10, %v814_v62, %v771_v56  ;;  %v773_v4 = vpop.permute.xlu0 %772  ;;  %7024 = vmatmul.mubr.msk.bf16.gmra.mxu1 %vm1165_vm5, %v7423_v27  ;;  %v7442_v62 = vld [vmem:[#allocation2 + $0x18] sm:$0xff]   ;;  %v7443_v56 = vld [vmem:[#allocation2 + $0x20] sm:$0xff]  }
  0xb4   : > { %v6291_v42 = vcombine.low %v853_v3, %v853_v3  ;;  %v6292_v7 = vcombine.high %v853_v3, %v853_v3  ;;  %v855_v5 = vsel %vm833_vm10, %v817_v50, %v773_v4  ;;  %v7441_v50 = vld [vmem:[#allocation2 + $0x10] sm:$0xff]   ;;  %v7444_v3 = vld [vmem:[#allocation2 + $0x28] sm:$0xff]  }
  0xb5   : > { %v6293_v10 = vcombine.low %v855_v5, %v855_v5  ;;  %v6294_v48 = vcombine.high %v855_v5, %v855_v5  ;;  %v7424_v39 = vld [vmem:[#allocation2 + $0x40] sm:$0xff]   ;;  %v7445_v4 = vld [vmem:[#allocation2 + $0x30] sm:$0xff]  }
  0xb6   : > { %997 = vst.msk [vmem:[#allocation2 + $0x50] sm:$0xf] %vm388_vm0, %v6291_v42  ;;  %998 = vst.msk [vmem:[#allocation2 + $0x54] sm:$0xf] %vm388_vm0, %v6292_v7  ;;  %v727_v11 = vpop.permute.xlu1 %726  ;;  %v7425_v12 = vld [vmem:[#allocation2 + $0x40] sm:$0xff]   ;;  %6990 = vmatmul.mubr.msk.bf16.gmra.mxu0 %vm1165_vm5, %v7424_v39  ;;  %v7426_v33 = vld [vmem:[#allocation2 + $0x48] sm:$0xff]  }
  0xb7   : > { %999 = vst.msk [vmem:[#allocation2 + $0x58] sm:$0xf] %vm388_vm0, %v6293_v10  ;;  %1000 = vst.msk [vmem:[#allocation2 + $0x5c] sm:$0xf] %vm388_vm0, %v6294_v48  ;;  %v729_v17 = vpop.permute.xlu0 %728  ;;  %7027 = vmatprep.mubr.msk.bf16.mxu1 %vm1165_vm5, %v7425_v12  ;;  %v7427_v36 = vld [vmem:[#allocation2 + $0x48] sm:$0xff]   ;;  %6993 = vmatprep.mubr.msk.bf16.mxu0 %vm1165_vm5, %v7426_v33  ;;  %v820_v23 = vsel %vm784_vm9, %v616_v14, %v727_v11  ;;  %v7446_v42 = vld [vmem:[#allocation2 + $0x38] sm:$0xff]  }
  0xb8   : > { %v823_v59 = vsel %vm784_vm9, %v617_v13, %v729_v17  ;;  %v7447_v7 = vld [vmem:[#allocation2 + $0x40] sm:$0xff]   ;;  %v7448_v48 = vld [vmem:[#allocation2 + $0x48] sm:$0xff]  }
  0xb9   : > { %v2128_v5 = vld [vmem:[%s9553_s3] sm:$0x3] }
  0xba   : > { %v775_v40 = vpop.permute.xlu1 %774  ;;  %7386 = vmatprep.subr.msk.bf16.mxu1 %vm2184_vm11, %v2128_v5  ;;  %v2186_v10 = vsel %vm2184_vm11, %v2128_v5, 0 }
  0xbb   : > { %v857_v41 = vsel %vm833_vm10, %v820_v23, %v775_v40  ;;  %v777_v15 = vpop.permute.xlu0 %776  ;;  %7028 = vmatmul.mubr.msk.bf16.gmra.mxu1 %vm1165_vm5, %v7427_v36  ;;  %v7456_v36 = vld [vmem:[#allocation2 + $0x88] sm:$0xff]  }
  0xbc   : > { %v6295_v46 = vcombine.low %v857_v41, %v857_v41  ;;  %v6296_v43 = vcombine.high %v857_v41, %v857_v41  ;;  %v859_v8 = vsel %vm833_vm10, %v823_v59, %v777_v15  ;;  %7078 = vmatpush3.bf16.msra.mxu1 %v2186_v10 }
  0xbd   : > { %v6297_v16 = vcombine.low %v859_v8, %v859_v8  ;;  %v6298_v21 = vcombine.high %v859_v8, %v859_v8  ;;  %v7428_v25 = vld [vmem:[#allocation2 + $0x50] sm:$0xff]  }
  0xbe   : > { %1001 = vst.msk [vmem:[#allocation2 + $0x60] sm:$0xf] %vm388_vm0, %v6295_v46  ;;  %1002 = vst.msk [vmem:[#allocation2 + $0x64] sm:$0xf] %vm388_vm0, %v6296_v43  ;;  %v731_v54 = vpop.permute.xlu1 %730  ;;  %v7429_v38 = vld [vmem:[#allocation2 + $0x50] sm:$0xff]   ;;  %6994 = vmatmul.mubr.msk.bf16.gmra.mxu0 %vm1165_vm5, %v7428_v25  ;;  %v7430_v29 = vld [vmem:[#allocation2 + $0x58] sm:$0xff]  }
  0xbf   : > { %1003 = vst.msk [vmem:[#allocation2 + $0x68] sm:$0xf] %vm388_vm0, %v6297_v16  ;;  %1004 = vst.msk [vmem:[#allocation2 + $0x6c] sm:$0xf] %vm388_vm0, %v6298_v21  ;;  %v733_v45 = vpop.permute.xlu0 %732  ;;  %7031 = vmatprep.mubr.msk.bf16.mxu1 %vm1165_vm5, %v7429_v38  ;;  %v7431_v31 = vld [vmem:[#allocation2 + $0x58] sm:$0xff]   ;;  %6997 = vmatprep.mubr.msk.bf16.mxu0 %vm1165_vm5, %v7430_v29  ;;  %v826_v28 = vsel %vm784_vm9, %v618_v44, %v731_v54  ;;  %v7449_v39 = vld [vmem:[#allocation2 + $0x50] sm:$0xff]  }
  0xc0   : > { %v829_v51 = vsel %vm784_vm9, %v619_v24, %v733_v45  ;;  %v7450_v11 = vld [vmem:[#allocation2 + $0x58] sm:$0xff]  }
  0xc2   : > { %v779_v22 = vpop.permute.xlu1 %778 }
  0xc3   : > { %v861_v32 = vsel %vm833_vm10, %v826_v28, %v779_v22  ;;  %v781_v52 = vpop.permute.xlu0 %780  ;;  %7032 = vmatmul.mubr.msk.bf16.gmra.mxu1 %vm1165_vm5, %v7431_v31 }
  0xc4   : > { %v6299_v57 = vcombine.low %v861_v32, %v861_v32  ;;  %v6300_v19 = vcombine.high %v861_v32, %v861_v32  ;;  %v863_v2 = vsel %vm833_vm10, %v829_v51, %v781_v52 }
  0xc5   : > { %v6301_v0 = vcombine.low %v863_v2, %v863_v2  ;;  %v6302_v58 = vcombine.high %v863_v2, %v863_v2  ;;  %v7432_v49 = vld [vmem:[#allocation2 + $0x60] sm:$0xff]  }
  0xc6   : > { %1005 = vst.msk [vmem:[#allocation2 + $0x70] sm:$0xf] %vm388_vm0, %v6299_v57  ;;  %1006 = vst.msk [vmem:[#allocation2 + $0x74] sm:$0xf] %vm388_vm0, %v6300_v19  ;;  %v735_v20 = vpop.permute.xlu1 %734  ;;  %v7433_v26 = vld [vmem:[#allocation2 + $0x60] sm:$0xff]   ;;  %6998 = vmatmul.mubr.msk.bf16.gmra.mxu0 %vm1165_vm5, %v7432_v49  ;;  %v7434_v53 = vld [vmem:[#allocation2 + $0x68] sm:$0xff]  }
  0xc7   : > { %1007 = vst.msk [vmem:[#allocation2 + $0x78] sm:$0xf] %vm388_vm0, %v6301_v0  ;;  %1008 = vst.msk [vmem:[#allocation2 + $0x7c] sm:$0xf] %vm388_vm0, %v6302_v58  ;;  %7035 = vmatprep.mubr.msk.bf16.mxu1 %vm1165_vm5, %v7433_v26  ;;  %v7435_v60 = vld [vmem:[#allocation2 + $0x68] sm:$0xff]   ;;  %7001 = vmatprep.mubr.msk.bf16.mxu0 %vm1165_vm5, %v7434_v53  ;;  %v832_v37 = vsel %vm784_vm9, %v620_v47, %v735_v20  ;;  %v7451_v12 = vld [vmem:[#allocation2 + $0x60] sm:$0xff]  }
  0xc8   : > { %v7452_v13 = vld [vmem:[#allocation2 + $0x68] sm:$0xff]  }
  0xca   : > { %v783_v61 = vpop.permute.xlu1 %782 }
  0xcb   : > { %v865_v63 = vsel %vm833_vm10, %v832_v37, %v783_v61  ;;  %7036 = vmatmul.mubr.msk.bf16.gmra.mxu1 %vm1165_vm5, %v7435_v60 }
  0xcc   : > { %v6303_v34 = vcombine.low %v865_v63, %v865_v63  ;;  %v6304_v1 = vcombine.high %v865_v63, %v865_v63 }
  0xcd   : > { %v7436_v55 = vld [vmem:[#allocation2 + $0x70] sm:$0xff]  }
  0xce   : > { %1009 = vst.msk [vmem:[#allocation2 + $0x80] sm:$0xf] %vm388_vm0, %v6303_v34  ;;  %1010 = vst.msk [vmem:[#allocation2 + $0x84] sm:$0xf] %vm388_vm0, %v6304_v1  ;;  %v7437_v18 = vld [vmem:[#allocation2 + $0x70] sm:$0xff]   ;;  %7002 = vmatmul.mubr.msk.bf16.gmra.mxu0 %vm1165_vm5, %v7436_v55  ;;  %v7438_v6 = vld [vmem:[#allocation2 + $0x78] sm:$0xff]  }
  0xcf   : > { %7039 = vmatprep.mubr.msk.bf16.mxu1 %vm1165_vm5, %v7437_v18  ;;  %v7439_v9 = vld [vmem:[#allocation2 + $0x78] sm:$0xff]   ;;  %7005 = vmatprep.mubr.msk.bf16.mxu0 %vm1165_vm5, %v7438_v6  ;;  %v7453_v14 = vld [vmem:[#allocation2 + $0x70] sm:$0xff]  }
  0xd0   : > { %v7454_v17 = vld [vmem:[#allocation2 + $0x78] sm:$0xff]  }
  0xd3   : > { %7040 = vmatmul.mubr.msk.bf16.gmra.mxu1 %vm1165_vm5, %v7439_v9 }
  0xd5   : > { %v7440_v27 = vld [vmem:[#allocation2 + $0x80] sm:$0xff]  }
  0xd6   : > { %7006 = vmatmul.mubr.msk.bf16.gmra.mxu0 %vm1165_vm5, %v7440_v27  ;;  %v7455_v33 = vld [vmem:[#allocation2 + $0x80] sm:$0xff]  }
  0xd7   : > { %7045 = vmatprep.mubr.msk.bf16.mxu0 %vm1165_vm5, %v7441_v50 }
  0xde   : > { %7046 = vmatmul.mubr.msk.bf16.vlgmr.msra.gmra.mxu0 %vm1165_vm5, %v7442_v62 }
  0xdf   : > { %7049 = vmatprep.mubr.msk.bf16.mxu0 %vm1165_vm5, %v7443_v56 }
  0xe6   : > { %7050 = vmatmul.mubr.msk.bf16.gmra.mxu0 %vm1165_vm5, %v7444_v3 }
  0xe7   : > { %7053 = vmatprep.mubr.msk.bf16.mxu0 %vm1165_vm5, %v7445_v4 }
  0xee   : > { %7054 = vmatmul.mubr.msk.bf16.gmra.mxu0 %vm1165_vm5, %v7446_v42 }
  0xef   : > { %7057 = vmatprep.mubr.msk.bf16.mxu0 %vm1165_vm5, %v7447_v7 }
  0xf6   : > { %7058 = vmatmul.mubr.msk.bf16.gmra.mxu0 %vm1165_vm5, %v7448_v48  ;;  %v8206_v48 = vld [vmem:[%s9552_s2] ss:$0 sm:$0xff] }
  0xf7   : > { %7061 = vmatprep.mubr.msk.bf16.mxu0 %vm1165_vm5, %v7449_v39 }
  0xfe   : > { %7062 = vmatmul.mubr.msk.bf16.gmra.mxu0 %vm1165_vm5, %v7450_v11 }
  0xff   : > { %7065 = vmatprep.mubr.msk.bf16.mxu0 %vm1165_vm5, %v7451_v12 }
 0x106   : > { %7066 = vmatmul.mubr.msk.bf16.gmra.mxu0 %vm1165_vm5, %v7452_v13 }
 0x107   : > { %7069 = vmatprep.mubr.msk.bf16.mxu0 %vm1165_vm5, %v7453_v14 }
 0x10e   : > { %7070 = vmatmul.mubr.msk.bf16.gmra.mxu0 %vm1165_vm5, %v7454_v17 }
 0x10f   : > { %7073 = vmatprep.mubr.msk.bf16.mxu0 %vm1165_vm5, %v7455_v33 }
 0x116   : > { %7074 = vmatmul.mubr.msk.bf16.gmra.mxu0 %vm1165_vm5, %v7456_v36 }
 0x15b   : > { %v7013_v59 = vpop.f32.mrf.mxu1 }
 0x15d   : > { %v1549_v41 = vpop.f32.mrf.mxu1 }
 0x15e   : > { %v6979_v23 = vpop.f32.mrf.mxu0 }
 0x15f   : > { %v7014_v43 = vpop.f32.mrf.mxu1  ;;  %v1558_v4 = vadd.f32 %v7013_v59, %v6979_v23 }
 0x160   : > { %v1252_v40 = vpop.f32.mrf.mxu0 }
 0x161   : > { %v1552_v21 = vpop.f32.mrf.mxu1  ;;  %v1550_v5 = vadd.f32 %v1549_v41, %v1252_v40 }
 0x162   : > { %v6980_v15 = vpop.f32.mrf.mxu0 }
 0x163   : > { %v7017_v38 = vpop.f32.mrf.mxu1  ;;  %v1561_v11 = vadd.f32 %v7014_v43, %v6980_v15 }
 0x164   : > { %v1255_v46 = vpop.f32.mrf.mxu0 }
 0x165   : > { %v1565_v45 = vpop.f32.mrf.mxu1  ;;  %v1553_v17 = vadd.f32 %v1552_v21, %v1255_v46 }
 0x166   : > { %v6983_v8 = vpop.f32.mrf.mxu0 }
 0x167   : > { %v7018_v51 = vpop.f32.mrf.mxu1  ;;  %v1574_v23 = vadd.f32 %v7017_v38, %v6983_v8 }
 0x168   : > { %v1268_v16 = vpop.f32.mrf.mxu0 }
 0x169   : > { %v1568_v32 = vpop.f32.mrf.mxu1 }
 0x16a   : > { %v8133_v25 = vpop.f32.mrf.mxu0 }
 0x16b   : > { %v8153_v19 = vpop.f32.mrf.mxu1  ;;  %v1577_v46 = vadd.f32 %v7018_v51, %v8133_v25 }
 0x16c   : > { %v8135_v54 = vpop.f32.mrf.mxu0 }
 0x16d   : > { %v8159_v58 = vpop.f32.mrf.mxu1 }
 0x16e   : > { %v8137_v24 = vpop.f32.mrf.mxu0 }
 0x16f   : > { %v8165_v26 = vpop.f32.mrf.mxu1 }
 0x170   : > { %v8139_v44 = vpop.f32.mrf.mxu0 }
 0x171   : > { %v8171_v60 = vpop.f32.mrf.mxu1 }
 0x172   : > { %v8141_v29 = vpop.f32.mrf.mxu0 }
 0x173   : > { %v8177_v63 = vpop.f32.mrf.mxu1 }
 0x174   : > { %v8143_v31 = vpop.f32.mrf.mxu0 }
 0x175   : > { %v8183_v55 = vpop.f32.mrf.mxu1 }
 0x176   : > { %v8145_v28 = vpop.f32.mrf.mxu0 }
 0x177   : > { %v8189_v9 = vpop.f32.mrf.mxu1 }
 0x178   : > { %v8147_v22 = vpop.f32.mrf.mxu0 }
 0x179   : > { %v8195_v62 = vpop.f32.mrf.mxu1 }
 0x17a   : > { %v8149_v52 = vpop.f32.mrf.mxu0 }
 0x17b   : > { %v8201_v42 = vpop.f32.mrf.mxu1 }
 0x17c   : > { %v8151_v57 = vpop.f32.mrf.mxu0 }
 0x17d   : > { %v8208_v13 = vpop.f32.mrf.mxu1 }
 0x17e   : > { %v8155_v2 = vpop.f32.mrf.mxu0 }
 0x17f   : > { %v8213_v30 = vpop.f32.mrf.mxu1 }
 0x180   : > { %v8157_v0 = vpop.f32.mrf.mxu0 }
 0x182   : > { %v8161_v49 = vpop.f32.mrf.mxu0 }
 0x184   : > { %v8163_v20 = vpop.f32.mrf.mxu0 }
 0x186   : > { %v8167_v47 = vpop.f32.mrf.mxu0 }
 0x188   : > { %v8169_v53 = vpop.f32.mrf.mxu0 }
 0x18a   : > { %v8173_v37 = vpop.f32.mrf.mxu0 }
 0x18c   : > { %v8175_v61 = vpop.f32.mrf.mxu0 }
 0x18e   : > { %v8179_v34 = vpop.f32.mrf.mxu0 }
 0x190   : > { %v8181_v1 = vpop.f32.mrf.mxu0 }
 0x192   : > { %v8185_v18 = vpop.f32.mrf.mxu0 }
 0x194   : > { %v8187_v6 = vpop.f32.mrf.mxu0 }
 0x196   : > { %v8191_v27 = vpop.f32.mrf.mxu0 }
 0x198   : > { %v8193_v50 = vpop.f32.mrf.mxu0 }
 0x19a   : > { %v8197_v56 = vpop.f32.mrf.mxu0 }
 0x19c   : > { %v8199_v3 = vpop.f32.mrf.mxu0 }
 0x19e   : > { %v7047_v7 = vpop.f32.mrf.mxu0 }
 0x19f   : > { %v2011_v10 = vadd.f32 %v7047_v7, %v1558_v4  ;;  %v1566_v7 = vadd.f32 %v1565_v45, %v1268_v16  ;;  %v1569_v16 = vadd.f32 %v1568_v32, %v8135_v54 }
 0x1a0   : > { %v1882_v39 = vpop.f32.mrf.mxu0 }
 0x1a1   : > { %v2009_v12 = vadd.f32 %v1882_v39, %v1550_v5  ;;  %v2050_v33 = vadd.f32 %v8206_v48, %v2011_v10 }
 0x1a2   : > { %v7048_v14 = vpop.f32.mrf.mxu0 }
 0x1a3   : > { %v2012_v36 = vadd.f32 %v7048_v14, %v1561_v11  ;;  %v2048_v40 = vadd.f32 %v8206_v48, %v2009_v12  ;;  %v2082_v15 = vmax.f32 %v2050_v33, 0.0  ;;  %v8217_v12 = vpop.f32.mrf.mxu1 }
 0x1a4   : > { %v1885_v59 = vpop.f32.mrf.mxu0 }
 0x1a5   : > { %v2051_v41 = vadd.f32 %v8206_v48, %v2012_v36  ;;  %v2010_v4 = vadd.f32 %v1885_v59, %v1553_v17  ;;  %v2080_v10 = vmax.f32 %v2048_v40, 0.0  ;;  %v8228_v40 = vpop.f32.mrf.mxu1 }
 0x1a6   : > { %v7051_v35 = vpop.f32.mrf.mxu0 }
 0x1a7   : > { %v2083_v43 = vmax.f32 %v2051_v41, 0.0  ;;  %v2049_v5 = vadd.f32 %v8206_v48, %v2010_v4  ;;  %v2015_v39 = vadd.f32 %v7051_v35, %v1574_v23  ;;  %v1590_v35 = vadd.f32 %v8153_v19, %v8137_v24 }
 0x1a8   : > { %v1898_v21 = vpop.f32.mrf.mxu0  ;;  %v1582_v23 = vadd.f32 %v8159_v58, %v8139_v44  ;;  %v1593_v19 = vadd.f32 %v8165_v26, %v8141_v29  ;;  %v1585_v58 = vadd.f32 %v8171_v60, %v8143_v31 }
 0x1a9   : > { %v2113_v11 = vpack.c.bf16 %v2083_v43, %v2082_v15  ;;  %v2081_v8 = vmax.f32 %v2049_v5, 0.0  ;;  %v2013_v38 = vadd.f32 %v1898_v21, %v1566_v7  ;;  %v2054_v17 = vadd.f32 %v8206_v48, %v2015_v39 }
 0x1aa   : > { %v7052_v14 = vpop.f32.mrf.mxu0 }
 0x1ab   : > { %v2112_v45 = vpack.c.bf16 %v2081_v8, %v2080_v10  ;;  %v2016_v33 = vadd.f32 %v7052_v14, %v1577_v46  ;;  %v2052_v25 = vadd.f32 %v8206_v48, %v2013_v38  ;;  %v2086_v32 = vmax.f32 %v2054_v17, 0.0  ;;  %v8234_v46 = vpop.f32.mrf.mxu1 }
 0x1ac   : > { %v1901_v36 = vpop.f32.mrf.mxu0  ;;  %v1606_v38 = vadd.f32 %v8177_v63, %v8145_v28  ;;  %v1609_v28 = vadd.f32 %v8189_v9, %v8149_v52 }
 0x1ad   : > { %v2055_v51 = vadd.f32 %v8206_v48, %v2016_v33  ;;  %v2014_v59 = vadd.f32 %v1901_v36, %v1569_v16  ;;  %7079 = vmatprep.mubr.msk.bf16.mxu1 %vm784_vm9, %v2112_v45  ;;  %v2084_v15 = vmax.f32 %v2052_v25, 0.0  ;;  %v1598_v16 = vadd.f32 %v8183_v55, %v8147_v22  ;;  %v7034_v45 = vpop.f32.mrf.mxu1 }
 0x1ae   : > { %v7055_v54 = vpop.f32.mrf.mxu0  ;;  %7080 = vmatmul.mubr.msk.bf16.vlgmr.msra.gmra.mxu1 %vm784_vm9, %v2113_v11  ;;  %v1601_v22 = vadd.f32 %v8195_v62, %v8151_v57 }
 0x1af   : > { %v2087_v41 = vmax.f32 %v2055_v51, 0.0  ;;  %v2053_v4 = vadd.f32 %v8206_v48, %v2014_v59  ;;  %v2019_v24 = vadd.f32 %v7055_v54, %v1590_v35 }
 0x1b0   : > { %v1914_v7 = vpop.f32.mrf.mxu0 }
 0x1b1   : > { %v2115_v43 = vpack.c.bf16 %v2087_v41, %v2086_v32  ;;  %v2085_v5 = vmax.f32 %v2053_v4, 0.0  ;;  %v2017_v39 = vadd.f32 %v1914_v7, %v1582_v23  ;;  %v2058_v10 = vadd.f32 %v8206_v48, %v2019_v24  ;;  %v1632_v23 = vpop.f32.mrf.mxu1 }
 0x1b2   : > { %v7056_v44 = vpop.f32.mrf.mxu0  ;;  %v1622_v24 = vadd.f32 %v8201_v42, %v8155_v2  ;;  %v1614_v7 = vadd.f32 %v8208_v13, %v8157_v0  ;;  %v1625_v2 = vadd.f32 %v8213_v30, %v8161_v49  ;;  %v1617_v0 = vadd.f32 %v8217_v12, %v8163_v20 }
 0x1b3   : > { %v2114_v21 = vpack.c.bf16 %v2085_v5, %v2084_v15  ;;  %v2020_v11 = vadd.f32 %v7056_v44, %v1593_v19  ;;  %v2056_v29 = vadd.f32 %v8206_v48, %v2017_v39  ;;  %v2090_v60 = vmax.f32 %v2058_v10, 0.0  ;;  %v7037_v15 = vpop.f32.mrf.mxu1 }
 0x1b4   : > { %v1917_v8 = vpop.f32.mrf.mxu0 }
 0x1b5   : > { %v2059_v26 = vadd.f32 %v8206_v48, %v2020_v11  ;;  %v2018_v14 = vadd.f32 %v1917_v8, %v1585_v58  ;;  %7083 = vmatprep.mubr.msk.bf16.mxu1 %vm784_vm9, %v2114_v21  ;;  %v2088_v35 = vmax.f32 %v2056_v29, 0.0  ;;  %v1645_v11 = vpop.f32.mrf.mxu1 }
 0x1b6   : > { %v7059_v31 = vpop.f32.mrf.mxu0  ;;  %7084 = vmatmul.mubr.msk.bf16.gmra.mxu1 %vm784_vm9, %v2115_v43 }
 0x1b7   : > { %v2091_v17 = vmax.f32 %v2059_v26, 0.0  ;;  %v2057_v33 = vadd.f32 %v8206_v48, %v2018_v14  ;;  %v2023_v36 = vadd.f32 %v7059_v31, %v1606_v38  ;;  %v1638_v14 = vadd.f32 %v8228_v40, %v8167_v47 }
 0x1b8   : > { %v1930_v63 = vpop.f32.mrf.mxu0  ;;  %v1630_v31 = vadd.f32 %v8234_v46, %v8169_v53  ;;  %v1641_v47 = vadd.f32 %v7034_v45, %v8173_v37  ;;  %v1633_v53 = vadd.f32 %v1632_v23, %v8175_v61 }
 0x1b9   : > { %v2117_v25 = vpack.c.bf16 %v2091_v17, %v2090_v60  ;;  %v2089_v51 = vmax.f32 %v2057_v33, 0.0  ;;  %v2021_v59 = vadd.f32 %v1930_v63, %v1598_v16  ;;  %v2062_v32 = vadd.f32 %v8206_v48, %v2023_v36  ;;  %v7038_v60 = vpop.f32.mrf.mxu1 }
 0x1ba   : > { %v7060_v54 = vpop.f32.mrf.mxu0 }
 0x1bb   : > { %v2116_v55 = vpack.c.bf16 %v2089_v51, %v2088_v35  ;;  %v2024_v41 = vadd.f32 %v7060_v54, %v1609_v28  ;;  %v2060_v52 = vadd.f32 %v8206_v48, %v2021_v59  ;;  %v2094_v62 = vmax.f32 %v2062_v32, 0.0  ;;  %v1648_v51 = vpop.f32.mrf.mxu1 }
 0x1bc   : > { %v1933_v4 = vpop.f32.mrf.mxu0  ;;  %v1654_v32 = vadd.f32 %v7037_v15, %v8179_v34  ;;  %v1657_v34 = vadd.f32 %v7038_v60, %v8185_v18 }
 0x1bd   : > { %v2063_v9 = vadd.f32 %v8206_v48, %v2024_v41  ;;  %v2022_v19 = vadd.f32 %v1933_v4, %v1601_v22  ;;  %7087 = vmatprep.mubr.msk.bf16.mxu1 %vm784_vm9, %v2116_v55  ;;  %v2092_v44 = vmax.f32 %v2060_v52, 0.0  ;;  %v1646_v4 = vadd.f32 %v1645_v11, %v8181_v1 }
 0x1be   : > { %v7063_v57 = vpop.f32.mrf.mxu0  ;;  %7088 = vmatmul.mubr.msk.bf16.gmra.mxu1 %vm784_vm9, %v2117_v25  ;;  %v1649_v1 = vadd.f32 %v1648_v51, %v8187_v6 }
 0x1bf   : > { %v2095_v43 = vmax.f32 %v2063_v9, 0.0  ;;  %v2061_v5 = vadd.f32 %v8206_v48, %v2022_v19  ;;  %v2027_v39 = vadd.f32 %v7063_v57, %v1622_v24  ;;  %v7041_v24 = vpop.f32.mrf.mxu1 }
 0x1c0   : > { %v1946_v42 = vpop.f32.mrf.mxu0 }
 0x1c1   : > { %v2119_v58 = vpack.c.bf16 %v2095_v43, %v2094_v62  ;;  %v2093_v21 = vmax.f32 %v2061_v5, 0.0  ;;  %v2025_v10 = vadd.f32 %v1946_v42, %v1614_v7  ;;  %v2066_v38 = vadd.f32 %v8206_v48, %v2027_v39  ;;  %v1661_v5 = vpop.f32.mrf.mxu1 }
 0x1c2   : > { %v7064_v8 = vpop.f32.mrf.mxu0 }
 0x1c3   : > { %v2118_v13 = vpack.c.bf16 %v2093_v21, %v2092_v44  ;;  %v2028_v29 = vadd.f32 %v7064_v8, %v1625_v2  ;;  %v2064_v30 = vadd.f32 %v8206_v48, %v2025_v10  ;;  %v2098_v12 = vmax.f32 %v2066_v38, 0.0  ;;  %v7042_v8 = vpop.f32.mrf.mxu1 }
 0x1c4   : > { %v1949_v26 = vpop.f32.mrf.mxu0  ;;  %v1670_v21 = vadd.f32 %v7041_v24, %v8191_v27  ;;  %v1673_v27 = vadd.f32 %v7042_v8, %v8197_v56 }
 0x1c5   : > { %v2067_v49 = vadd.f32 %v8206_v48, %v2028_v29  ;;  %v2026_v16 = vadd.f32 %v1949_v26, %v1617_v0  ;;  %7091 = vmatprep.mubr.msk.bf16.mxu1 %vm784_vm9, %v2118_v13  ;;  %v2096_v28 = vmax.f32 %v2064_v30, 0.0  ;;  %v1662_v0 = vadd.f32 %v1661_v5, %v8193_v50  ;;  %v1664_v60 = vpop.f32.mrf.mxu1 }
 0x1c6   : > { %v7067_v20 = vpop.f32.mrf.mxu0  ;;  %7092 = vmatmul.mubr.msk.bf16.gmra.mxu1 %vm784_vm9, %v2119_v58 }
 0x1c7   : > { %v2099_v17 = vmax.f32 %v2067_v49, 0.0  ;;  %v2065_v33 = vadd.f32 %v8206_v48, %v2026_v16  ;;  %v2031_v36 = vadd.f32 %v7067_v20, %v1638_v14 }
 0x1c8   : > { %v1962_v40 = vpop.f32.mrf.mxu0 }
 0x1c9   : > { %v2121_v63 = vpack.c.bf16 %v2099_v17, %v2098_v12  ;;  %v2097_v35 = vmax.f32 %v2065_v33, 0.0  ;;  %v2029_v25 = vadd.f32 %v1962_v40, %v1630_v31  ;;  %v2070_v54 = vadd.f32 %v8206_v48, %v2031_v36 }
 0x1ca   : > { %v7068_v59 = vpop.f32.mrf.mxu0  ;;  %v1665_v12 = vadd.f32 %v1664_v60, %v8199_v3 }
 0x1cb   : > { %v2120_v46 = vpack.c.bf16 %v2097_v35, %v2096_v28  ;;  %v2032_v22 = vadd.f32 %v7068_v59, %v1641_v47  ;;  %v2068_v41 = vadd.f32 %v8206_v48, %v2029_v25  ;;  %v2102_v61 = vmax.f32 %v2070_v54, 0.0 }
 0x1cc   : > { %v1965_v55 = vpop.f32.mrf.mxu0 }
 0x1cd   : > { %v2071_v37 = vadd.f32 %v8206_v48, %v2032_v22  ;;  %v2030_v45 = vadd.f32 %v1965_v55, %v1633_v53  ;;  %7095 = vmatprep.mubr.msk.bf16.mxu1 %vm784_vm9, %v2120_v46  ;;  %v2100_v15 = vmax.f32 %v2068_v41, 0.0  ;;  %v7457_v53 = vld [vmem:[%s9555_s5 + $0x8] sm:$0x3f]  }
 0x1ce   : > { %v7071_v52 = vpop.f32.mrf.mxu0  ;;  %7096 = vmatmul.mubr.msk.bf16.gmra.mxu1 %vm784_vm9, %v2121_v63  ;;  %7387 = vmatprep.subr.msk.bf16.mxu0 %vm1214_vm4, %v7457_v53  ;;  %v3160_v46 = vsel %vm1214_vm4, %v7457_v53, 0 }
 0x1cf   : > { %v2103_v23 = vmax.f32 %v2071_v37, 0.0  ;;  %v2069_v9 = vadd.f32 %v8206_v48, %v2030_v45  ;;  %v2035_v19 = vadd.f32 %v7071_v52, %v1654_v32  ;;  %7112 = vmatpush3.bf16.msra.mxu0 %v3160_v46  ;;  %v7560_v37 = vld [vmem:[%s7677_s22 + $0x10] sm:$0xff]  ;;  %v7561_v52 = vld [vmem:[%s7677_s22] sm:$0xff] }
 0x1d0   : > { %v1978_v7 = vpop.f32.mrf.mxu0 }
 0x1d1   : > { %v2123_v57 = vpack.c.bf16 %v2103_v23, %v2102_v61  ;;  %v2101_v62 = vmax.f32 %v2069_v9, 0.0  ;;  %v2033_v43 = vadd.f32 %v1978_v7, %v1646_v4  ;;  %v2074_v42 = vadd.f32 %v8206_v48, %v2035_v19  ;;  %v7562_v23 = vld [vmem:[%s7677_s22 + $0x18] sm:$0xff] }
 0x1d2   : > { %v7072_v39 = vpop.f32.mrf.mxu0 }
 0x1d3   : > { %v2122_v2 = vpack.c.bf16 %v2101_v62, %v2100_v15  ;;  %v2036_v44 = vadd.f32 %v7072_v39, %v1657_v34  ;;  %v2072_v10 = vadd.f32 %v8206_v48, %v2033_v43  ;;  %v2106_v6 = vmax.f32 %v2074_v42, 0.0 }
 0x1d4   : > { %v1981_v58 = vpop.f32.mrf.mxu0 }
 0x1d5   : > { %v2075_v18 = vadd.f32 %v8206_v48, %v2036_v44  ;;  %v2034_v11 = vadd.f32 %v1981_v58, %v1649_v1  ;;  %7099 = vmatprep.mubr.msk.bf16.mxu1 %vm784_vm9, %v2122_v2  ;;  %v2104_v30 = vmax.f32 %v2072_v10, 0.0  ;;  %v7564_v44 = vld [vmem:[%s7677_s22 + $0x30] sm:$0xff] }
 0x1d6   : > { %v7075_v13 = vpop.f32.mrf.mxu0  ;;  %7100 = vmatmul.mubr.msk.bf16.gmra.mxu1 %vm784_vm9, %v2123_v57  ;;  %v7563_v57 = vld [vmem:[%s7677_s22 + $0x8] sm:$0xff] }
 0x1d7   : > { %v2107_v38 = vmax.f32 %v2075_v18, 0.0  ;;  %v2073_v29 = vadd.f32 %v8206_v48, %v2034_v11  ;;  %v2039_v26 = vadd.f32 %v7075_v13, %v1670_v21  ;;  %v7565_v11 = vld [vmem:[%s7677_s22 + $0x20] sm:$0xff] }
 0x1d8   : > { %v1994_v14 = vpop.f32.mrf.mxu0 }
 0x1d9   : > { %v2125_v49 = vpack.c.bf16 %v2107_v38, %v2106_v6  ;;  %v2105_v16 = vmax.f32 %v2073_v29, 0.0  ;;  %v2037_v31 = vadd.f32 %v1994_v14, %v1662_v0  ;;  %v2078_v17 = vadd.f32 %v8206_v48, %v2039_v26  ;;  %v7566_v38 = vld [vmem:[%s7677_s22 + $0x38] sm:$0xff] }
 0x1da   : > { %v7076_v20 = vpop.f32.mrf.mxu0 }
 0x1db   : > { %v2124_v50 = vpack.c.bf16 %v2105_v16, %v2104_v30  ;;  %v2040_v33 = vadd.f32 %v7076_v20, %v1673_v27  ;;  %v2076_v47 = vadd.f32 %v8206_v48, %v2037_v31  ;;  %v2110_v56 = vmax.f32 %v2078_v17, 0.0  ;;  %v7567_v20 = vld [vmem:[%s7677_s22 + $0x28] sm:$0xff] }
 0x1dc   : > { %v1997_v36 = vpop.f32.mrf.mxu0 }
 0x1dd   : > { %v2079_v40 = vadd.f32 %v8206_v48, %v2040_v33  ;;  %v2038_v28 = vadd.f32 %v1997_v36, %v1665_v12  ;;  %7103 = vmatprep.mubr.msk.bf16.mxu1 %vm784_vm9, %v2124_v50  ;;  %v2108_v25 = vmax.f32 %v2076_v47, 0.0 }
 0x1de   : > { %7104 = vmatmul.mubr.msk.bf16.gmra.mxu1 %vm784_vm9, %v2125_v49 }
 0x1df   : > { %v2111_v63 = vmax.f32 %v2079_v40, 0.0  ;;  %v2077_v35 = vadd.f32 %v8206_v48, %v2038_v28  ;;  %v8314_v48 = vld [vmem:[%s9554_s4] ss:$0 sm:$0xff] }
 0x1e1   : > { %v2127_v3 = vpack.c.bf16 %v2111_v63, %v2110_v56  ;;  %v2109_v51 = vmax.f32 %v2077_v35, 0.0  ;;  %v7568_v63 = vld [vmem:[%s7677_s22 + $0x50] sm:$0xff] }
 0x1e3   : > { %v2126_v59 = vpack.c.bf16 %v2109_v51, %v2108_v25  ;;  %v7458_v51 = vld [vmem:[%s9555_s5] sm:$0x3f]  }
 0x1e4   : > { %7388 = vmatprep.subr.msk.bf16.mxu1 %vm1214_vm4, %v7458_v51 }
 0x1e5   : > { %7107 = vmatprep.mubr.msk.bf16.mxu1 %vm784_vm9, %v2126_v59  ;;  %v8826_v59 = vld [vmem:[%s9556_s6] ss:$0 sm:$0xff] }
 0x1e6   : > { %7108 = vmatmul.mubr.msk.bf16.gmra.mxu1 %vm784_vm9, %v2127_v3 }
 0x26e   : > { %v7081_v54 = vpop.f32.mrf.mxu1 }
 0x26f   : > { %v2231_v22 = vadd.f32 %v7081_v54, %v8314_v48 }
 0x270   : > { %v2222_v55 = vpop.f32.mrf.mxu1 }
 0x271   : > { %v2223_v32 = vadd.f32 %v8314_v48, %v2222_v55  ;;  %v8319_v45 = vadd.f32 %v7560_v37, %v2231_v22 }
 0x272   : > { %v7082_v41 = vpop.f32.mrf.mxu1 }
 0x273   : > { %9606 = vst [vmem:[#allocation5_spill] sm:$0xff] %v8319_v45  ;;  %v2234_v4 = vadd.f32 %v7082_v41, %v8314_v48  ;;  %v8323_v61 = vadd.f32 %v7561_v52, %v2223_v32  ;;  %v2383_v7 = vmax.f32 %v8319_v45, 0.0 }
 0x274   : > { %v2225_v24 = vpop.f32.mrf.mxu1 }
 0x275   : > { %9607 = vst [vmem:[#allocation6_spill] sm:$0xff] %v8323_v61  ;;  %v8326_v9 = vadd.f32 %v7562_v23, %v2234_v4  ;;  %v2226_v19 = vadd.f32 %v8314_v48, %v2225_v24  ;;  %v2381_v39 = vmax.f32 %v8323_v61, 0.0  ;;  %v7459_v23 = vld [vmem:[#allocation2] sm:$0xff]  }
 0x276   : > { %v7085_v34 = vpop.f32.mrf.mxu1  ;;  %7147 = vmatprep.mubr.msk.bf16.mxu1 %vm1165_vm5, %v7459_v23 }
 0x277   : > { %9608 = vst [vmem:[#allocation7_spill] sm:$0xff] %v8326_v9  ;;  %v2384_v15 = vmax.f32 %v8326_v9, 0.0  ;;  %v8332_v62 = vadd.f32 %v7563_v57, %v2226_v19  ;;  %v2247_v43 = vadd.f32 %v7085_v34, %v8314_v48  ;;  %v7569_v19 = vld [vmem:[%s7677_s22 + $0x40] sm:$0xff] }
 0x278   : > { %v2238_v5 = vpop.f32.mrf.mxu1 }
 0x279   : > { %9609 = vst [vmem:[#allocation8_spill] sm:$0xff] %v8332_v62  ;;  %v2382_v1 = vmax.f32 %v8332_v62, 0.0  ;;  %v2239_v2 = vadd.f32 %v8314_v48, %v2238_v5  ;;  %v2414_v42 = vpack.c.bf16 %v2384_v15, %v2383_v7  ;;  %v8339_v58 = vadd.f32 %v7564_v44, %v2247_v43  ;;  %v7570_v7 = vld [vmem:[%s7677_s22 + $0x58] sm:$0xff]  ;;  %v8389_v5 = vld [vmem:[%s9555_s5 + $0x10] sm:$0x3f]  }
 0x27a   : > { %v7086_v21 = vpop.f32.mrf.mxu1  ;;  %v3457_v44 = vsel %vm1214_vm4, %v7458_v51, 0  ;;  %7389 = vmatprep.subr.msk.bf16.mxu0 %vm1214_vm4, %v8389_v5  ;;  %v7574_v51 = vld [vmem:[%s7677_s22 + $0x78] sm:$0xff] }
 0x27b   : > { %9610 = vst [vmem:[#allocation9_spill] sm:$0xff] %v8339_v58  ;;  %v2250_v10 = vadd.f32 %v7086_v21, %v8314_v48  ;;  %2655 = vrot.lane.b32.xlu1 %v2414_v42, %s7601_s23  ;;  %v2413_v18 = vpack.c.bf16 %v2382_v1, %v2381_v39  ;;  %v8344_v8 = vadd.f32 %v7565_v11, %v2239_v2  ;;  %v2437_v13 = vshrl.u32 %v2414_v42, 16 }
 0x27c   : > { %v2241_v0 = vpop.f32.mrf.mxu1  ;;  %v2440_v6 = vshll.u32 %v2414_v42, 16  ;;  %v2387_v14 = vmax.f32 %v8339_v58, 0.0  ;;  %7146 = vmatpush3.bf16.msra.mxu1 %v3457_v44 }
 0x27d   : > { %9611 = vst [vmem:[#allocation10_spill] sm:$0xff] %v8344_v8  ;;  %v8347_v29 = vadd.f32 %v7566_v38, %v2250_v10  ;;  %v2242_v26 = vadd.f32 %v8314_v48, %v2241_v0  ;;  %2653 = vrot.lane.b32.xlu0 %v2413_v18, %s7601_s23  ;;  %v2430_v27 = vshrl.u32 %v2413_v18, 16  ;;  %v2439_v16 = vrot.slane %v2437_v13, 7  ;;  %v7571_v10 = vld [vmem:[%s7677_s22 + $0x48] sm:$0xff] }
 0x27e   : > { %v7089_v30 = vpop.f32.mrf.mxu1  ;;  %v2575_v49 = vrot.slane %v2440_v6, 1  ;;  %v2433_v31 = vshll.u32 %v2413_v18, 16  ;;  %v2385_v33 = vmax.f32 %v8344_v8, 0.0 }
 0x27f   : > { %9612 = vst [vmem:[#allocation11_spill] sm:$0xff] %v8347_v29  ;;  %v2388_v60 = vmax.f32 %v8347_v29, 0.0  ;;  %v8354_v12 = vadd.f32 %v7567_v20, %v2242_v26  ;;  %v2263_v50 = vadd.f32 %v7089_v30, %v8314_v48  ;;  %v2432_v17 = vrot.slane %v2430_v27, 7 }
 0x280   : > { %v2254_v36 = vpop.f32.mrf.mxu1  ;;  %v2576_v47 = vor.u32 %v2575_v49, %v2437_v13  ;;  %v2573_v40 = vrot.slane %v2433_v31, 1  ;;  %v8358_v28 = vor.u32 %v2440_v6, %v2439_v16  ;;  %v7572_v16 = vld [vmem:[%s7677_s22 + $0x70] sm:$0xff] }
 0x281   : > { %9613 = vst [vmem:[#allocation12_spill] sm:$0xff] %v8354_v12  ;;  %v2386_v56 = vmax.f32 %v8354_v12, 0.0  ;;  %v8362_v35 = vadd.f32 %v7568_v63, %v2263_v50  ;;  %v2255_v25 = vadd.f32 %v8314_v48, %v2254_v36  ;;  %v2416_v3 = vpack.c.bf16 %v2388_v60, %v2387_v14 }
 0x282   : > { %v2622_v53 = vsel %vm7716_vm3, %v2576_v47, 0  ;;  %v7090_v46 = vpop.f32.mrf.mxu1  ;;  %v2574_v54 = vor.u32 %v2573_v40, %v2430_v27  ;;  %v8370_v22 = vor.u32 %v2433_v31, %v2432_v17 }
 0x283   : > { %9614 = vst [vmem:[#allocation13_spill] sm:$0xff] %v8362_v35  ;;  %2703 = vrot.lane.b32.xlu1 %v2622_v53, %s7602_s24  ;;  %v2266_v55 = vadd.f32 %v7090_v46, %v8314_v48  ;;  %v2415_v32 = vpack.c.bf16 %v2386_v56, %v2385_v33  ;;  %v2391_v41 = vmax.f32 %v8362_v35, 0.0  ;;  %v2451_v24 = vshrl.u32 %v2416_v3, 16 }
 0x284   : > { %v2257_v37 = vpop.f32.mrf.mxu1  ;;  %v2621_v4 = vsel %vm7716_vm3, %v2574_v54, 0  ;;  %v2454_v52 = vshll.u32 %v2416_v3, 16  ;;  %v8379_v34 = vadd.f32 %v7569_v19, %v2255_v25  ;;  %v7573_v25 = vld [vmem:[%s7677_s22 + $0x60] sm:$0xff] }
 0x285   : > { %v8382_v15 = vadd.f32 %v7570_v7, %v2266_v55  ;;  %v2258_v57 = vadd.f32 %v8314_v48, %v2257_v37  ;;  %2701 = vrot.lane.b32.xlu0 %v2621_v4, %s7602_s24  ;;  %v2444_v43 = vshrl.u32 %v2415_v32, 16  ;;  %v2453_v2 = vrot.slane %v2451_v24, 7 }
 0x286   : > { %9616 = vst [vmem:[#allocation14_spill] sm:$0xff] %v8379_v34  ;;  %v7093_v39 = vpop.f32.mrf.mxu1  ;;  %v2579_v1 = vrot.slane %v2454_v52, 1  ;;  %v2447_v42 = vshll.u32 %v2415_v32, 16  ;;  %v2389_v27 = vmax.f32 %v8379_v34, 0.0 }
 0x287   : > { %9617 = vst [vmem:[#allocation15_spill] sm:$0xff] %v8382_v15  ;;  %v2392_v21 = vmax.f32 %v8382_v15, 0.0  ;;  %v8395_v18 = vadd.f32 %v7571_v10, %v2258_v57  ;;  %2659 = vrot.lane.b32.xlu1 %v2416_v3, %s7601_s23  ;;  %v2279_v11 = vadd.f32 %v7093_v39, %v8314_v48  ;;  %v2446_v0 = vrot.slane %v2444_v43, 7  ;;  %v7576_v10 = vld [vmem:[%s7677_s22 + $0x90] sm:$0xff] }
 0x288   : > { %v2270_v13 = vpop.f32.mrf.mxu1  ;;  %v2580_v6 = vor.u32 %v2579_v1, %v2451_v24  ;;  %v2577_v38 = vrot.slane %v2447_v42, 1  ;;  %v8399_v26 = vor.u32 %v2454_v52, %v2453_v2  ;;  %v7575_v52 = vld [vmem:[%s7677_s22 + $0x68] sm:$0xff] }
 0x289   : > { %9618 = vst [vmem:[#allocation16_spill] sm:$0xff] %v8395_v18  ;;  %v2390_v14 = vmax.f32 %v8395_v18, 0.0  ;;  %v2271_v30 = vadd.f32 %v8314_v48, %v2270_v13  ;;  %2657 = vrot.lane.b32.xlu0 %v2415_v32, %s7601_s23  ;;  %v2418_v49 = vpack.c.bf16 %v2392_v21, %v2391_v41  ;;  %v8408_v31 = vadd.f32 %v7572_v16, %v2279_v11 }
 0x28a   : > { %v2624_v60 = vsel %vm7716_vm3, %v2580_v6, 0  ;;  %v7094_v20 = vpop.f32.mrf.mxu1  ;;  %v2578_v50 = vor.u32 %v2577_v38, %v2444_v43  ;;  %v8412_v17 = vor.u32 %v2447_v42, %v2446_v0 }
 0x28b   : > { %9619 = vst [vmem:[#allocation17_spill] sm:$0xff] %v8408_v31  ;;  %2707 = vrot.lane.b32.xlu1 %v2624_v60, %s7602_s24  ;;  %v2282_v33 = vadd.f32 %v7094_v20, %v8314_v48  ;;  %v2417_v36 = vpack.c.bf16 %v2390_v14, %v2389_v27  ;;  %v2465_v56 = vshrl.u32 %v2418_v49, 16  ;;  %v2468_v63 = vshll.u32 %v2418_v49, 16  ;;  %v7577_v20 = vld [vmem:[%s7677_s22 + $0x80] sm:$0xff] }
 0x28c   : > { %v2273_v47 = vpop.f32.mrf.mxu1  ;;  %v2623_v40 = vsel %vm7716_vm3, %v2578_v50, 0  ;;  %v8419_v3 = vadd.f32 %v7573_v25, %v2271_v30  ;;  %v2395_v55 = vmax.f32 %v8408_v31, 0.0 }
 0x28d   : > { %v8422_v53 = vadd.f32 %v7574_v51, %v2282_v33  ;;  %v2274_v46 = vadd.f32 %v8314_v48, %v2273_v47  ;;  %2705 = vrot.lane.b32.xlu0 %v2623_v40, %s7602_s24  ;;  %v2458_v54 = vshrl.u32 %v2417_v36, 16  ;;  %v2583_v41 = vrot.slane %v2468_v63, 1  ;;  %v7578_v33 = vld [vmem:[%s7677_s22 + $0x98] sm:$0xff] }
 0x28e   : > { %9620 = vst [vmem:[#allocation18_spill] sm:$0xff] %v8419_v3  ;;  %v7097_v32 = vpop.f32.mrf.mxu1  ;;  %v2467_v37 = vrot.slane %v2465_v56, 7  ;;  %v2461_v4 = vshll.u32 %v2417_v36, 16  ;;  %v2393_v2 = vmax.f32 %v8419_v3, 0.0 }
 0x28f   : > { %9621 = vst [vmem:[#allocation19_spill] sm:$0xff] %v8422_v53  ;;  %v2396_v24 = vmax.f32 %v8422_v53, 0.0  ;;  %v8429_v23 = vadd.f32 %v7575_v52, %v2274_v46  ;;  %2663 = vrot.lane.b32.xlu1 %v2418_v49, %s7601_s23  ;;  %v2295_v19 = vadd.f32 %v7097_v32, %v8314_v48  ;;  %v2460_v7 = vrot.slane %v2458_v54, 7 }
 0x290   : > { %v2286_v57 = vpop.f32.mrf.mxu1  ;;  %v2584_v43 = vor.u32 %v2583_v41, %v2465_v56  ;;  %v2581_v39 = vrot.slane %v2461_v4, 1  ;;  %v8433_v1 = vor.u32 %v2468_v63, %v2467_v37 }
 0x291   : > { %9622 = vst [vmem:[#allocation20_spill] sm:$0xff] %v8429_v23  ;;  %v2394_v42 = vmax.f32 %v8429_v23, 0.0  ;;  %v2287_v44 = vadd.f32 %v8314_v48, %v2286_v57  ;;  %2661 = vrot.lane.b32.xlu0 %v2417_v36, %s7601_s23  ;;  %v2420_v21 = vpack.c.bf16 %v2396_v24, %v2395_v55  ;;  %v8440_v11 = vadd.f32 %v7576_v10, %v2295_v19  ;;  %v7579_v55 = vld [vmem:[%s7677_s22 + $0x88] sm:$0xff] }
 0x292   : > { %v2626_v0 = vsel %vm7716_vm3, %v2584_v43, 0  ;;  %v7098_v13 = vpop.f32.mrf.mxu1  ;;  %v2582_v6 = vor.u32 %v2581_v39, %v2458_v54  ;;  %v8444_v38 = vor.u32 %v2461_v4, %v2460_v7 }
 0x293   : > { %9623 = vst [vmem:[#allocation21_spill] sm:$0xff] %v8440_v11  ;;  %2711 = vrot.lane.b32.xlu1 %v2626_v0, %s7602_s24  ;;  %v2298_v27 = vadd.f32 %v7098_v13, %v8314_v48  ;;  %v2419_v14 = vpack.c.bf16 %v2394_v42, %v2393_v2  ;;  %v2479_v16 = vshrl.u32 %v2420_v21, 16  ;;  %v2482_v60 = vshll.u32 %v2420_v21, 16  ;;  %v7580_v2 = vld [vmem:[%s7677_s22 + $0xb0] sm:$0xff] }
 0x294   : > { %v2289_v30 = vpop.f32.mrf.mxu1  ;;  %v2625_v49 = vsel %vm7716_vm3, %v2582_v6, 0  ;;  %v8451_v50 = vadd.f32 %v7577_v20, %v2287_v44  ;;  %v2399_v56 = vmax.f32 %v8440_v11, 0.0  ;;  %v7582_v20 = vld [vmem:[%s7677_s22 + $0xb8] sm:$0xff] }
 0x295   : > { %v8454_v36 = vadd.f32 %v7578_v33, %v2298_v27  ;;  %v2290_v47 = vadd.f32 %v8314_v48, %v2289_v30  ;;  %2709 = vrot.lane.b32.xlu0 %v2625_v49, %s7602_s24  ;;  %v2472_v40 = vshrl.u32 %v2419_v14, 16  ;;  %v2587_v25 = vrot.slane %v2482_v60, 1 }
 0x296   : > { %9624 = vst [vmem:[#allocation22_spill] sm:$0xff] %v8451_v50  ;;  %v7101_v63 = vpop.f32.mrf.mxu1  ;;  %v2481_v51 = vrot.slane %v2479_v16, 7  ;;  %v2475_v46 = vshll.u32 %v2419_v14, 16  ;;  %v2397_v7 = vmax.f32 %v8451_v50, 0.0 }
 0x297   : > { %9625 = vst [vmem:[#allocation23_spill] sm:$0xff] %v8454_v36  ;;  %v2400_v54 = vmax.f32 %v8454_v36, 0.0  ;;  %v8461_v32 = vadd.f32 %v7579_v55, %v2290_v47  ;;  %2667 = vrot.lane.b32.xlu1 %v2420_v21, %s7601_s23  ;;  %v2311_v41 = vadd.f32 %v7101_v63, %v8314_v48  ;;  %v2474_v37 = vrot.slane %v2472_v40, 7  ;;  %v7583_v55 = vld [vmem:[%s7677_s22 + $0xa8] sm:$0xff] }
 0x298   : > { %v2302_v4 = vpop.f32.mrf.mxu1  ;;  %v2588_v24 = vor.u32 %v2587_v25, %v2479_v16  ;;  %v2585_v52 = vrot.slane %v2475_v46, 1  ;;  %v8465_v19 = vor.u32 %v2482_v60, %v2481_v51  ;;  %v7581_v16 = vld [vmem:[%s7677_s22 + $0xa0] sm:$0xff] }
 0x299   : > { %9626 = vst [vmem:[#allocation24_spill] sm:$0xff] %v8461_v32  ;;  %v2398_v57 = vmax.f32 %v8461_v32, 0.0  ;;  %v2303_v43 = vadd.f32 %v8314_v48, %v2302_v4  ;;  %2665 = vrot.lane.b32.xlu0 %v2419_v14, %s7601_s23  ;;  %v2422_v39 = vpack.c.bf16 %v2400_v54, %v2399_v56  ;;  %v8472_v42 = vadd.f32 %v7580_v2, %v2311_v41 }
 0x29a   : > { %v2628_v44 = vsel %vm7716_vm3, %v2588_v24, 0  ;;  %v7102_v21 = vpop.f32.mrf.mxu1  ;;  %v2586_v10 = vor.u32 %v2585_v52, %v2472_v40  ;;  %v8476_v0 = vor.u32 %v2475_v46, %v2474_v37 }
 0x29b   : > { %9627 = vst [vmem:[#allocation25_spill] sm:$0xff] %v8472_v42  ;;  %2715 = vrot.lane.b32.xlu1 %v2628_v44, %s7602_s24  ;;  %v2314_v13 = vadd.f32 %v7102_v21, %v8314_v48  ;;  %v2421_v6 = vpack.c.bf16 %v2398_v57, %v2397_v7  ;;  %v2493_v30 = vshrl.u32 %v2422_v39, 16  ;;  %v2496_v49 = vshll.u32 %v2422_v39, 16 }
 0x29c   : > { %v2305_v27 = vpop.f32.mrf.mxu1  ;;  %v2627_v14 = vsel %vm7716_vm3, %v2586_v10, 0  ;;  %v8483_v60 = vadd.f32 %v7581_v16, %v2303_v43  ;;  %v2403_v56 = vmax.f32 %v8472_v42, 0.0 }
 0x29d   : > { %v8486_v33 = vadd.f32 %v7582_v20, %v2314_v13  ;;  %v2306_v47 = vadd.f32 %v8314_v48, %v2305_v27  ;;  %2713 = vrot.lane.b32.xlu0 %v2627_v14, %s7602_s24  ;;  %v2486_v40 = vshrl.u32 %v2421_v6, 16  ;;  %v2591_v25 = vrot.slane %v2496_v49, 1 }
 0x29e   : > { %9628 = vst [vmem:[#allocation26_spill] sm:$0xff] %v8483_v60  ;;  %v7105_v63 = vpop.f32.mrf.mxu1  ;;  %v2495_v51 = vrot.slane %v2493_v30, 7  ;;  %v2489_v46 = vshll.u32 %v2421_v6, 16  ;;  %v2401_v43 = vmax.f32 %v8483_v60, 0.0 }
 0x29f   : > { %9629 = vst [vmem:[#allocation27_spill] sm:$0xff] %v8486_v33  ;;  %v2404_v54 = vmax.f32 %v8486_v33, 0.0  ;;  %v8493_v41 = vadd.f32 %v7583_v55, %v2306_v47  ;;  %2671 = vrot.lane.b32.xlu1 %v2422_v39, %s7601_s23  ;;  %v2327_v37 = vadd.f32 %v7105_v63, %v8314_v48  ;;  %v2488_v4 = vrot.slane %v2486_v40, 7  ;;  %v7584_v39 = vld [vmem:[%s7677_s22 + $0xd0] sm:$0xff]  ;;  %v7585_v63 = vld [vmem:[%s7677_s22 + $0xc0] sm:$0xff] }
 0x2a0   : > { %v2318_v24 = vpop.f32.mrf.mxu1  ;;  %v2592_v52 = vor.u32 %v2591_v25, %v2493_v30  ;;  %v2589_v7 = vrot.slane %v2489_v46, 1  ;;  %v8497_v57 = vor.u32 %v2496_v49, %v2495_v51  ;;  %v7586_v51 = vld [vmem:[%s7677_s22 + $0xd8] sm:$0xff] }
 0x2a1   : > { %9630 = vst [vmem:[#allocation28_spill] sm:$0xff] %v8493_v41  ;;  %v2402_v2 = vmax.f32 %v8493_v41, 0.0  ;;  %v2319_v44 = vadd.f32 %v8314_v48, %v2318_v24  ;;  %2669 = vrot.lane.b32.xlu0 %v2421_v6, %s7601_s23  ;;  %v2424_v21 = vpack.c.bf16 %v2404_v54, %v2403_v56  ;;  %v8504_v10 = vadd.f32 %v7584_v39, %v2327_v37 }
 0x2a2   : > { %v2630_v13 = vsel %vm7716_vm3, %v2592_v52, 0  ;;  %v7106_v27 = vpop.f32.mrf.mxu1  ;;  %v2590_v14 = vor.u32 %v2589_v7, %v2486_v40  ;;  %v8508_v30 = vor.u32 %v2489_v46, %v2488_v4 }
 0x2a3   : > { %9631 = vst [vmem:[#allocation29_spill] sm:$0xff] %v8504_v10  ;;  %2719 = vrot.lane.b32.xlu1 %v2630_v13, %s7602_s24  ;;  %v2330_v49 = vadd.f32 %v7106_v27, %v8314_v48  ;;  %v2423_v16 = vpack.c.bf16 %v2402_v2, %v2401_v43  ;;  %v2507_v47 = vshrl.u32 %v2424_v21, 16  ;;  %v2510_v56 = vshll.u32 %v2424_v21, 16  ;;  %v7587_v43 = vld [vmem:[%s7677_s22 + $0xc8] sm:$0xff] }
 0x2a4   : > { %v2321_v20 = vpop.f32.mrf.mxu1  ;;  %v2629_v6 = vsel %vm7716_vm3, %v2590_v14, 0  ;;  %v8515_v25 = vadd.f32 %v7585_v63, %v2319_v44  ;;  %v2407_v55 = vmax.f32 %v8504_v10, 0.0 }
 0x2a5   : > { %v8518_v54 = vadd.f32 %v7586_v51, %v2330_v49  ;;  %v2322_v40 = vadd.f32 %v8314_v48, %v2321_v20  ;;  %2717 = vrot.lane.b32.xlu0 %v2629_v6, %s7602_s24  ;;  %v2500_v46 = vshrl.u32 %v2423_v16, 16  ;;  %v2595_v4 = vrot.slane %v2510_v56, 1 }
 0x2a6   : > { %9632 = vst [vmem:[#allocation30_spill] sm:$0xff] %v8515_v25  ;;  %v7109_v37 = vpop.f32.mrf.mxu1  ;;  %v2509_v24 = vrot.slane %v2507_v47, 7  ;;  %v2503_v52 = vshll.u32 %v2423_v16, 16  ;;  %v2405_v20 = vmax.f32 %v8515_v25, 0.0 }
 0x2a7   : > { %9633 = vst [vmem:[#allocation31_spill] sm:$0xff] %v8518_v54  ;;  %v2408_v7 = vmax.f32 %v8518_v54, 0.0  ;;  %v8525_v2 = vadd.f32 %v7587_v43, %v2322_v40  ;;  %2675 = vrot.lane.b32.xlu1 %v2424_v21, %s7601_s23  ;;  %v2343_v44 = vadd.f32 %v7109_v37, %v8314_v48  ;;  %v2502_v39 = vrot.slane %v2500_v46, 7 }
 0x2a8   : > { %v2334_v13 = vpop.f32.mrf.mxu1  ;;  %v2596_v27 = vor.u32 %v2595_v4, %v2507_v47  ;;  %v2593_v14 = vrot.slane %v2503_v52, 1  ;;  %v8529_v49 = vor.u32 %v2510_v56, %v2509_v24  ;;  %v7588_v56 = vld [vmem:[%s7677_s22 + $0xf0] sm:$0xff] }
 0x2a9   : > { %9634 = vst [vmem:[#allocation32_spill] sm:$0xff] %v8525_v2  ;;  %v2406_v6 = vmax.f32 %v8525_v2, 0.0  ;;  %v2335_v63 = vadd.f32 %v8314_v48, %v2334_v13  ;;  %2673 = vrot.lane.b32.xlu0 %v2423_v16, %s7601_s23  ;;  %v2426_v51 = vpack.c.bf16 %v2408_v7, %v2407_v55  ;;  %v8537_v47 = vor.u32 %v2503_v52, %v2502_v39 }
 0x2aa   : > { %v2632_v21 = vsel %vm7716_vm3, %v2596_v27, 0  ;;  %v7110_v40 = vpop.f32.mrf.mxu1  ;;  %v2594_v37 = vor.u32 %v2593_v14, %v2500_v46  ;;  %v8540_v4 = vadd.f32 %v7588_v56, %v2343_v44  ;;  %v7589_v27 = vld [vmem:[%s7677_s22 + $0xe0] sm:$0xff]  ;;  %v7590_v46 = vld [vmem:[%s7677_s22 + $0xf8] sm:$0xff] }
 0x2ab   : > { %2723 = vrot.lane.b32.xlu1 %v2632_v21, %s7602_s24  ;;  %v2346_v24 = vadd.f32 %v7110_v40, %v8314_v48  ;;  %v2425_v43 = vpack.c.bf16 %v2406_v6, %v2405_v20  ;;  %v2521_v55 = vshrl.u32 %v2426_v51, 16  ;;  %v2524_v7 = vshll.u32 %v2426_v51, 16 }
 0x2ac   : > { %9635 = vst [vmem:[#allocation33_spill] sm:$0xff] %v8540_v4  ;;  %v2337_v13 = vpop.f32.mrf.mxu1  ;;  %v2631_v16 = vsel %vm7716_vm3, %v2594_v37, 0  ;;  %v8547_v2 = vadd.f32 %v7589_v27, %v2335_v63  ;;  %v2411_v21 = vmax.f32 %v8540_v4, 0.0  ;;  %v7591_v37 = vld [vmem:[%s7677_s22 + $0xe8] sm:$0xff] }
 0x2ad   : > { %v8550_v52 = vadd.f32 %v7590_v46, %v2346_v24  ;;  %v2338_v44 = vadd.f32 %v8314_v48, %v2337_v13  ;;  %2721 = vrot.lane.b32.xlu0 %v2631_v16, %s7602_s24  ;;  %v2514_v39 = vshrl.u32 %v2425_v43, 16  ;;  %v2599_v14 = vrot.slane %v2524_v7, 1 }
 0x2ae   : > { %9636 = vst [vmem:[#allocation34_spill] sm:$0xff] %v8547_v2  ;;  %v2523_v20 = vrot.slane %v2521_v55, 7  ;;  %v2517_v6 = vshll.u32 %v2425_v43, 16  ;;  %v2409_v48 = vmax.f32 %v8547_v2, 0.0 }
 0x2af   : > { %9637 = vst [vmem:[#allocation35_spill] sm:$0xff] %v8550_v52  ;;  %v2412_v40 = vmax.f32 %v8550_v52, 0.0  ;;  %v8557_v56 = vadd.f32 %v7591_v37, %v2338_v44  ;;  %2679 = vrot.lane.b32.xlu1 %v2426_v51, %s7601_s23  ;;  %v2516_v63 = vrot.slane %v2514_v39, 7  ;;  %v2600_v24 = vor.u32 %v2599_v14, %v2521_v55 }
 0x2b0   : > { %v2597_v27 = vrot.slane %v2517_v6, 1  ;;  %v8560_v46 = vor.u32 %v2524_v7, %v2523_v20 }
 0x2b1   : > { %9638 = vst [vmem:[#allocation36_spill] sm:$0xff] %v8557_v56  ;;  %v2410_v13 = vmax.f32 %v8557_v56, 0.0  ;;  %2677 = vrot.lane.b32.xlu0 %v2425_v43, %s7601_s23  ;;  %v2428_v16 = vpack.c.bf16 %v2412_v40, %v2411_v21  ;;  %v8565_v4 = vor.u32 %v2517_v6, %v2516_v63  ;;  %v2634_v44 = vsel %vm7716_vm3, %v2600_v24, 0 }
 0x2b2   : > { %v2598_v37 = vor.u32 %v2597_v27, %v2514_v39 }
 0x2b3   : > { %2727 = vrot.lane.b32.xlu1 %v2634_v44, %s7602_s24  ;;  %v2427_v51 = vpack.c.bf16 %v2410_v13, %v2409_v48  ;;  %v2535_v55 = vshrl.u32 %v2428_v16, 16  ;;  %v2538_v14 = vshll.u32 %v2428_v16, 16 }
 0x2b4   : > { %v2633_v7 = vsel %vm7716_vm3, %v2598_v37, 0  ;;  %v2558_v37 = vsel %vm7963_vm8, 0, %v8358_v28 }
 0x2b5   : > { %2725 = vrot.lane.b32.xlu0 %v2633_v7, %s7602_s24  ;;  %v2603_v20 = vrot.slane %v2538_v14, 1  ;;  %v2537_v56 = vrot.slane %v2535_v55, 7  ;;  %v2528_v43 = vshrl.u32 %v2427_v51, 16  ;;  %v2531_v21 = vshll.u32 %v2427_v51, 16 }
 0x2b7   : > { %2683 = vrot.lane.b32.xlu1 %v2428_v16, %s7601_s23  ;;  %v2604_v6 = vor.u32 %v2603_v20, %v2535_v55  ;;  %v2530_v40 = vrot.slane %v2528_v43, 7  ;;  %v2601_v63 = vrot.slane %v2531_v21, 1  ;;  %v8574_v39 = vor.u32 %v2538_v14, %v2537_v56 }
 0x2b8   : > { %v2557_v14 = vsel %vm7963_vm8, 0, %v8370_v22 }
 0x2b9   : > { %2681 = vrot.lane.b32.xlu0 %v2427_v51, %s7601_s23  ;;  %v2636_v24 = vsel %vm7716_vm3, %v2604_v6, 0  ;;  %v2602_v27 = vor.u32 %v2601_v63, %v2528_v43  ;;  %v8579_v48 = vor.u32 %v2531_v21, %v2530_v40 }
 0x2bb   : > { %2731 = vrot.lane.b32.xlu1 %v2636_v24, %s7602_s24  ;;  %v2635_v13 = vsel %vm7716_vm3, %v2602_v27, 0  ;;  %v2560_v27 = vsel %vm7963_vm8, 0, %v8399_v26 }
 0x2bd   : > { %2729 = vrot.lane.b32.xlu0 %v2635_v13, %s7602_s24 }
 0x2ed   : > { %v2656_v16 = vpop.permute.xlu1 %2655 }
 0x2ee   : > { %v2738_v51 = vsel %vm784_vm9, %v2558_v37, %v2656_v16 }
 0x2ef   : > { %v2654_v44 = vpop.permute.xlu0 %2653 }
 0x2f0   : > { %v2735_v20 = vsel %vm784_vm9, %v2557_v14, %v2654_v44  ;;  %v2559_v44 = vsel %vm7963_vm8, 0, %v8412_v17 }
 0x2f5   : > { %v2704_v55 = vpop.permute.xlu1 %2703 }
 0x2f6   : > { %v2784_v7 = vsel %vm833_vm10, %v2738_v51, %v2704_v55 }
 0x2f7   : > { %v6428_v43 = vcombine.low %v2784_v7, %v2784_v7  ;;  %v6429_v21 = vcombine.high %v2784_v7, %v2784_v7  ;;  %v2702_v6 = vpop.permute.xlu0 %2701 }
 0x2f8   : > { %v2782_v40 = vsel %vm833_vm10, %v2735_v20, %v2702_v6 }
 0x2f9   : > { %2927 = vst.msk [vmem:[#allocation2 + $0x10] sm:$0xf] %vm388_vm0, %v6428_v43  ;;  %2928 = vst.msk [vmem:[#allocation2 + $0x14] sm:$0xf] %vm388_vm0, %v6429_v21  ;;  %v6426_v28 = vcombine.low %v2782_v40, %v2782_v40  ;;  %v6427_v63 = vcombine.high %v2782_v40, %v2782_v40  ;;  %v2660_v24 = vpop.permute.xlu1 %2659 }
 0x2fa   : > { %v2744_v13 = vsel %vm784_vm9, %v2560_v27, %v2660_v24  ;;  %v2562_v24 = vsel %vm7963_vm8, 0, %v8433_v1 }
 0x2fb   : > { %2925 = vst.msk [vmem:[#allocation2 + $0x8] sm:$0xf] %vm388_vm0, %v6426_v28  ;;  %2926 = vst.msk [vmem:[#allocation2 + $0xc] sm:$0xf] %vm388_vm0, %v6427_v63  ;;  %v2658_v22 = vpop.permute.xlu0 %2657  ;;  %v3789_v63 = vsel %vm1214_vm4, %v8389_v5, 0 }
 0x2fc   : > { %v2741_v51 = vsel %vm784_vm9, %v2559_v44, %v2658_v22 }
 0x2fd   : > { %v2708_v16 = vpop.permute.xlu1 %2707 }
 0x2fe   : > { %v2788_v37 = vsel %vm833_vm10, %v2744_v13, %v2708_v16  ;;  %v2561_v16 = vsel %vm7963_vm8, 0, %v8444_v38 }
 0x2ff   : > { %v6432_v55 = vcombine.low %v2788_v37, %v2788_v37  ;;  %v6433_v14 = vcombine.high %v2788_v37, %v2788_v37  ;;  %v2706_v7 = vpop.permute.xlu0 %2705 }
 0x300   : > { %v2786_v20 = vsel %vm833_vm10, %v2741_v51, %v2706_v7  ;;  %v7463_v6 = vld [vmem:[#allocation2 + $0x10] sm:$0xff]  }
 0x301   : > { %2931 = vst.msk [vmem:[#allocation2 + $0x20] sm:$0xf] %vm388_vm0, %v6432_v55  ;;  %2932 = vst.msk [vmem:[#allocation2 + $0x24] sm:$0xf] %vm388_vm0, %v6433_v14  ;;  %v6430_v26 = vcombine.low %v2786_v20, %v2786_v20  ;;  %v6431_v43 = vcombine.high %v2786_v20, %v2786_v20  ;;  %v2664_v21 = vpop.permute.xlu1 %2663  ;;  %v7464_v22 = vld [vmem:[#allocation2 + $0x10] sm:$0xff]  }
 0x302   : > { %v7461_v40 = vld [vmem:[#allocation2 + $0x8] sm:$0xff]   ;;  %v2750_v27 = vsel %vm784_vm9, %v2562_v24, %v2664_v21 }
 0x303   : > { %2929 = vst.msk [vmem:[#allocation2 + $0x18] sm:$0xf] %vm388_vm0, %v6430_v26  ;;  %2930 = vst.msk [vmem:[#allocation2 + $0x1c] sm:$0xf] %vm388_vm0, %v6431_v43  ;;  %v2662_v17 = vpop.permute.xlu0 %2661  ;;  %v7462_v28 = vld [vmem:[#allocation2 + $0x8] sm:$0xff]   ;;  %7113 = vmatprep.mubr.msk.bf16.mxu0 %vm1165_vm5, %v7461_v40 }
 0x304   : > { %7148 = vmatmul.mubr.msk.bf16.vlgmr.msra.gmra.mxu1 %vm1165_vm5, %v7462_v28  ;;  %7114 = vmatmul.mubr.msk.bf16.vlgmr.msra.gmra.mxu0 %vm1165_vm5, %v7463_v6  ;;  %v2747_v1 = vsel %vm784_vm9, %v2561_v16, %v2662_v17  ;;  %v2564_v6 = vsel %vm7963_vm8, 0, %v8465_v19 }
 0x305   : > { %v2712_v13 = vpop.permute.xlu1 %2711  ;;  %7151 = vmatprep.mubr.msk.bf16.mxu1 %vm1165_vm5, %v7464_v22  ;;  %7180 = vmatpush3.bf16.msra.mxu0 %v3789_v63  ;;  %v2563_v63 = vsel %vm7963_vm8, 0, %v8476_v0 }
 0x306   : > { %v2792_v5 = vsel %vm833_vm10, %v2750_v27, %v2712_v13 }
 0x307   : > { %v6436_v44 = vcombine.low %v2792_v5, %v2792_v5  ;;  %v6437_v37 = vcombine.high %v2792_v5, %v2792_v5  ;;  %v2710_v51 = vpop.permute.xlu0 %2709 }
 0x308   : > { %v2790_v55 = vsel %vm833_vm10, %v2747_v1, %v2710_v51  ;;  %v7467_v38 = vld [vmem:[#allocation2 + $0x20] sm:$0xff]  }
 0x309   : > { %2935 = vst.msk [vmem:[#allocation2 + $0x30] sm:$0xf] %vm388_vm0, %v6436_v44  ;;  %2936 = vst.msk [vmem:[#allocation2 + $0x34] sm:$0xf] %vm388_vm0, %v6437_v37  ;;  %v6434_v14 = vcombine.low %v2790_v55, %v2790_v55  ;;  %v6435_v7 = vcombine.high %v2790_v55, %v2790_v55  ;;  %v2668_v20 = vpop.permute.xlu1 %2667  ;;  %v7468_v40 = vld [vmem:[#allocation2 + $0x20] sm:$0xff]  }
 0x30a   : > { %v7465_v26 = vld [vmem:[#allocation2 + $0x18] sm:$0xff]   ;;  %v2756_v17 = vsel %vm784_vm9, %v2564_v6, %v2668_v20 }
 0x30b   : > { %2933 = vst.msk [vmem:[#allocation2 + $0x28] sm:$0xf] %vm388_vm0, %v6434_v14  ;;  %2934 = vst.msk [vmem:[#allocation2 + $0x2c] sm:$0xf] %vm388_vm0, %v6435_v7  ;;  %v2666_v43 = vpop.permute.xlu0 %2665  ;;  %v7466_v21 = vld [vmem:[#allocation2 + $0x18] sm:$0xff]   ;;  %7117 = vmatprep.mubr.msk.bf16.mxu0 %vm1165_vm5, %v7465_v26  ;;  %v2566_v14 = vsel %vm7963_vm8, 0, %v8497_v57 }
 0x30c   : > { %7152 = vmatmul.mubr.msk.bf16.gmra.mxu1 %vm1165_vm5, %v7466_v21  ;;  %7118 = vmatmul.mubr.msk.bf16.gmra.mxu0 %vm1165_vm5, %v7467_v38  ;;  %v2753_v19 = vsel %vm784_vm9, %v2563_v63, %v2666_v43  ;;  %v2565_v26 = vsel %vm7963_vm8, 0, %v8508_v30 }
 0x30d   : > { %v2716_v28 = vpop.permute.xlu1 %2715  ;;  %7155 = vmatprep.mubr.msk.bf16.mxu1 %vm1165_vm5, %v7468_v40 }
 0x30e   : > { %v2796_v24 = vsel %vm833_vm10, %v2756_v17, %v2716_v28 }
 0x30f   : > { %v6440_v22 = vcombine.low %v2796_v24, %v2796_v24  ;;  %v6441_v27 = vcombine.high %v2796_v24, %v2796_v24  ;;  %v2714_v13 = vpop.permute.xlu0 %2713 }
 0x310   : > { %v2794_v16 = vsel %vm833_vm10, %v2753_v19, %v2714_v13  ;;  %v7471_v37 = vld [vmem:[#allocation2 + $0x30] sm:$0xff]   ;;  %v2568_v13 = vsel %vm7963_vm8, 0, %v8529_v49 }
 0x311   : > { %2939 = vst.msk [vmem:[#allocation2 + $0x40] sm:$0xf] %vm388_vm0, %v6440_v22  ;;  %2940 = vst.msk [vmem:[#allocation2 + $0x44] sm:$0xf] %vm388_vm0, %v6441_v27  ;;  %v6438_v5 = vcombine.low %v2794_v16, %v2794_v16  ;;  %v6439_v1 = vcombine.high %v2794_v16, %v2794_v16  ;;  %v2672_v44 = vpop.permute.xlu1 %2671  ;;  %v7472_v7 = vld [vmem:[#allocation2 + $0x30] sm:$0xff]  }
 0x312   : > { %v7469_v0 = vld [vmem:[#allocation2 + $0x28] sm:$0xff]   ;;  %v2762_v20 = vsel %vm784_vm9, %v2566_v14, %v2672_v44  ;;  %v2567_v44 = vsel %vm7963_vm8, 0, %v8537_v47 }
 0x313   : > { %2937 = vst.msk [vmem:[#allocation2 + $0x38] sm:$0xf] %vm388_vm0, %v6438_v5  ;;  %2938 = vst.msk [vmem:[#allocation2 + $0x3c] sm:$0xf] %vm388_vm0, %v6439_v1  ;;  %v2670_v51 = vpop.permute.xlu0 %2669  ;;  %v7470_v55 = vld [vmem:[#allocation2 + $0x28] sm:$0xff]   ;;  %7121 = vmatprep.mubr.msk.bf16.mxu0 %vm1165_vm5, %v7469_v0 }
 0x314   : > { %7156 = vmatmul.mubr.msk.bf16.gmra.mxu1 %vm1165_vm5, %v7470_v55  ;;  %7122 = vmatmul.mubr.msk.bf16.gmra.mxu0 %vm1165_vm5, %v7471_v37  ;;  %v2759_v57 = vsel %vm784_vm9, %v2565_v26, %v2670_v51 }
 0x315   : > { %v2720_v38 = vpop.permute.xlu1 %2719  ;;  %7159 = vmatprep.mubr.msk.bf16.mxu1 %vm1165_vm5, %v7472_v7 }
 0x316   : > { %v2800_v43 = vsel %vm833_vm10, %v2762_v20, %v2720_v38 }
 0x317   : > { %v6444_v21 = vcombine.low %v2800_v43, %v2800_v43  ;;  %v6445_v6 = vcombine.high %v2800_v43, %v2800_v43  ;;  %v2718_v40 = vpop.permute.xlu0 %2717 }
 0x318   : > { %v2798_v17 = vsel %vm833_vm10, %v2759_v57, %v2718_v40  ;;  %v7475_v19 = vld [vmem:[#allocation2 + $0x40] sm:$0xff]  }
 0x319   : > { %2943 = vst.msk [vmem:[#allocation2 + $0x50] sm:$0xf] %vm388_vm0, %v6444_v21  ;;  %2944 = vst.msk [vmem:[#allocation2 + $0x54] sm:$0xf] %vm388_vm0, %v6445_v6  ;;  %v6442_v28 = vcombine.low %v2798_v17, %v2798_v17  ;;  %v6443_v63 = vcombine.high %v2798_v17, %v2798_v17  ;;  %v2676_v24 = vpop.permute.xlu1 %2675  ;;  %v7476_v16 = vld [vmem:[#allocation2 + $0x40] sm:$0xff]   ;;  %v2570_v21 = vsel %vm7963_vm8, 0, %v8560_v46 }
 0x31a   : > { %v7473_v30 = vld [vmem:[#allocation2 + $0x38] sm:$0xff]   ;;  %v2768_v5 = vsel %vm784_vm9, %v2568_v13, %v2676_v24 }
 0x31b   : > { %2941 = vst.msk [vmem:[#allocation2 + $0x48] sm:$0xf] %vm388_vm0, %v6442_v28  ;;  %2942 = vst.msk [vmem:[#allocation2 + $0x4c] sm:$0xf] %vm388_vm0, %v6443_v63  ;;  %v2674_v22 = vpop.permute.xlu0 %2673  ;;  %v7474_v27 = vld [vmem:[#allocation2 + $0x38] sm:$0xff]   ;;  %7125 = vmatprep.mubr.msk.bf16.mxu0 %vm1165_vm5, %v7473_v30  ;;  %v2569_v28 = vsel %vm7963_vm8, 0, %v8565_v4 }
 0x31c   : > { %7160 = vmatmul.mubr.msk.bf16.gmra.mxu1 %vm1165_vm5, %v7474_v27  ;;  %7126 = vmatmul.mubr.msk.bf16.gmra.mxu0 %vm1165_vm5, %v7475_v19  ;;  %v2765_v49 = vsel %vm784_vm9, %v2567_v44, %v2674_v22 }
 0x31d   : > { %v2724_v1 = vpop.permute.xlu1 %2723  ;;  %7163 = vmatprep.mubr.msk.bf16.mxu1 %vm1165_vm5, %v7476_v16 }
 0x31e   : > { %v2804_v37 = vsel %vm833_vm10, %v2768_v5, %v2724_v1 }
 0x31f   : > { %v6448_v0 = vcombine.low %v2804_v37, %v2804_v37  ;;  %v6449_v51 = vcombine.high %v2804_v37, %v2804_v37  ;;  %v2722_v55 = vpop.permute.xlu0 %2721  ;;  %v2572_v37 = vsel %vm7963_vm8, 0, %v8574_v39 }
 0x320   : > { %v2802_v14 = vsel %vm833_vm10, %v2765_v49, %v2722_v55  ;;  %v7479_v26 = vld [vmem:[#allocation2 + $0x50] sm:$0xff]   ;;  %v2571_v55 = vsel %vm7963_vm8, 0, %v8579_v48 }
 0x321   : > { %2947 = vst.msk [vmem:[#allocation2 + $0x60] sm:$0xf] %vm388_vm0, %v6448_v0  ;;  %2948 = vst.msk [vmem:[#allocation2 + $0x64] sm:$0xf] %vm388_vm0, %v6449_v51  ;;  %v6446_v7 = vcombine.low %v2802_v14, %v2802_v14  ;;  %v6447_v20 = vcombine.high %v2802_v14, %v2802_v14  ;;  %v2680_v38 = vpop.permute.xlu1 %2679  ;;  %v7480_v6 = vld [vmem:[#allocation2 + $0x50] sm:$0xff]  }
 0x322   : > { %v7477_v47 = vld [vmem:[#allocation2 + $0x48] sm:$0xff]   ;;  %v2774_v40 = vsel %vm784_vm9, %v2570_v21, %v2680_v38 }
 0x323   : > { %2945 = vst.msk [vmem:[#allocation2 + $0x58] sm:$0xf] %vm388_vm0, %v6446_v7  ;;  %2946 = vst.msk [vmem:[#allocation2 + $0x5c] sm:$0xf] %vm388_vm0, %v6447_v20  ;;  %v2678_v43 = vpop.permute.xlu0 %2677  ;;  %v7478_v57 = vld [vmem:[#allocation2 + $0x48] sm:$0xff]   ;;  %7129 = vmatprep.mubr.msk.bf16.mxu0 %vm1165_vm5, %v7477_v47 }
 0x324   : > { %7164 = vmatmul.mubr.msk.bf16.gmra.mxu1 %vm1165_vm5, %v7478_v57  ;;  %7130 = vmatmul.mubr.msk.bf16.gmra.mxu0 %vm1165_vm5, %v7479_v26  ;;  %v2771_v46 = vsel %vm784_vm9, %v2569_v28, %v2678_v43 }
 0x325   : > { %v2728_v17 = vpop.permute.xlu1 %2727  ;;  %7167 = vmatprep.mubr.msk.bf16.mxu1 %vm1165_vm5, %v7480_v6 }
 0x326   : > { %v2808_v63 = vsel %vm833_vm10, %v2774_v40, %v2728_v17 }
 0x327   : > { %v6452_v24 = vcombine.low %v2808_v63, %v2808_v63  ;;  %v6453_v19 = vcombine.high %v2808_v63, %v2808_v63  ;;  %v2726_v30 = vpop.permute.xlu0 %2725  ;;  %v7492_v63 = vld [vmem:[#allocation2 + $0x10] sm:$0xff]  }
 0x328   : > { %v2806_v22 = vsel %vm833_vm10, %v2771_v46, %v2726_v30  ;;  %v7483_v5 = vld [vmem:[#allocation2 + $0x60] sm:$0xff]   ;;  %v7493_v46 = vld [vmem:[#allocation2 + $0x18] sm:$0xff]   ;;  %v7496_v30 = vld [vmem:[#allocation2 + $0x30] sm:$0xff]  }
 0x329   : > { %2951 = vst.msk [vmem:[#allocation2 + $0x70] sm:$0xf] %vm388_vm0, %v6452_v24  ;;  %2952 = vst.msk [vmem:[#allocation2 + $0x74] sm:$0xf] %vm388_vm0, %v6453_v19  ;;  %v6450_v27 = vcombine.low %v2806_v22, %v2806_v22  ;;  %v6451_v13 = vcombine.high %v2806_v22, %v2806_v22  ;;  %v2684_v16 = vpop.permute.xlu1 %2683  ;;  %v7484_v49 = vld [vmem:[#allocation2 + $0x60] sm:$0xff]   ;;  %v7495_v19 = vld [vmem:[#allocation2 + $0x28] sm:$0xff]  }
 0x32a   : > { %v7481_v4 = vld [vmem:[#allocation2 + $0x58] sm:$0xff]   ;;  %v2780_v0 = vsel %vm784_vm9, %v2572_v37, %v2684_v16  ;;  %v7494_v24 = vld [vmem:[#allocation2 + $0x20] sm:$0xff]  }
 0x32b   : > { %2949 = vst.msk [vmem:[#allocation2 + $0x68] sm:$0xf] %vm388_vm0, %v6450_v27  ;;  %2950 = vst.msk [vmem:[#allocation2 + $0x6c] sm:$0xf] %vm388_vm0, %v6451_v13  ;;  %v2682_v1 = vpop.permute.xlu0 %2681  ;;  %v7482_v44 = vld [vmem:[#allocation2 + $0x58] sm:$0xff]   ;;  %7133 = vmatprep.mubr.msk.bf16.mxu0 %vm1165_vm5, %v7481_v4  ;;  %v7498_v27 = vld [vmem:[#allocation2 + $0x40] sm:$0xff]  }
 0x32c   : > { %7168 = vmatmul.mubr.msk.bf16.gmra.mxu1 %vm1165_vm5, %v7482_v44  ;;  %7134 = vmatmul.mubr.msk.bf16.gmra.mxu0 %vm1165_vm5, %v7483_v5  ;;  %v2777_v39 = vsel %vm784_vm9, %v2571_v55, %v2682_v1  ;;  %v7497_v22 = vld [vmem:[#allocation2 + $0x38] sm:$0xff]   ;;  %v4071_v13 = vld [vmem:[%s9557_s7] sm:$0x3]  ;;  %v7499_v5 = vld [vmem:[#allocation2 + $0x48] sm:$0xff]  }
 0x32d   : > { %v2732_v51 = vpop.permute.xlu1 %2731  ;;  %7171 = vmatprep.mubr.msk.bf16.mxu1 %vm1165_vm5, %v7484_v49  ;;  %7390 = vmatprep.subr.msk.bf16.mxu1 %vm2184_vm11, %v4071_v13  ;;  %v4128_v16 = vsel %vm2184_vm11, %v4071_v13, 0  ;;  %v7500_v4 = vld [vmem:[#allocation2 + $0x50] sm:$0xff]   ;;  %v7501_v1 = vld [vmem:[#allocation2 + $0x58] sm:$0xff]   ;;  %v7502_v44 = vld [vmem:[#allocation2 + $0x60] sm:$0xff]  }
 0x32e   : > { %v2812_v14 = vsel %vm833_vm10, %v2780_v0, %v2732_v51  ;;  %7214 = vmatpush3.bf16.msra.mxu1 %v4128_v16  ;;  %v7507_v55 = vld [vmem:[#allocation2 + $0x88] sm:$0xff]  }
 0x32f   : > { %v6456_v7 = vcombine.low %v2812_v14, %v2812_v14  ;;  %v6457_v20 = vcombine.high %v2812_v14, %v2812_v14  ;;  %v2730_v38 = vpop.permute.xlu0 %2729 }
 0x330   : > { %v2810_v26 = vsel %vm833_vm10, %v2777_v39, %v2730_v38  ;;  %v7487_v57 = vld [vmem:[#allocation2 + $0x70] sm:$0xff]  }
 0x331   : > { %2955 = vst.msk [vmem:[#allocation2 + $0x80] sm:$0xf] %vm388_vm0, %v6456_v7  ;;  %2956 = vst.msk [vmem:[#allocation2 + $0x84] sm:$0xf] %vm388_vm0, %v6457_v20  ;;  %v6454_v47 = vcombine.low %v2810_v26, %v2810_v26  ;;  %v6455_v43 = vcombine.high %v2810_v26, %v2810_v26  ;;  %v7488_v6 = vld [vmem:[#allocation2 + $0x70] sm:$0xff]  }
 0x332   : > { %v7485_v21 = vld [vmem:[#allocation2 + $0x68] sm:$0xff]   ;;  %v7504_v49 = vld [vmem:[#allocation2 + $0x70] sm:$0xff]  }
 0x333   : > { %2953 = vst.msk [vmem:[#allocation2 + $0x78] sm:$0xf] %vm388_vm0, %v6454_v47  ;;  %2954 = vst.msk [vmem:[#allocation2 + $0x7c] sm:$0xf] %vm388_vm0, %v6455_v43  ;;  %v7486_v48 = vld [vmem:[#allocation2 + $0x68] sm:$0xff]   ;;  %7137 = vmatprep.mubr.msk.bf16.mxu0 %vm1165_vm5, %v7485_v21 }
 0x334   : > { %7172 = vmatmul.mubr.msk.bf16.gmra.mxu1 %vm1165_vm5, %v7486_v48  ;;  %7138 = vmatmul.mubr.msk.bf16.gmra.mxu0 %vm1165_vm5, %v7487_v57  ;;  %v7503_v37 = vld [vmem:[#allocation2 + $0x68] sm:$0xff]  }
 0x335   : > { %7175 = vmatprep.mubr.msk.bf16.mxu1 %vm1165_vm5, %v7488_v6 }
 0x338   : > { %v7491_v40 = vld [vmem:[#allocation2 + $0x80] sm:$0xff]  }
 0x339   : > { %v7506_v51 = vld [vmem:[#allocation2 + $0x80] sm:$0xff]  }
 0x33a   : > { %v7489_v17 = vld [vmem:[#allocation2 + $0x78] sm:$0xff]  }
 0x33b   : > { %v7490_v28 = vld [vmem:[#allocation2 + $0x78] sm:$0xff]   ;;  %7141 = vmatprep.mubr.msk.bf16.mxu0 %vm1165_vm5, %v7489_v17 }
 0x33c   : > { %7176 = vmatmul.mubr.msk.bf16.gmra.mxu1 %vm1165_vm5, %v7490_v28  ;;  %7142 = vmatmul.mubr.msk.bf16.gmra.mxu0 %vm1165_vm5, %v7491_v40  ;;  %v7505_v0 = vld [vmem:[#allocation2 + $0x78] sm:$0xff]  }
 0x33d   : > { %7181 = vmatprep.mubr.msk.bf16.mxu0 %vm1165_vm5, %v7492_v63 }
 0x344   : > { %7182 = vmatmul.mubr.msk.bf16.vlgmr.msra.gmra.mxu0 %vm1165_vm5, %v7493_v46 }
 0x345   : > { %7185 = vmatprep.mubr.msk.bf16.mxu0 %vm1165_vm5, %v7494_v24 }
 0x34c   : > { %7186 = vmatmul.mubr.msk.bf16.gmra.mxu0 %vm1165_vm5, %v7495_v19 }
 0x34d   : > { %7189 = vmatprep.mubr.msk.bf16.mxu0 %vm1165_vm5, %v7496_v30 }
 0x354   : > { %7190 = vmatmul.mubr.msk.bf16.gmra.mxu0 %vm1165_vm5, %v7497_v22 }
 0x355   : > { %7193 = vmatprep.mubr.msk.bf16.mxu0 %vm1165_vm5, %v7498_v27 }
 0x35c   : > { %7194 = vmatmul.mubr.msk.bf16.gmra.mxu0 %vm1165_vm5, %v7499_v5 }
 0x35d   : > { %7197 = vmatprep.mubr.msk.bf16.mxu0 %vm1165_vm5, %v7500_v4 }
 0x364   : > { %7198 = vmatmul.mubr.msk.bf16.gmra.mxu0 %vm1165_vm5, %v7501_v1 }
 0x365   : > { %7201 = vmatprep.mubr.msk.bf16.mxu0 %vm1165_vm5, %v7502_v44 }
 0x36c   : > { %7202 = vmatmul.mubr.msk.bf16.gmra.mxu0 %vm1165_vm5, %v7503_v37 }
 0x36d   : > { %7205 = vmatprep.mubr.msk.bf16.mxu0 %vm1165_vm5, %v7504_v49 }
 0x374   : > { %7206 = vmatmul.mubr.msk.bf16.gmra.mxu0 %vm1165_vm5, %v7505_v0 }
 0x375   : > { %7209 = vmatprep.mubr.msk.bf16.mxu0 %vm1165_vm5, %v7506_v51 }
 0x37c   : > { %7210 = vmatmul.mubr.msk.bf16.gmra.mxu0 %vm1165_vm5, %v7507_v55 }
 0x3c4   : > { %v7149_v14 = vpop.f32.mrf.mxu1  ;;  %v7115_v39 = vpop.f32.mrf.mxu0 }
 0x3c5   : > { %v3502_v3 = vadd.f32 %v7149_v14, %v7115_v39 }
 0x3c6   : > { %v3493_v7 = vpop.f32.mrf.mxu1  ;;  %v3196_v20 = vpop.f32.mrf.mxu0 }
 0x3c7   : > { %v3494_v18 = vadd.f32 %v3493_v7, %v3196_v20 }
 0x3c8   : > { %v7116_v38 = vpop.f32.mrf.mxu0  ;;  %v7150_v26 = vpop.f32.mrf.mxu1 }
 0x3c9   : > { %v3505_v12 = vadd.f32 %v7150_v26, %v7116_v38 }
 0x3ca   : > { %v3199_v47 = vpop.f32.mrf.mxu0  ;;  %v3496_v57 = vpop.f32.mrf.mxu1 }
 0x3cb   : > { %v3497_v58 = vadd.f32 %v3496_v57, %v3199_v47 }
 0x3cc   : > { %v7119_v43 = vpop.f32.mrf.mxu0  ;;  %v7153_v6 = vpop.f32.mrf.mxu1 }
 0x3cd   : > { %v3518_v39 = vadd.f32 %v7153_v6, %v7119_v43 }
 0x3ce   : > { %v3212_v21 = vpop.f32.mrf.mxu0  ;;  %v3509_v28 = vpop.f32.mrf.mxu1 }
 0x3cf   : > { %v3510_v20 = vadd.f32 %v3509_v28, %v3212_v21 }
 0x3d0   : > { %v8751_v48 = vpop.f32.mrf.mxu0  ;;  %v7154_v24 = vpop.f32.mrf.mxu1 }
 0x3d1   : > { %v3521_v38 = vadd.f32 %v7154_v24, %v8751_v48 }
 0x3d2   : > { %v8753_v40 = vpop.f32.mrf.mxu0  ;;  %v3512_v22 = vpop.f32.mrf.mxu1 }
 0x3d4   : > { %v8755_v17 = vpop.f32.mrf.mxu0  ;;  %v8769_v16 = vpop.f32.mrf.mxu1 }
 0x3d6   : > { %v8757_v63 = vpop.f32.mrf.mxu0  ;;  %v8775_v1 = vpop.f32.mrf.mxu1 }
 0x3d8   : > { %v8759_v46 = vpop.f32.mrf.mxu0  ;;  %v8781_v49 = vpop.f32.mrf.mxu1 }
 0x3da   : > { %v8761_v19 = vpop.f32.mrf.mxu0  ;;  %v8787_v55 = vpop.f32.mrf.mxu1 }
 0x3dc   : > { %v8763_v30 = vpop.f32.mrf.mxu0  ;;  %v8793_v2 = vpop.f32.mrf.mxu1 }
 0x3de   : > { %v8765_v27 = vpop.f32.mrf.mxu0  ;;  %v8799_v10 = vpop.f32.mrf.mxu1 }
 0x3e0   : > { %v8767_v13 = vpop.f32.mrf.mxu0  ;;  %v8805_v60 = vpop.f32.mrf.mxu1 }
 0x3e2   : > { %v8771_v5 = vpop.f32.mrf.mxu0  ;;  %v8811_v36 = vpop.f32.mrf.mxu1 }
 0x3e4   : > { %v8773_v4 = vpop.f32.mrf.mxu0  ;;  %v8817_v23 = vpop.f32.mrf.mxu1 }
 0x3e6   : > { %v8777_v44 = vpop.f32.mrf.mxu0  ;;  %v8821_v34 = vpop.f32.mrf.mxu1 }
 0x3e8   : > { %v8779_v37 = vpop.f32.mrf.mxu0  ;;  %v8829_v61 = vpop.f32.mrf.mxu1 }
 0x3ea   : > { %v8783_v0 = vpop.f32.mrf.mxu0 }
 0x3ec   : > { %v8785_v51 = vpop.f32.mrf.mxu0 }
 0x3ee   : > { %v8789_v56 = vpop.f32.mrf.mxu0 }
 0x3f0   : > { %v8791_v52 = vpop.f32.mrf.mxu0 }
 0x3f2   : > { %v8795_v54 = vpop.f32.mrf.mxu0 }
 0x3f4   : > { %v8797_v25 = vpop.f32.mrf.mxu0 }
 0x3f6   : > { %v8801_v41 = vpop.f32.mrf.mxu0 }
 0x3f8   : > { %v8803_v33 = vpop.f32.mrf.mxu0 }
 0x3fa   : > { %v8807_v42 = vpop.f32.mrf.mxu0 }
 0x3fc   : > { %v8809_v32 = vpop.f32.mrf.mxu0 }
 0x3fe   : > { %v8813_v50 = vpop.f32.mrf.mxu0 }
 0x400   : > { %v8815_v11 = vpop.f32.mrf.mxu0 }
 0x401   : > { %9640 = vst [vmem:[#allocation37_spill] sm:$0xff] %v8815_v11 }
 0x402   : > { %v8819_v53 = vpop.f32.mrf.mxu0 }
 0x403   : > { %9641 = vst [vmem:[#allocation38_spill] sm:$0xff] %v8819_v53 }
 0x404   : > { %v7183_v31 = vpop.f32.mrf.mxu0 }
 0x405   : > { %v3954_v15 = vadd.f32 %v7183_v31, %v3502_v3 }
 0x406   : > { %v3825_v35 = vpop.f32.mrf.mxu0 }
 0x407   : > { %v3952_v29 = vadd.f32 %v3825_v35, %v3494_v18  ;;  %v3993_v62 = vadd.f32 %v8826_v59, %v3954_v15  ;;  %v8835_v15 = vpop.f32.mrf.mxu1 }
 0x408   : > { %v7184_v8 = vpop.f32.mrf.mxu0 }
 0x409   : > { %v3955_v9 = vadd.f32 %v7184_v8, %v3505_v12  ;;  %v3991_v31 = vadd.f32 %v8826_v59, %v3952_v29  ;;  %v4025_v53 = vmax.f32 %v3993_v62, 0.0  ;;  %v8839_v21 = vpop.f32.mrf.mxu1 }
 0x40a   : > { %v3828_v14 = vpop.f32.mrf.mxu0 }
 0x40b   : > { %v3994_v3 = vadd.f32 %v8826_v59, %v3955_v9  ;;  %v3953_v7 = vadd.f32 %v3828_v14, %v3497_v58  ;;  %v4023_v12 = vmax.f32 %v3991_v31, 0.0  ;;  %v3513_v9 = vadd.f32 %v3512_v22, %v8753_v40 }
 0x40c   : > { %v7187_v45 = vpop.f32.mrf.mxu0 }
 0x40d   : > { %v4026_v11 = vmax.f32 %v3994_v3, 0.0  ;;  %v3992_v35 = vadd.f32 %v8826_v59, %v3953_v7  ;;  %v3958_v18 = vadd.f32 %v7187_v45, %v3518_v39  ;;  %v3534_v45 = vadd.f32 %v8769_v16, %v8755_v17  ;;  %v8852_v16 = vpop.f32.mrf.mxu1 }
 0x40e   : > { %v3841_v8 = vpop.f32.mrf.mxu0  ;;  %v3537_v17 = vadd.f32 %v8781_v49, %v8759_v46  ;;  %v3550_v46 = vadd.f32 %v8793_v2, %v8763_v30  ;;  %v3553_v2 = vadd.f32 %v8805_v60, %v8767_v13 }
 0x40f   : > { %v4056_v26 = vpack.c.bf16 %v4026_v11, %v4025_v53  ;;  %v4024_v47 = vmax.f32 %v3992_v35, 0.0  ;;  %v3956_v43 = vadd.f32 %v3841_v8, %v3510_v20  ;;  %v3997_v57 = vadd.f32 %v8826_v59, %v3958_v18 }
 0x410   : > { %v7188_v29 = vpop.f32.mrf.mxu0  ;;  %v3526_v11 = vadd.f32 %v8775_v1, %v8757_v63  ;;  %v3529_v63 = vadd.f32 %v8787_v55, %v8761_v19  ;;  %v3542_v19 = vadd.f32 %v8799_v10, %v8765_v27  ;;  %v3545_v10 = vadd.f32 %v8811_v36, %v8771_v5 }
 0x411   : > { %v4055_v58 = vpack.c.bf16 %v4024_v47, %v4023_v12  ;;  %v3959_v62 = vadd.f32 %v7188_v29, %v3521_v38  ;;  %v3995_v48 = vadd.f32 %v8826_v59, %v3956_v43  ;;  %v4029_v24 = vmax.f32 %v3997_v57, 0.0  ;;  %v8857_v12 = vpop.f32.mrf.mxu1 }
 0x412   : > { %v3844_v6 = vpop.f32.mrf.mxu0 }
 0x413   : > { %v3998_v28 = vadd.f32 %v8826_v59, %v3959_v62  ;;  %v3957_v53 = vadd.f32 %v3844_v6, %v3513_v9  ;;  %7215 = vmatprep.mubr.msk.bf16.mxu1 %vm784_vm9, %v4055_v58  ;;  %v4027_v3 = vmax.f32 %v3995_v48, 0.0  ;;  %v3576_v30 = vpop.f32.mrf.mxu1 }
 0x414   : > { %v7191_v40 = vpop.f32.mrf.mxu0  ;;  %7216 = vmatmul.mubr.msk.bf16.vlgmr.msra.gmra.mxu1 %vm784_vm9, %v4056_v26 }
 0x415   : > { %v4030_v22 = vmax.f32 %v3998_v28, 0.0  ;;  %v3996_v14 = vadd.f32 %v8826_v59, %v3957_v53  ;;  %v3962_v39 = vadd.f32 %v7191_v40, %v3534_v45 }
 0x416   : > { %v3857_v31 = vpop.f32.mrf.mxu0 }
 0x417   : > { %v4058_v7 = vpack.c.bf16 %v4030_v22, %v4029_v24  ;;  %v4028_v20 = vmax.f32 %v3996_v14, 0.0  ;;  %v3960_v35 = vadd.f32 %v3857_v31, %v3526_v11  ;;  %v4001_v38 = vadd.f32 %v8826_v59, %v3962_v39  ;;  %v7173_v24 = vpop.f32.mrf.mxu1 }
 0x418   : > { %v7192_v18 = vpop.f32.mrf.mxu0  ;;  %v3566_v14 = vadd.f32 %v8817_v23, %v8773_v4  ;;  %v3569_v23 = vadd.f32 %v8829_v61, %v8779_v37 }
 0x419   : > { %v4057_v1 = vpack.c.bf16 %v4028_v20, %v4027_v3  ;;  %v3963_v8 = vadd.f32 %v7192_v18, %v3537_v17  ;;  %v3999_v49 = vadd.f32 %v8826_v59, %v3960_v35  ;;  %v4033_v29 = vmax.f32 %v4001_v38, 0.0  ;;  %v3589_v4 = vpop.f32.mrf.mxu1 }
 0x41a   : > { %v3860_v26 = vpop.f32.mrf.mxu0  ;;  %v3558_v17 = vadd.f32 %v8821_v34, %v8777_v44  ;;  %v3561_v34 = vadd.f32 %v8835_v15, %v8783_v0 }
 0x41b   : > { %v4002_v47 = vadd.f32 %v8826_v59, %v3963_v8  ;;  %v3961_v43 = vadd.f32 %v3860_v26, %v3529_v63  ;;  %7219 = vmatprep.mubr.msk.bf16.mxu1 %vm784_vm9, %v4057_v1  ;;  %v4031_v6 = vmax.f32 %v3999_v49, 0.0 }
 0x41c   : > { %v7195_v55 = vpop.f32.mrf.mxu0  ;;  %7220 = vmatmul.mubr.msk.bf16.gmra.mxu1 %vm784_vm9, %v4058_v7 }
 0x41d   : > { %v4034_v9 = vmax.f32 %v4002_v47, 0.0  ;;  %v4000_v58 = vadd.f32 %v8826_v59, %v3961_v43  ;;  %v3966_v57 = vadd.f32 %v7195_v55, %v3550_v46  ;;  %v7174_v46 = vpop.f32.mrf.mxu1  ;;  %v3582_v47 = vadd.f32 %v8839_v21, %v8785_v51 }
 0x41e   : > { %v3873_v62 = vpop.f32.mrf.mxu0  ;;  %v3585_v51 = vadd.f32 %v8857_v12, %v8791_v52 }
 0x41f   : > { %v4060_v45 = vpack.c.bf16 %v4034_v9, %v4033_v29  ;;  %v4032_v48 = vmax.f32 %v4000_v58, 0.0  ;;  %v3964_v28 = vadd.f32 %v3873_v62, %v3542_v19  ;;  %v4005_v11 = vadd.f32 %v8826_v59, %v3966_v57  ;;  %v3592_v21 = vpop.f32.mrf.mxu1 }
 0x420   : > { %v7196_v53 = vpop.f32.mrf.mxu0  ;;  %v3574_v19 = vadd.f32 %v8852_v16, %v8789_v56  ;;  %v3577_v56 = vadd.f32 %v3576_v30, %v8795_v54 }
 0x421   : > { %v4059_v27 = vpack.c.bf16 %v4032_v48, %v4031_v6  ;;  %v3967_v40 = vadd.f32 %v7196_v53, %v3553_v2  ;;  %v4003_v60 = vadd.f32 %v8826_v59, %v3964_v28  ;;  %v4037_v5 = vmax.f32 %v4005_v11, 0.0  ;;  %v7177_v53 = vpop.f32.mrf.mxu1 }
 0x422   : > { %v3876_v22 = vpop.f32.mrf.mxu0 }
 0x423   : > { %v4006_v13 = vadd.f32 %v8826_v59, %v3967_v40  ;;  %v3965_v39 = vadd.f32 %v3876_v22, %v3545_v10  ;;  %7223 = vmatprep.mubr.msk.bf16.mxu1 %vm784_vm9, %v4059_v27  ;;  %v4035_v35 = vmax.f32 %v4003_v60, 0.0  ;;  %v3598_v27 = vadd.f32 %v7173_v24, %v8797_v25  ;;  %v3605_v25 = vpop.f32.mrf.mxu1 }
 0x424   : > { %v7199_v36 = vpop.f32.mrf.mxu0  ;;  %7224 = vmatmul.mubr.msk.bf16.gmra.mxu1 %vm784_vm9, %v4060_v45  ;;  %v3590_v40 = vadd.f32 %v3589_v4, %v8801_v41 }
 0x425   : > { %v4038_v31 = vmax.f32 %v4006_v13, 0.0  ;;  %v4004_v3 = vadd.f32 %v8826_v59, %v3965_v39  ;;  %v3970_v7 = vadd.f32 %v7199_v36, %v3566_v14  ;;  %v3601_v13 = vadd.f32 %v7174_v46, %v8803_v33  ;;  %v7178_v4 = vpop.f32.mrf.mxu1 }
 0x426   : > { %v3889_v20 = vpop.f32.mrf.mxu0 }
 0x427   : > { %v4062_v18 = vpack.c.bf16 %v4038_v31, %v4037_v5  ;;  %v4036_v63 = vmax.f32 %v4004_v3, 0.0  ;;  %v3968_v1 = vadd.f32 %v3889_v20, %v3558_v17  ;;  %v4009_v8 = vadd.f32 %v8826_v59, %v3970_v7 }
 0x428   : > { %v7200_v38 = vpop.f32.mrf.mxu0  ;;  %v3593_v3 = vadd.f32 %v3592_v21, %v8807_v42 }
 0x429   : > { %v4061_v44 = vpack.c.bf16 %v4036_v63, %v4035_v35  ;;  %v3971_v26 = vadd.f32 %v7200_v38, %v3569_v23  ;;  %v4007_v61 = vadd.f32 %v8826_v59, %v3968_v1  ;;  %v4041_v15 = vmax.f32 %v4009_v8, 0.0 }
 0x42a   : > { %v3892_v49 = vpop.f32.mrf.mxu0  ;;  %v3614_v35 = vadd.f32 %v7177_v53, %v8809_v32  ;;  %v3606_v1 = vadd.f32 %v3605_v25, %v8813_v50  ;;  %v3608_v32 = vpop.f32.mrf.mxu1  ;;  %v9646_v25 = vld [vmem:[#allocation7_spill] sm:$0xff] }
 0x42b   : > { %v4010_v37 = vadd.f32 %v8826_v59, %v3971_v26  ;;  %v3969_v43 = vadd.f32 %v3892_v49, %v3561_v34  ;;  %7227 = vmatprep.mubr.msk.bf16.mxu1 %vm784_vm9, %v4061_v44  ;;  %v4039_v57 = vmax.f32 %v4007_v61, 0.0  ;;  %v9642_v26 = vld [vmem:[#allocation37_spill] sm:$0xff] }
 0x42c   : > { %v7203_v0 = vpop.f32.mrf.mxu0  ;;  %7228 = vmatmul.mubr.msk.bf16.gmra.mxu1 %vm784_vm9, %v4062_v18  ;;  %v3617_v46 = vadd.f32 %v7178_v4, %v9642_v26 }
 0x42d   : > { %v4042_v55 = vmax.f32 %v4010_v37, 0.0  ;;  %v4008_v29 = vadd.f32 %v8826_v59, %v3969_v43  ;;  %v3974_v9 = vadd.f32 %v7203_v0, %v3582_v47  ;;  %v9643_v0 = vld [vmem:[#allocation38_spill] sm:$0xff] }
 0x42e   : > { %v3905_v58 = vpop.f32.mrf.mxu0 }
 0x42f   : > { %v4064_v2 = vpack.c.bf16 %v4042_v55, %v4041_v15  ;;  %v4040_v62 = vmax.f32 %v4008_v29, 0.0  ;;  %v3972_v6 = vadd.f32 %v3905_v58, %v3574_v19  ;;  %v4013_v48 = vadd.f32 %v8826_v59, %v3974_v9 }
 0x430   : > { %v7204_v45 = vpop.f32.mrf.mxu0  ;;  %v3609_v15 = vadd.f32 %v3608_v32, %v9643_v0 }
 0x431   : > { %v4063_v16 = vpack.c.bf16 %v4040_v62, %v4039_v57  ;;  %v3975_v28 = vadd.f32 %v7204_v45, %v3585_v51  ;;  %v4011_v11 = vadd.f32 %v8826_v59, %v3972_v6  ;;  %v4045_v54 = vmax.f32 %v4013_v48, 0.0  ;;  %v7508_v48 = vld [vmem:[%s9559_s9 + $0x8] sm:$0x3f]  }
 0x432   : > { %v3908_v10 = vpop.f32.mrf.mxu0  ;;  %7391 = vmatprep.subr.msk.bf16.mxu0 %vm1214_vm4, %v7508_v48 }
 0x433   : > { %v4014_v52 = vadd.f32 %v8826_v59, %v3975_v28  ;;  %v3973_v12 = vadd.f32 %v3908_v10, %v3577_v56  ;;  %7231 = vmatprep.mubr.msk.bf16.mxu1 %vm784_vm9, %v4063_v16  ;;  %v4043_v39 = vmax.f32 %v4011_v11, 0.0  ;;  %v7509_v28 = vld [vmem:[%s9559_s9] sm:$0x3f]  }
 0x434   : > { %v7207_v22 = vpop.f32.mrf.mxu0  ;;  %7232 = vmatmul.mubr.msk.bf16.gmra.mxu1 %vm784_vm9, %v4064_v2  ;;  %7392 = vmatprep.subr.msk.bf16.mxu1 %vm1214_vm4, %v7509_v28  ;;  %v5431_v53 = vsel %vm1214_vm4, %v7509_v28, 0  ;;  %v8940_v10 = vld [vmem:[%s9558_s8] ss:$0 sm:$0xff] }
 0x435   : > { %v4046_v30 = vmax.f32 %v4014_v52, 0.0  ;;  %v4012_v14 = vadd.f32 %v8826_v59, %v3973_v12  ;;  %v3978_v60 = vadd.f32 %v7207_v22, %v3598_v27  ;;  %7282 = vmatpush3.bf16.msra.mxu1 %v5431_v53  ;;  %v9644_v22 = vld [vmem:[#allocation5_spill] sm:$0xff] }
 0x436   : > { %v3921_v24 = vpop.f32.mrf.mxu0 }
 0x437   : > { %v4066_v17 = vpack.c.bf16 %v4046_v30, %v4045_v54  ;;  %v4044_v36 = vmax.f32 %v4012_v14, 0.0  ;;  %v3976_v5 = vadd.f32 %v3921_v24, %v3590_v40  ;;  %v4017_v7 = vadd.f32 %v8826_v59, %v3978_v60  ;;  %v9645_v60 = vld [vmem:[#allocation6_spill] sm:$0xff] }
 0x438   : > { %v7208_v31 = vpop.f32.mrf.mxu0 }
 0x439   : > { %v4065_v41 = vpack.c.bf16 %v4044_v36, %v4043_v39  ;;  %v3979_v23 = vadd.f32 %v7208_v31, %v3601_v13  ;;  %v4015_v18 = vadd.f32 %v8826_v59, %v3976_v5  ;;  %v4049_v42 = vmax.f32 %v4017_v7, 0.0  ;;  %v9647_v31 = vld [vmem:[#allocation8_spill] sm:$0xff] }
 0x43a   : > { %v3924_v20 = vpop.f32.mrf.mxu0 }
 0x43b   : > { %v4018_v33 = vadd.f32 %v8826_v59, %v3979_v23  ;;  %v3977_v63 = vadd.f32 %v3924_v20, %v3593_v3  ;;  %7235 = vmatprep.mubr.msk.bf16.mxu1 %vm784_vm9, %v4065_v41  ;;  %v4047_v47 = vmax.f32 %v4015_v18, 0.0  ;;  %v9648_v18 = vld [vmem:[#allocation9_spill] sm:$0xff] }
 0x43c   : > { %v7211_v38 = vpop.f32.mrf.mxu0  ;;  %7236 = vmatmul.mubr.msk.bf16.gmra.mxu1 %vm784_vm9, %v4066_v17 }
 0x43d   : > { %v4050_v34 = vmax.f32 %v4018_v33, 0.0  ;;  %v4016_v44 = vadd.f32 %v8826_v59, %v3977_v63  ;;  %v3982_v8 = vadd.f32 %v7211_v38, %v3614_v35 }
 0x43e   : > { %v3937_v49 = vpop.f32.mrf.mxu0 }
 0x43f   : > { %v4068_v61 = vpack.c.bf16 %v4050_v34, %v4049_v42  ;;  %v4048_v37 = vmax.f32 %v4016_v44, 0.0  ;;  %v3980_v43 = vadd.f32 %v3937_v49, %v3606_v1  ;;  %v4021_v55 = vadd.f32 %v8826_v59, %v3982_v8  ;;  %v9649_v8 = vld [vmem:[#allocation10_spill] sm:$0xff] }
 0x440   : > { %v7212_v19 = vpop.f32.mrf.mxu0 }
 0x441   : > { %v4067_v50 = vpack.c.bf16 %v4048_v37, %v4047_v47  ;;  %v3983_v29 = vadd.f32 %v7212_v19, %v3617_v46  ;;  %v4019_v51 = vadd.f32 %v8826_v59, %v3980_v43  ;;  %v4053_v57 = vmax.f32 %v4021_v55, 0.0  ;;  %v9650_v46 = vld [vmem:[#allocation11_spill] sm:$0xff] }
 0x442   : > { %v3940_v9 = vpop.f32.mrf.mxu0 }
 0x443   : > { %v4022_v21 = vadd.f32 %v8826_v59, %v3983_v29  ;;  %v3981_v58 = vadd.f32 %v3940_v9, %v3609_v15  ;;  %7239 = vmatprep.mubr.msk.bf16.mxu1 %vm784_vm9, %v4067_v50  ;;  %v4051_v6 = vmax.f32 %v4019_v51, 0.0  ;;  %v9651_v50 = vld [vmem:[#allocation12_spill] sm:$0xff] }
 0x444   : > { %7240 = vmatmul.mubr.msk.bf16.gmra.mxu1 %vm784_vm9, %v4068_v61 }
 0x445   : > { %v4054_v2 = vmax.f32 %v4022_v21, 0.0  ;;  %v4020_v62 = vadd.f32 %v8826_v59, %v3981_v58  ;;  %v5134_v59 = vsel %vm1214_vm4, %v7508_v48, 0 }
 0x446   : > { %7248 = vmatpush3.bf16.msra.mxu0 %v5134_v59 }
 0x447   : > { %v4070_v45 = vpack.c.bf16 %v4054_v2, %v4053_v57  ;;  %v4052_v56 = vmax.f32 %v4020_v62, 0.0 }
 0x449   : > { %v4069_v16 = vpack.c.bf16 %v4052_v56, %v4051_v6  ;;  %v9652_v56 = vld [vmem:[#allocation13_spill] sm:$0xff] }
 0x44b   : > { %7243 = vmatprep.mubr.msk.bf16.mxu1 %vm784_vm9, %v4069_v16 }
 0x44c   : > { %7244 = vmatmul.mubr.msk.bf16.gmra.mxu1 %vm784_vm9, %v4070_v45 }
 0x4d4   : > { %v7217_v27 = vpop.f32.mrf.mxu1 }
 0x4d5   : > { %v4173_v11 = vadd.f32 %v7217_v27, %v8940_v10 }
 0x4d6   : > { %v4164_v52 = vpop.f32.mrf.mxu1 }
 0x4d7   : > { %v4165_v12 = vadd.f32 %v8940_v10, %v4164_v52  ;;  %v4293_v54 = vadd.f32 %v4173_v11, %v9644_v22 }
 0x4d8   : > { %v7218_v40 = vpop.f32.mrf.mxu1 }
 0x4d9   : > { %v4176_v30 = vadd.f32 %v7218_v40, %v8940_v10  ;;  %v4291_v13 = vadd.f32 %v4165_v12, %v9645_v60  ;;  %v4325_v36 = vmax.f32 %v4293_v54, 0.0 }
 0x4da   : > { %v4167_v14 = vpop.f32.mrf.mxu1 }
 0x4db   : > { %v4294_v24 = vadd.f32 %v4176_v30, %v9646_v25  ;;  %v4168_v39 = vadd.f32 %v8940_v10, %v4167_v14  ;;  %v4323_v23 = vmax.f32 %v4291_v13, 0.0  ;;  %v7510_v30 = vld [vmem:[#allocation2] sm:$0xff]   ;;  %v9654_v14 = vld [vmem:[#allocation14_spill] sm:$0xff]  ;;  %v9655_v13 = vld [vmem:[#allocation15_spill] sm:$0xff] }
 0x4dc   : > { %v7221_v17 = vpop.f32.mrf.mxu1  ;;  %7283 = vmatprep.mubr.msk.bf16.mxu1 %vm1165_vm5, %v7510_v30 }
 0x4dd   : > { %v4326_v5 = vmax.f32 %v4294_v24, 0.0  ;;  %v4292_v3 = vadd.f32 %v4168_v39, %v9647_v31  ;;  %v4189_v41 = vadd.f32 %v7221_v17, %v8940_v10  ;;  %v8980_v17 = vld [vmem:[%s9559_s9 + $0x18] sm:$0x3f]  }
 0x4de   : > { %v4180_v7 = vpop.f32.mrf.mxu1  ;;  %7393 = vmatprep.subr.msk.bf16.mxu0 %vm1214_vm4, %v8980_v17 }
 0x4df   : > { %v4324_v4 = vmax.f32 %v4292_v3, 0.0  ;;  %v4181_v20 = vadd.f32 %v8940_v10, %v4180_v7  ;;  %v4356_v35 = vpack.c.bf16 %v4326_v5, %v4325_v36  ;;  %v4297_v33 = vadd.f32 %v4189_v41, %v9648_v18  ;;  %v8985_v36 = vld [vmem:[%s9559_s9 + $0x10] sm:$0x3f]  }
 0x4e0   : > { %v7222_v63 = vpop.f32.mrf.mxu1  ;;  %7394 = vmatprep.subr.msk.bf16.mxu1 %vm1214_vm4, %v8985_v36 }
 0x4e1   : > { %v4192_v1 = vadd.f32 %v7222_v63, %v8940_v10  ;;  %4597 = vrot.lane.b32.xlu1 %v4356_v35, %s7601_s23  ;;  %v4355_v38 = vpack.c.bf16 %v4324_v4, %v4323_v23  ;;  %v4379_v34 = vshrl.u32 %v4356_v35, 16  ;;  %v4382_v44 = vshll.u32 %v4356_v35, 16  ;;  %v9656_v4 = vld [vmem:[#allocation16_spill] sm:$0xff] }
 0x4e2   : > { %v4183_v42 = vpop.f32.mrf.mxu1  ;;  %v4295_v26 = vadd.f32 %v4181_v20, %v9649_v8  ;;  %v4329_v61 = vmax.f32 %v4297_v33, 0.0 }
 0x4e3   : > { %v4298_v32 = vadd.f32 %v4192_v1, %v9650_v46  ;;  %v4184_v49 = vadd.f32 %v8940_v10, %v4183_v42  ;;  %4595 = vrot.lane.b32.xlu0 %v4355_v38, %s7601_s23  ;;  %v4372_v47 = vshrl.u32 %v4355_v38, 16  ;;  %v4517_v43 = vrot.slane %v4382_v44, 1 }
 0x4e4   : > { %v7225_v37 = vpop.f32.mrf.mxu1  ;;  %v4381_v19 = vrot.slane %v4379_v34, 7  ;;  %v4375_v0 = vshll.u32 %v4355_v38, 16  ;;  %v4327_v2 = vmax.f32 %v4295_v26, 0.0  ;;  %v9657_v26 = vld [vmem:[#allocation17_spill] sm:$0xff] }
 0x4e5   : > { %v4330_v15 = vmax.f32 %v4298_v32, 0.0  ;;  %v4296_v55 = vadd.f32 %v4184_v49, %v9651_v50  ;;  %v4205_v29 = vadd.f32 %v7225_v37, %v8940_v10  ;;  %v4374_v9 = vrot.slane %v4372_v47, 7 }
 0x4e6   : > { %v4196_v51 = vpop.f32.mrf.mxu1  ;;  %v4518_v21 = vor.u32 %v4517_v43, %v4379_v34  ;;  %v4515_v58 = vrot.slane %v4375_v0, 1  ;;  %v8961_v57 = vor.u32 %v4382_v44, %v4381_v19 }
 0x4e7   : > { %v4328_v62 = vmax.f32 %v4296_v55, 0.0  ;;  %v4197_v6 = vadd.f32 %v8940_v10, %v4196_v51  ;;  %v4358_v45 = vpack.c.bf16 %v4330_v15, %v4329_v61  ;;  %v4301_v16 = vadd.f32 %v4205_v29, %v9652_v56  ;;  %v9658_v55 = vld [vmem:[#allocation18_spill] sm:$0xff] }
 0x4e8   : > { %v4564_v28 = vsel %vm7716_vm3, %v4518_v21, 0  ;;  %v7226_v59 = vpop.f32.mrf.mxu1  ;;  %v4516_v53 = vor.u32 %v4515_v58, %v4372_v47  ;;  %v8967_v27 = vor.u32 %v4375_v0, %v4374_v9  ;;  %v9659_v9 = vld [vmem:[#allocation19_spill] sm:$0xff] }
 0x4e9   : > { %4645 = vrot.lane.b32.xlu1 %v4564_v28, %s7602_s24  ;;  %v4208_v11 = vadd.f32 %v7226_v59, %v8940_v10  ;;  %v4357_v52 = vpack.c.bf16 %v4328_v62, %v4327_v2  ;;  %v4393_v22 = vshrl.u32 %v4358_v45, 16  ;;  %v4396_v54 = vshll.u32 %v4358_v45, 16  ;;  %v9660_v28 = vld [vmem:[#allocation20_spill] sm:$0xff] }
 0x4ea   : > { %v4199_v12 = vpop.f32.mrf.mxu1  ;;  %v4563_v40 = vsel %vm7716_vm3, %v4516_v53, 0  ;;  %v4299_v60 = vadd.f32 %v4197_v6, %v9654_v14  ;;  %v4333_v5 = vmax.f32 %v4301_v16, 0.0 }
 0x4eb   : > { %v4302_v25 = vadd.f32 %v4208_v11, %v9655_v13  ;;  %v4200_v24 = vadd.f32 %v8940_v10, %v4199_v12  ;;  %4643 = vrot.lane.b32.xlu0 %v4563_v40, %s7602_s24  ;;  %v4386_v39 = vshrl.u32 %v4357_v52, 16  ;;  %v4521_v3 = vrot.slane %v4396_v54, 1  ;;  %v9661_v13 = vld [vmem:[#allocation21_spill] sm:$0xff] }
 0x4ec   : > { %v7229_v31 = vpop.f32.mrf.mxu1  ;;  %v4395_v41 = vrot.slane %v4393_v22, 7  ;;  %v4389_v7 = vshll.u32 %v4357_v52, 16  ;;  %v4331_v42 = vmax.f32 %v4299_v60, 0.0 }
 0x4ed   : > { %v4334_v23 = vmax.f32 %v4302_v25, 0.0  ;;  %v4300_v20 = vadd.f32 %v4200_v24, %v9656_v4  ;;  %4601 = vrot.lane.b32.xlu1 %v4358_v45, %s7601_s23  ;;  %v4221_v35 = vadd.f32 %v7229_v31, %v8940_v10  ;;  %v4388_v18 = vrot.slane %v4386_v39, 7 }
 0x4ee   : > { %v4212_v33 = vpop.f32.mrf.mxu1  ;;  %v4522_v63 = vor.u32 %v4521_v3, %v4393_v22  ;;  %v4519_v1 = vrot.slane %v4389_v7, 1  ;;  %v8993_v38 = vor.u32 %v4396_v54, %v4395_v41 }
 0x4ef   : > { %v4332_v34 = vmax.f32 %v4300_v20, 0.0  ;;  %v4213_v44 = vadd.f32 %v8940_v10, %v4212_v33  ;;  %4599 = vrot.lane.b32.xlu0 %v4357_v52, %s7601_s23  ;;  %v4360_v8 = vpack.c.bf16 %v4334_v23, %v4333_v5  ;;  %v4305_v46 = vadd.f32 %v4221_v35, %v9657_v26  ;;  %v9662_v35 = vld [vmem:[#allocation22_spill] sm:$0xff]  ;;  %v9663_v33 = vld [vmem:[#allocation23_spill] sm:$0xff] }
 0x4f0   : > { %v4566_v32 = vsel %vm7716_vm3, %v4522_v63, 0  ;;  %v7230_v49 = vpop.f32.mrf.mxu1  ;;  %v4520_v47 = vor.u32 %v4519_v1, %v4386_v39  ;;  %v9002_v61 = vor.u32 %v4389_v7, %v4388_v18 }
 0x4f1   : > { %4649 = vrot.lane.b32.xlu1 %v4566_v32, %s7602_s24  ;;  %v4224_v37 = vadd.f32 %v7230_v49, %v8940_v10  ;;  %v4359_v43 = vpack.c.bf16 %v4332_v34, %v4331_v42  ;;  %v4407_v15 = vshrl.u32 %v4360_v8, 16  ;;  %v4410_v50 = vshll.u32 %v4360_v8, 16  ;;  %v9664_v49 = vld [vmem:[#allocation24_spill] sm:$0xff] }
 0x4f2   : > { %v4215_v19 = vpop.f32.mrf.mxu1  ;;  %v4565_v0 = vsel %vm7716_vm3, %v4520_v47, 0  ;;  %v4303_v29 = vadd.f32 %v4213_v44, %v9658_v55  ;;  %v4337_v2 = vmax.f32 %v4305_v46, 0.0 }
 0x4f3   : > { %v4306_v51 = vadd.f32 %v4224_v37, %v9659_v9  ;;  %v4216_v21 = vadd.f32 %v8940_v10, %v4215_v19  ;;  %4647 = vrot.lane.b32.xlu0 %v4565_v0, %s7602_s24  ;;  %v4400_v58 = vshrl.u32 %v4359_v43, 16  ;;  %v4525_v6 = vrot.slane %v4410_v50, 1 }
 0x4f4   : > { %v7233_v62 = vpop.f32.mrf.mxu1  ;;  %v4409_v45 = vrot.slane %v4407_v15, 7  ;;  %v4403_v56 = vshll.u32 %v4359_v43, 16  ;;  %v4335_v54 = vmax.f32 %v4303_v29, 0.0 }
 0x4f5   : > { %v4338_v16 = vmax.f32 %v4306_v51, 0.0  ;;  %v4304_v59 = vadd.f32 %v4216_v21, %v9660_v28  ;;  %4605 = vrot.lane.b32.xlu1 %v4360_v8, %s7601_s23  ;;  %v4237_v53 = vadd.f32 %v7233_v62, %v8940_v10  ;;  %v4402_v11 = vrot.slane %v4400_v58, 7  ;;  %v9665_v21 = vld [vmem:[#allocation25_spill] sm:$0xff] }
 0x4f6   : > { %v4228_v52 = vpop.f32.mrf.mxu1  ;;  %v4526_v12 = vor.u32 %v4525_v6, %v4407_v15  ;;  %v4523_v40 = vrot.slane %v4403_v56, 1  ;;  %v9015_v22 = vor.u32 %v4410_v50, %v4409_v45 }
 0x4f7   : > { %v4336_v30 = vmax.f32 %v4304_v59, 0.0  ;;  %v4229_v14 = vadd.f32 %v8940_v10, %v4228_v52  ;;  %4603 = vrot.lane.b32.xlu0 %v4359_v43, %s7601_s23  ;;  %v4362_v60 = vpack.c.bf16 %v4338_v16, %v4337_v2  ;;  %v4309_v25 = vadd.f32 %v4237_v53, %v9661_v13  ;;  %v9666_v52 = vld [vmem:[#allocation26_spill] sm:$0xff] }
 0x4f8   : > { %v4568_v24 = vsel %vm7716_vm3, %v4526_v12, 0  ;;  %v7234_v39 = vpop.f32.mrf.mxu1  ;;  %v4524_v5 = vor.u32 %v4523_v40, %v4400_v58  ;;  %v9022_v31 = vor.u32 %v4403_v56, %v4402_v11  ;;  %v9667_v40 = vld [vmem:[#allocation27_spill] sm:$0xff] }
 0x4f9   : > { %4653 = vrot.lane.b32.xlu1 %v4568_v24, %s7602_s24  ;;  %v4240_v3 = vadd.f32 %v7234_v39, %v8940_v10  ;;  %v4361_v41 = vpack.c.bf16 %v4336_v30, %v4335_v54  ;;  %v4421_v4 = vshrl.u32 %v4362_v60, 16  ;;  %v4424_v20 = vshll.u32 %v4362_v60, 16 }
 0x4fa   : > { %v4231_v7 = vpop.f32.mrf.mxu1  ;;  %v4567_v23 = vsel %vm7716_vm3, %v4524_v5, 0  ;;  %v4307_v18 = vadd.f32 %v4229_v14, %v9662_v35  ;;  %v4341_v34 = vmax.f32 %v4309_v25, 0.0 }
 0x4fb   : > { %v4310_v63 = vadd.f32 %v4240_v3, %v9663_v33  ;;  %v4232_v1 = vadd.f32 %v8940_v10, %v4231_v7  ;;  %4651 = vrot.lane.b32.xlu0 %v4567_v23, %s7602_s24  ;;  %v4414_v42 = vshrl.u32 %v4361_v41, 16  ;;  %v4529_v8 = vrot.slane %v4424_v20, 1  ;;  %v9668_v3 = vld [vmem:[#allocation28_spill] sm:$0xff] }
 0x4fc   : > { %v7237_v44 = vpop.f32.mrf.mxu1  ;;  %v4423_v26 = vrot.slane %v4421_v4, 7  ;;  %v4417_v46 = vshll.u32 %v4361_v41, 16  ;;  %v4339_v55 = vmax.f32 %v4307_v18, 0.0 }
 0x4fd   : > { %v4342_v32 = vmax.f32 %v4310_v63, 0.0  ;;  %v4308_v47 = vadd.f32 %v4232_v1, %v9664_v49  ;;  %4609 = vrot.lane.b32.xlu1 %v4362_v60, %s7601_s23  ;;  %v4253_v37 = vadd.f32 %v7237_v44, %v8940_v10  ;;  %v4416_v43 = vrot.slane %v4414_v42, 7 }
 0x4fe   : > { %v4244_v19 = vpop.f32.mrf.mxu1  ;;  %v4530_v0 = vor.u32 %v4529_v8, %v4421_v4  ;;  %v4527_v15 = vrot.slane %v4417_v46, 1  ;;  %v9035_v50 = vor.u32 %v4424_v20, %v4423_v26 }
 0x4ff   : > { %v4340_v29 = vmax.f32 %v4308_v47, 0.0  ;;  %v4245_v9 = vadd.f32 %v8940_v10, %v4244_v19  ;;  %4607 = vrot.lane.b32.xlu0 %v4361_v41, %s7601_s23  ;;  %v4364_v51 = vpack.c.bf16 %v4342_v32, %v4341_v34  ;;  %v4313_v58 = vadd.f32 %v4253_v37, %v9665_v21  ;;  %v9669_v34 = vld [vmem:[#allocation29_spill] sm:$0xff] }
 0x500   : > { %v4570_v2 = vsel %vm7716_vm3, %v4530_v0, 0  ;;  %v7238_v62 = vpop.f32.mrf.mxu1  ;;  %v4528_v6 = vor.u32 %v4527_v15, %v4414_v42  ;;  %v9042_v45 = vor.u32 %v4417_v46, %v4416_v43  ;;  %v9670_v15 = vld [vmem:[#allocation30_spill] sm:$0xff] }
 0x501   : > { %4657 = vrot.lane.b32.xlu1 %v4570_v2, %s7602_s24  ;;  %v4256_v56 = vadd.f32 %v7238_v62, %v8940_v10  ;;  %v4363_v16 = vpack.c.bf16 %v4340_v29, %v4339_v55  ;;  %v4435_v53 = vshrl.u32 %v4364_v51, 16  ;;  %v4438_v11 = vshll.u32 %v4364_v51, 16  ;;  %v9671_v29 = vld [vmem:[#allocation31_spill] sm:$0xff] }
 0x502   : > { %v4247_v28 = vpop.f32.mrf.mxu1  ;;  %v4569_v59 = vsel %vm7716_vm3, %v4528_v6, 0  ;;  %v4311_v12 = vadd.f32 %v4245_v9, %v9666_v52  ;;  %v4345_v60 = vmax.f32 %v4313_v58, 0.0 }
 0x503   : > { %v4314_v54 = vadd.f32 %v4256_v56, %v9667_v40  ;;  %v4248_v30 = vadd.f32 %v8940_v10, %v4247_v28  ;;  %4655 = vrot.lane.b32.xlu0 %v4569_v59, %s7602_s24  ;;  %v4428_v14 = vshrl.u32 %v4363_v16, 16  ;;  %v4533_v25 = vrot.slane %v4438_v11, 1  ;;  %v9672_v28 = vld [vmem:[#allocation32_spill] sm:$0xff] }
 0x504   : > { %v7241_v13 = vpop.f32.mrf.mxu1  ;;  %v4437_v24 = vrot.slane %v4435_v53, 7  ;;  %v4431_v39 = vshll.u32 %v4363_v16, 16  ;;  %v4343_v33 = vmax.f32 %v4311_v12, 0.0 }
 0x505   : > { %v4346_v5 = vmax.f32 %v4314_v54, 0.0  ;;  %v4312_v41 = vadd.f32 %v4248_v30, %v9668_v3  ;;  %4613 = vrot.lane.b32.xlu1 %v4364_v51, %s7601_s23  ;;  %v4269_v7 = vadd.f32 %v7241_v13, %v8940_v10  ;;  %v4430_v23 = vrot.slane %v4428_v14, 7  ;;  %v9673_v3 = vld [vmem:[#allocation33_spill] sm:$0xff] }
 0x506   : > { %v4260_v4 = vpop.f32.mrf.mxu1  ;;  %v4534_v20 = vor.u32 %v4533_v25, %v4435_v53  ;;  %v4531_v35 = vrot.slane %v4431_v39, 1  ;;  %v9055_v18 = vor.u32 %v4438_v11, %v4437_v24 }
 0x507   : > { %v4344_v63 = vmax.f32 %v4312_v41, 0.0  ;;  %v4261_v1 = vadd.f32 %v8940_v10, %v4260_v4  ;;  %4611 = vrot.lane.b32.xlu0 %v4363_v16, %s7601_s23  ;;  %v4366_v42 = vpack.c.bf16 %v4346_v5, %v4345_v60  ;;  %v4317_v44 = vadd.f32 %v4269_v7, %v9669_v34 }
 0x508   : > { %v4572_v8 = vsel %vm7716_vm3, %v4534_v20, 0  ;;  %v7242_v26 = vpop.f32.mrf.mxu1  ;;  %v4532_v46 = vor.u32 %v4531_v35, %v4428_v14  ;;  %v9062_v32 = vor.u32 %v4431_v39, %v4430_v23 }
 0x509   : > { %4661 = vrot.lane.b32.xlu1 %v4572_v8, %s7602_s24  ;;  %v4272_v49 = vadd.f32 %v7242_v26, %v8940_v10  ;;  %v4365_v47 = vpack.c.bf16 %v4344_v63, %v4343_v33  ;;  %v4449_v19 = vshrl.u32 %v4366_v42, 16  ;;  %v4452_v0 = vshll.u32 %v4366_v42, 16  ;;  %v9674_v63 = vld [vmem:[#allocation34_spill] sm:$0xff] }
 0x50a   : > { %v4263_v37 = vpop.f32.mrf.mxu1  ;;  %v4571_v43 = vsel %vm7716_vm3, %v4532_v46, 0  ;;  %v4315_v55 = vadd.f32 %v4261_v1, %v9670_v15  ;;  %v4349_v58 = vmax.f32 %v4317_v44, 0.0 }
 0x50b   : > { %v4318_v9 = vadd.f32 %v4272_v49, %v9671_v29  ;;  %v4264_v51 = vadd.f32 %v8940_v10, %v4263_v37  ;;  %4659 = vrot.lane.b32.xlu0 %v4571_v43, %s7602_s24  ;;  %v4442_v21 = vshrl.u32 %v4365_v47, 16  ;;  %v4537_v62 = vrot.slane %v4452_v0, 1  ;;  %v9676_v43 = vld [vmem:[#allocation36_spill] sm:$0xff] }
 0x50c   : > { %v7245_v2 = vpop.f32.mrf.mxu1  ;;  %v4451_v6 = vrot.slane %v4449_v19, 7  ;;  %v4445_v56 = vshll.u32 %v4365_v47, 16  ;;  %v4347_v30 = vmax.f32 %v4315_v55, 0.0 }
 0x50d   : > { %v4350_v16 = vmax.f32 %v4318_v9, 0.0  ;;  %v4316_v59 = vadd.f32 %v4264_v51, %v9672_v28  ;;  %4617 = vrot.lane.b32.xlu1 %v4366_v42, %s7601_s23  ;;  %v4285_v53 = vadd.f32 %v7245_v2, %v8940_v10  ;;  %v4444_v11 = vrot.slane %v4442_v21, 7  ;;  %v9675_v42 = vld [vmem:[#allocation35_spill] sm:$0xff] }
 0x50e   : > { %v4276_v52 = vpop.f32.mrf.mxu1  ;;  %v4538_v12 = vor.u32 %v4537_v62, %v4449_v19  ;;  %v4535_v40 = vrot.slane %v4445_v56, 1  ;;  %v9075_v54 = vor.u32 %v4452_v0, %v4451_v6 }
 0x50f   : > { %v4348_v14 = vmax.f32 %v4316_v59, 0.0  ;;  %v4277_v60 = vadd.f32 %v8940_v10, %v4276_v52  ;;  %4615 = vrot.lane.b32.xlu0 %v4365_v47, %s7601_s23  ;;  %v4368_v13 = vpack.c.bf16 %v4350_v16, %v4349_v58  ;;  %v9081_v5 = vor.u32 %v4445_v56, %v4444_v11 }
 0x510   : > { %v4574_v25 = vsel %vm7716_vm3, %v4538_v12, 0  ;;  %v7246_v24 = vpop.f32.mrf.mxu1  ;;  %v4536_v39 = vor.u32 %v4535_v40, %v4442_v21  ;;  %v4321_v41 = vadd.f32 %v4285_v53, %v9673_v3 }
 0x511   : > { %4665 = vrot.lane.b32.xlu1 %v4574_v25, %s7602_s24  ;;  %v4288_v7 = vadd.f32 %v7246_v24, %v8940_v10  ;;  %v4367_v23 = vpack.c.bf16 %v4348_v14, %v4347_v30  ;;  %v4463_v35 = vshrl.u32 %v4368_v13, 16  ;;  %v4466_v33 = vshll.u32 %v4368_v13, 16 }
 0x512   : > { %v4279_v4 = vpop.f32.mrf.mxu1  ;;  %v4573_v20 = vsel %vm7716_vm3, %v4536_v39, 0  ;;  %v4319_v1 = vadd.f32 %v4277_v60, %v9674_v63  ;;  %v4353_v47 = vmax.f32 %v4321_v41, 0.0  ;;  %v4500_v41 = vsel %vm7963_vm8, 0, %v8961_v57 }
 0x513   : > { %v4322_v34 = vadd.f32 %v4288_v7, %v9675_v42  ;;  %v4280_v44 = vadd.f32 %v8940_v10, %v4279_v4  ;;  %4663 = vrot.lane.b32.xlu0 %v4573_v20, %s7602_s24  ;;  %v4456_v8 = vshrl.u32 %v4367_v23, 16  ;;  %v4541_v26 = vrot.slane %v4466_v33, 1 }
 0x514   : > { %v4465_v46 = vrot.slane %v4463_v35, 7  ;;  %v4459_v49 = vshll.u32 %v4367_v23, 16  ;;  %v4351_v9 = vmax.f32 %v4319_v1, 0.0  ;;  %v4499_v4 = vsel %vm7963_vm8, 0, %v8967_v27 }
 0x515   : > { %v4354_v37 = vmax.f32 %v4322_v34, 0.0  ;;  %v4320_v19 = vadd.f32 %v4280_v44, %v9676_v43  ;;  %4621 = vrot.lane.b32.xlu1 %v4368_v13, %s7601_s23  ;;  %v4458_v0 = vrot.slane %v4456_v8, 7  ;;  %v4542_v15 = vor.u32 %v4541_v26, %v4463_v35 }
 0x516   : > { %v4539_v55 = vrot.slane %v4459_v49, 1  ;;  %v9094_v29 = vor.u32 %v4466_v33, %v4465_v46  ;;  %v4502_v44 = vsel %vm7963_vm8, 0, %v8993_v38  ;;  %v4501_v46 = vsel %vm7963_vm8, 0, %v9002_v61 }
 0x517   : > { %v4352_v51 = vmax.f32 %v4320_v19, 0.0  ;;  %4619 = vrot.lane.b32.xlu0 %v4367_v23, %s7601_s23  ;;  %v4370_v10 = vpack.c.bf16 %v4354_v37, %v4353_v47  ;;  %v9097_v21 = vor.u32 %v4459_v49, %v4458_v0  ;;  %v4576_v58 = vsel %vm7716_vm3, %v4542_v15, 0 }
 0x518   : > { %v4540_v2 = vor.u32 %v4539_v55, %v4456_v8  ;;  %v5805_v61 = vsel %vm1214_vm4, %v8980_v17, 0 }
 0x519   : > { %4669 = vrot.lane.b32.xlu1 %v4576_v58, %s7602_s24  ;;  %v4369_v62 = vpack.c.bf16 %v4352_v51, %v4351_v9  ;;  %v4477_v6 = vshrl.u32 %v4370_v10, 16  ;;  %v4480_v56 = vshll.u32 %v4370_v10, 16 }
 0x51a   : > { %v4575_v16 = vsel %vm7716_vm3, %v4540_v2, 0  ;;  %v5974_v2 = vsel %vm1214_vm4, %v8985_v36, 0  ;;  %v4503_v36 = vsel %vm7963_vm8, 0, %v9022_v31 }
 0x51b   : > { %4667 = vrot.lane.b32.xlu0 %v4575_v16, %s7602_s24  ;;  %v4545_v28 = vrot.slane %v4480_v56, 1  ;;  %v4479_v59 = vrot.slane %v4477_v6, 7  ;;  %v4470_v53 = vshrl.u32 %v4369_v62, 16  ;;  %v4473_v11 = vshll.u32 %v4369_v62, 16 }
 0x51d   : > { %4625 = vrot.lane.b32.xlu1 %v4370_v10, %s7601_s23  ;;  %v4546_v52 = vor.u32 %v4545_v28, %v4477_v6  ;;  %v4472_v12 = vrot.slane %v4470_v53, 7  ;;  %v4543_v40 = vrot.slane %v4473_v11, 1  ;;  %v9106_v30 = vor.u32 %v4480_v56, %v4479_v59 }
 0x51f   : > { %4623 = vrot.lane.b32.xlu0 %v4369_v62, %s7601_s23  ;;  %v4578_v14 = vsel %vm7716_vm3, %v4546_v52, 0  ;;  %v4544_v60 = vor.u32 %v4543_v40, %v4470_v53  ;;  %v9111_v13 = vor.u32 %v4473_v11, %v4472_v12  ;;  %v4504_v62 = vsel %vm7963_vm8, 0, %v9015_v22  ;;  %s6770_s23 = sshll.u32 %s9679_s18, 9 }
 0x520   : > { %s9353_s30 = scalar_lea.vmem %s9561_s11, %s6770_s23 }
 0x521   : > { %4673 = vrot.lane.b32.xlu1 %v4578_v14, %s7602_s24  ;;  %v4577_v25 = vsel %vm7716_vm3, %v4544_v60, 0 }
 0x523   : > { %4671 = vrot.lane.b32.xlu0 %v4577_v25, %s7602_s24 }
 0x553   : > { %v4598_v24 = vpop.permute.xlu1 %4597 }
 0x554   : > { %v4680_v7 = vsel %vm784_vm9, %v4500_v41, %v4598_v24  ;;  %v4506_v24 = vsel %vm7963_vm8, 0, %v9035_v50 }
 0x555   : > { %v4596_v39 = vpop.permute.xlu0 %4595 }
 0x556   : > { %v4677_v48 = vsel %vm784_vm9, %v4499_v4, %v4596_v39 }
 0x55b   : > { %v4646_v23 = vpop.permute.xlu1 %4645 }
 0x55c   : > { %v4726_v20 = vsel %vm833_vm10, %v4680_v7, %v4646_v23  ;;  %v4505_v23 = vsel %vm7963_vm8, 0, %v9042_v45 }
 0x55d   : > { %v6581_v35 = vcombine.low %v4726_v20, %v4726_v20  ;;  %v6582_v33 = vcombine.high %v4726_v20, %v4726_v20  ;;  %v4644_v63 = vpop.permute.xlu0 %4643 }
 0x55e   : > { %v4724_v1 = vsel %vm833_vm10, %v4677_v48, %v4644_v63 }
 0x55f   : > { %4869 = vst.msk [vmem:[#allocation2 + $0x10] sm:$0xf] %vm388_vm0, %v6581_v35  ;;  %4870 = vst.msk [vmem:[#allocation2 + $0x14] sm:$0xf] %vm388_vm0, %v6582_v33  ;;  %v6579_v57 = vcombine.low %v4724_v1, %v4724_v1  ;;  %v6580_v42 = vcombine.high %v4724_v1, %v4724_v1  ;;  %v4602_v34 = vpop.permute.xlu1 %4601 }
 0x560   : > { %v4686_v8 = vsel %vm784_vm9, %v4502_v44, %v4602_v34  ;;  %v4508_v44 = vsel %vm7963_vm8, 0, %v9055_v18 }
 0x561   : > { %4867 = vst.msk [vmem:[#allocation2 + $0x8] sm:$0xf] %vm388_vm0, %v6579_v57  ;;  %4868 = vst.msk [vmem:[#allocation2 + $0xc] sm:$0xf] %vm388_vm0, %v6580_v42  ;;  %v4600_v27 = vpop.permute.xlu0 %4599 }
 0x562   : > { %v4683_v47 = vsel %vm784_vm9, %v4501_v46, %v4600_v27 }
 0x563   : > { %v4650_v26 = vpop.permute.xlu1 %4649 }
 0x564   : > { %v4730_v49 = vsel %vm833_vm10, %v4686_v8, %v4650_v26 }
 0x565   : > { %v6585_v37 = vcombine.low %v4730_v49, %v4730_v49  ;;  %v6586_v43 = vcombine.high %v4730_v49, %v4730_v49  ;;  %v4648_v19 = vpop.permute.xlu0 %4647  ;;  %v4507_v49 = vsel %vm7963_vm8, 0, %v9062_v32 }
 0x566   : > { %v4728_v0 = vsel %vm833_vm10, %v4683_v47, %v4648_v19  ;;  %v9143_v9 = vld [vmem:[#allocation2 + $0x10] sm:$0xff]  }
 0x567   : > { %4873 = vst.msk [vmem:[#allocation2 + $0x20] sm:$0xf] %vm388_vm0, %v6585_v37  ;;  %4874 = vst.msk [vmem:[#allocation2 + $0x24] sm:$0xf] %vm388_vm0, %v6586_v43  ;;  %v6583_v38 = vcombine.low %v4728_v0, %v4728_v0  ;;  %v6584_v15 = vcombine.high %v4728_v0, %v4728_v0  ;;  %v4606_v55 = vpop.permute.xlu1 %4605  ;;  %v7516_v6 = vld [vmem:[#allocation2 + $0x10] sm:$0xff]  }
 0x568   : > { %v9145_v51 = vld [vmem:[#allocation2 + $0x8] sm:$0xff]   ;;  %v4692_v56 = vsel %vm784_vm9, %v4504_v62, %v4606_v55 }
 0x569   : > { %4871 = vst.msk [vmem:[#allocation2 + $0x18] sm:$0xf] %vm388_vm0, %v6583_v38  ;;  %4872 = vst.msk [vmem:[#allocation2 + $0x1c] sm:$0xf] %vm388_vm0, %v6584_v15  ;;  %v4604_v10 = vpop.permute.xlu0 %4603  ;;  %v7514_v58 = vld [vmem:[#allocation2 + $0x8] sm:$0xff]   ;;  %7249 = vmatprep.mubr.msk.bf16.mxu0 %vm1165_vm5, %v9145_v51 }
 0x56a   : > { %7284 = vmatmul.mubr.msk.bf16.vlgmr.msra.gmra.mxu1 %vm1165_vm5, %v7514_v58  ;;  %7250 = vmatmul.mubr.msk.bf16.vlgmr.msra.gmra.mxu0 %vm1165_vm5, %v9143_v9  ;;  %v4689_v22 = vsel %vm784_vm9, %v4503_v36, %v4604_v10 }
 0x56b   : > { %v4654_v17 = vpop.permute.xlu1 %4653  ;;  %7287 = vmatprep.mubr.msk.bf16.mxu1 %vm1165_vm5, %v7516_v6  ;;  %7316 = vmatpush3.bf16.msra.mxu0 %v5805_v61 }
 0x56c   : > { %v4734_v16 = vsel %vm833_vm10, %v4692_v56, %v4654_v17  ;;  %7350 = vmatpush3.bf16.msra.mxu1 %v5974_v2  ;;  %v4510_v2 = vsel %vm7963_vm8, 0, %v9075_v54  ;;  %v4509_v17 = vsel %vm7963_vm8, 0, %v9081_v5 }
 0x56d   : > { %v6589_v28 = vcombine.low %v4734_v16, %v4734_v16  ;;  %v6590_v59 = vcombine.high %v4734_v16, %v4734_v16  ;;  %v4652_v53 = vpop.permute.xlu0 %4651 }
 0x56e   : > { %v4732_v11 = vsel %vm833_vm10, %v4689_v22, %v4652_v53  ;;  %v9171_v40 = vld [vmem:[#allocation2 + $0x20] sm:$0xff]  }
 0x56f   : > { %4877 = vst.msk [vmem:[#allocation2 + $0x30] sm:$0xf] %vm388_vm0, %v6589_v28  ;;  %4878 = vst.msk [vmem:[#allocation2 + $0x34] sm:$0xf] %vm388_vm0, %v6590_v59  ;;  %v6587_v52 = vcombine.low %v4732_v11, %v4732_v11  ;;  %v6588_v12 = vcombine.high %v4732_v11, %v4732_v11  ;;  %v4610_v31 = vpop.permute.xlu1 %4609  ;;  %v7520_v39 = vld [vmem:[#allocation2 + $0x20] sm:$0xff]  }
 0x570   : > { %v9173_v14 = vld [vmem:[#allocation2 + $0x18] sm:$0xff]   ;;  %v4698_v41 = vsel %vm784_vm9, %v4506_v24, %v4610_v31 }
 0x571   : > { %4875 = vst.msk [vmem:[#allocation2 + $0x28] sm:$0xf] %vm388_vm0, %v6587_v52  ;;  %4876 = vst.msk [vmem:[#allocation2 + $0x2c] sm:$0xf] %vm388_vm0, %v6588_v12  ;;  %v4608_v60 = vpop.permute.xlu0 %4607  ;;  %v7518_v25 = vld [vmem:[#allocation2 + $0x18] sm:$0xff]   ;;  %7253 = vmatprep.mubr.msk.bf16.mxu0 %vm1165_vm5, %v9173_v14 }
 0x572   : > { %7288 = vmatmul.mubr.msk.bf16.gmra.mxu1 %vm1165_vm5, %v7518_v25  ;;  %7254 = vmatmul.mubr.msk.bf16.gmra.mxu0 %vm1165_vm5, %v9171_v40  ;;  %v4695_v50 = vsel %vm784_vm9, %v4505_v23, %v4608_v60  ;;  %v4512_v25 = vsel %vm7963_vm8, 0, %v9094_v29 }
 0x573   : > { %v4658_v7 = vpop.permute.xlu1 %4657  ;;  %7291 = vmatprep.mubr.msk.bf16.mxu1 %vm1165_vm5, %v7520_v39 }
 0x574   : > { %v4738_v4 = vsel %vm833_vm10, %v4698_v41, %v4658_v7  ;;  %v4511_v7 = vsel %vm7963_vm8, 0, %v9097_v21 }
 0x575   : > { %v6593_v20 = vcombine.low %v4738_v4, %v4738_v4  ;;  %v6594_v48 = vcombine.high %v4738_v4, %v4738_v4  ;;  %v4656_v35 = vpop.permute.xlu0 %4655 }
 0x576   : > { %v4736_v33 = vsel %vm833_vm10, %v4695_v50, %v4656_v35  ;;  %v9195_v42 = vld [vmem:[#allocation2 + $0x30] sm:$0xff]  }
 0x577   : > { %4881 = vst.msk [vmem:[#allocation2 + $0x40] sm:$0xf] %vm388_vm0, %v6593_v20  ;;  %4882 = vst.msk [vmem:[#allocation2 + $0x44] sm:$0xf] %vm388_vm0, %v6594_v48  ;;  %v6591_v63 = vcombine.low %v4736_v33, %v4736_v33  ;;  %v6592_v1 = vcombine.high %v4736_v33, %v4736_v33  ;;  %v4614_v57 = vpop.permute.xlu1 %4613  ;;  %v7524_v8 = vld [vmem:[#allocation2 + $0x30] sm:$0xff]  }
 0x578   : > { %v9197_v45 = vld [vmem:[#allocation2 + $0x28] sm:$0xff]   ;;  %v4704_v26 = vsel %vm784_vm9, %v4508_v44, %v4614_v57 }
 0x579   : > { %4879 = vst.msk [vmem:[#allocation2 + $0x38] sm:$0xf] %vm388_vm0, %v6591_v63  ;;  %4880 = vst.msk [vmem:[#allocation2 + $0x3c] sm:$0xf] %vm388_vm0, %v6592_v1  ;;  %v4612_v34 = vpop.permute.xlu0 %4611  ;;  %v7522_v27 = vld [vmem:[#allocation2 + $0x28] sm:$0xff]   ;;  %7257 = vmatprep.mubr.msk.bf16.mxu0 %vm1165_vm5, %v9197_v45 }
 0x57a   : > { %7292 = vmatmul.mubr.msk.bf16.gmra.mxu1 %vm1165_vm5, %v7522_v27  ;;  %7258 = vmatmul.mubr.msk.bf16.gmra.mxu0 %vm1165_vm5, %v9195_v42  ;;  %v4701_v18 = vsel %vm784_vm9, %v4507_v49, %v4612_v34  ;;  %v4514_v27 = vsel %vm7963_vm8, 0, %v9106_v30 }
 0x57b   : > { %v4662_v46 = vpop.permute.xlu1 %4661  ;;  %7295 = vmatprep.mubr.msk.bf16.mxu1 %vm1165_vm5, %v7524_v8 }
 0x57c   : > { %v4742_v47 = vsel %vm833_vm10, %v4704_v26, %v4662_v46  ;;  %v4513_v46 = vsel %vm7963_vm8, 0, %v9111_v13 }
 0x57d   : > { %v6597_v37 = vcombine.low %v4742_v47, %v4742_v47  ;;  %v6598_v43 = vcombine.high %v4742_v47, %v4742_v47  ;;  %v4660_v19 = vpop.permute.xlu0 %4659 }
 0x57e   : > { %v4740_v0 = vsel %vm833_vm10, %v4701_v18, %v4660_v19  ;;  %v9219_v61 = vld [vmem:[#allocation2 + $0x40] sm:$0xff]  }
 0x57f   : > { %4885 = vst.msk [vmem:[#allocation2 + $0x50] sm:$0xf] %vm388_vm0, %v6597_v37  ;;  %4886 = vst.msk [vmem:[#allocation2 + $0x54] sm:$0xf] %vm388_vm0, %v6598_v43  ;;  %v6595_v38 = vcombine.low %v4740_v0, %v4740_v0  ;;  %v6596_v15 = vcombine.high %v4740_v0, %v4740_v0  ;;  %v4618_v55 = vpop.permute.xlu1 %4617  ;;  %v7528_v62 = vld [vmem:[#allocation2 + $0x40] sm:$0xff]  }
 0x580   : > { %v9221_v32 = vld [vmem:[#allocation2 + $0x38] sm:$0xff]   ;;  %v4710_v6 = vsel %vm784_vm9, %v4510_v2, %v4618_v55  ;;  %v7544_v2 = vld [vmem:[#allocation2 + $0x10] sm:$0xff]  }
 0x581   : > { %4883 = vst.msk [vmem:[#allocation2 + $0x48] sm:$0xf] %vm388_vm0, %v6595_v38  ;;  %4884 = vst.msk [vmem:[#allocation2 + $0x4c] sm:$0xf] %vm388_vm0, %v6596_v15  ;;  %v4616_v10 = vpop.permute.xlu0 %4615  ;;  %v7526_v58 = vld [vmem:[#allocation2 + $0x38] sm:$0xff]   ;;  %7261 = vmatprep.mubr.msk.bf16.mxu0 %vm1165_vm5, %v9221_v32 }
 0x582   : > { %7296 = vmatmul.mubr.msk.bf16.gmra.mxu1 %vm1165_vm5, %v7526_v58  ;;  %7262 = vmatmul.mubr.msk.bf16.gmra.mxu0 %vm1165_vm5, %v9219_v61  ;;  %v4707_v54 = vsel %vm784_vm9, %v4509_v17, %v4616_v10  ;;  %v7548_v17 = vld [vmem:[#allocation2 + $0x30] sm:$0xff]  }
 0x583   : > { %v4666_v56 = vpop.permute.xlu1 %4665  ;;  %7299 = vmatprep.mubr.msk.bf16.mxu1 %vm1165_vm5, %v7528_v62  ;;  %v7545_v62 = vld [vmem:[#allocation2 + $0x18] sm:$0xff]  }
 0x584   : > { %v4746_v36 = vsel %vm833_vm10, %v4710_v6, %v4666_v56  ;;  %v7546_v6 = vld [vmem:[#allocation2 + $0x20] sm:$0xff]   ;;  %v7547_v56 = vld [vmem:[#allocation2 + $0x28] sm:$0xff]  }
 0x585   : > { %v6601_v16 = vcombine.low %v4746_v36, %v4746_v36  ;;  %v6602_v22 = vcombine.high %v4746_v36, %v4746_v36  ;;  %v4664_v28 = vpop.permute.xlu0 %4663 }
 0x586   : > { %v4744_v59 = vsel %vm833_vm10, %v4707_v54, %v4664_v28  ;;  %v9243_v12 = vld [vmem:[#allocation2 + $0x50] sm:$0xff]  }
 0x587   : > { %4889 = vst.msk [vmem:[#allocation2 + $0x60] sm:$0xf] %vm388_vm0, %v6601_v16  ;;  %4890 = vst.msk [vmem:[#allocation2 + $0x64] sm:$0xf] %vm388_vm0, %v6602_v22  ;;  %v6599_v53 = vcombine.low %v4744_v59, %v4744_v59  ;;  %v6600_v11 = vcombine.high %v4744_v59, %v4744_v59  ;;  %v4622_v52 = vpop.permute.xlu1 %4621  ;;  %v7532_v24 = vld [vmem:[#allocation2 + $0x50] sm:$0xff]   ;;  %v7559_v16 = vld [vmem:[#allocation2 + $0x88] sm:$0xff]  }
 0x588   : > { %v9245_v5 = vld [vmem:[#allocation2 + $0x48] sm:$0xff]   ;;  %v4716_v39 = vsel %vm784_vm9, %v4512_v25, %v4622_v52  ;;  %v9348_v59 = vld [vmem:[%s9560_s10] ss:$0 sm:$0xff] }
 0x589   : > { %4887 = vst.msk [vmem:[#allocation2 + $0x58] sm:$0xf] %vm388_vm0, %v6599_v53  ;;  %4888 = vst.msk [vmem:[#allocation2 + $0x5c] sm:$0xf] %vm388_vm0, %v6600_v11  ;;  %v4620_v31 = vpop.permute.xlu0 %4619  ;;  %v7530_v60 = vld [vmem:[#allocation2 + $0x48] sm:$0xff]   ;;  %7265 = vmatprep.mubr.msk.bf16.mxu0 %vm1165_vm5, %v9245_v5 }
 0x58a   : > { %7300 = vmatmul.mubr.msk.bf16.gmra.mxu1 %vm1165_vm5, %v7530_v60  ;;  %7266 = vmatmul.mubr.msk.bf16.gmra.mxu0 %vm1165_vm5, %v9243_v12  ;;  %v4713_v29 = vsel %vm784_vm9, %v4511_v7, %v4620_v31 }
 0x58b   : > { %v4670_v41 = vpop.permute.xlu1 %4669  ;;  %7303 = vmatprep.mubr.msk.bf16.mxu1 %vm1165_vm5, %v7532_v24 }
 0x58c   : > { %v4750_v23 = vsel %vm833_vm10, %v4716_v39, %v4670_v41 }
 0x58d   : > { %v6605_v4 = vcombine.low %v4750_v23, %v4750_v23  ;;  %v6606_v50 = vcombine.high %v4750_v23, %v4750_v23  ;;  %v4668_v20 = vpop.permute.xlu0 %4667 }
 0x58e   : > { %v4748_v48 = vsel %vm833_vm10, %v4713_v29, %v4668_v20  ;;  %v9267_v1 = vld [vmem:[#allocation2 + $0x60] sm:$0xff]  }
 0x58f   : > { %4893 = vst.msk [vmem:[#allocation2 + $0x70] sm:$0xf] %vm388_vm0, %v6605_v4  ;;  %4894 = vst.msk [vmem:[#allocation2 + $0x74] sm:$0xf] %vm388_vm0, %v6606_v50  ;;  %v6603_v35 = vcombine.low %v4748_v48, %v4748_v48  ;;  %v6604_v33 = vcombine.high %v4748_v48, %v4748_v48  ;;  %v4626_v63 = vpop.permute.xlu1 %4625  ;;  %v7536_v44 = vld [vmem:[#allocation2 + $0x60] sm:$0xff]  }
 0x590   : > { %v9269_v21 = vld [vmem:[#allocation2 + $0x58] sm:$0xff]   ;;  %v4722_v8 = vsel %vm784_vm9, %v4514_v27, %v4626_v63 }
 0x591   : > { %4891 = vst.msk [vmem:[#allocation2 + $0x68] sm:$0xf] %vm388_vm0, %v6603_v35  ;;  %4892 = vst.msk [vmem:[#allocation2 + $0x6c] sm:$0xf] %vm388_vm0, %v6604_v33  ;;  %v4624_v57 = vpop.permute.xlu0 %4623  ;;  %v7534_v34 = vld [vmem:[#allocation2 + $0x58] sm:$0xff]   ;;  %7269 = vmatprep.mubr.msk.bf16.mxu0 %vm1165_vm5, %v9269_v21 }
 0x592   : > { %7304 = vmatmul.mubr.msk.bf16.gmra.mxu1 %vm1165_vm5, %v7534_v34  ;;  %7270 = vmatmul.mubr.msk.bf16.gmra.mxu0 %vm1165_vm5, %v9267_v1  ;;  %v4719_v30 = vsel %vm784_vm9, %v4513_v46, %v4624_v57 }
 0x593   : > { %v4674_v26 = vpop.permute.xlu1 %4673  ;;  %7307 = vmatprep.mubr.msk.bf16.mxu1 %vm1165_vm5, %v7536_v44 }
 0x594   : > { %v4754_v49 = vsel %vm833_vm10, %v4722_v8, %v4674_v26 }
 0x595   : > { %v6609_v47 = vcombine.low %v4754_v49, %v4754_v49  ;;  %v6610_v18 = vcombine.high %v4754_v49, %v4754_v49  ;;  %v4672_v37 = vpop.permute.xlu0 %4671 }
 0x596   : > { %v4752_v43 = vsel %vm833_vm10, %v4719_v30, %v4672_v37  ;;  %v7539_v38 = vld [vmem:[#allocation2 + $0x70] sm:$0xff]  }
 0x597   : > { %4897 = vst.msk [vmem:[#allocation2 + $0x80] sm:$0xf] %vm388_vm0, %v6609_v47  ;;  %4898 = vst.msk [vmem:[#allocation2 + $0x84] sm:$0xf] %vm388_vm0, %v6610_v18  ;;  %v6607_v19 = vcombine.low %v4752_v43, %v4752_v43  ;;  %v6608_v0 = vcombine.high %v4752_v43, %v4752_v43  ;;  %v7540_v15 = vld [vmem:[#allocation2 + $0x70] sm:$0xff]  }
 0x598   : > { %v7537_v3 = vld [vmem:[#allocation2 + $0x68] sm:$0xff]  }
 0x599   : > { %4895 = vst.msk [vmem:[#allocation2 + $0x78] sm:$0xf] %vm388_vm0, %v6607_v19  ;;  %4896 = vst.msk [vmem:[#allocation2 + $0x7c] sm:$0xf] %vm388_vm0, %v6608_v0  ;;  %v7538_v13 = vld [vmem:[#allocation2 + $0x68] sm:$0xff]   ;;  %7273 = vmatprep.mubr.msk.bf16.mxu0 %vm1165_vm5, %v7537_v3 }
 0x59a   : > { %7308 = vmatmul.mubr.msk.bf16.gmra.mxu1 %vm1165_vm5, %v7538_v13  ;;  %7274 = vmatmul.mubr.msk.bf16.gmra.mxu0 %vm1165_vm5, %v7539_v38 }
 0x59b   : > { %7311 = vmatprep.mubr.msk.bf16.mxu1 %vm1165_vm5, %v7540_v15 }
 0x59e   : > { %v7543_v55 = vld [vmem:[#allocation2 + $0x80] sm:$0xff]  }
 0x59f   : > { %v7558_v54 = vld [vmem:[#allocation2 + $0x80] sm:$0xff]  }
 0x5a0   : > { %v7541_v10 = vld [vmem:[#allocation2 + $0x78] sm:$0xff]  }
 0x5a1   : > { %v7542_v58 = vld [vmem:[#allocation2 + $0x78] sm:$0xff]   ;;  %7277 = vmatprep.mubr.msk.bf16.mxu0 %vm1165_vm5, %v7541_v10 }
 0x5a2   : > { %7312 = vmatmul.mubr.msk.bf16.gmra.mxu1 %vm1165_vm5, %v7542_v58  ;;  %7278 = vmatmul.mubr.msk.bf16.gmra.mxu0 %vm1165_vm5, %v7543_v55  ;;  %v7557_v36 = vld [vmem:[#allocation2 + $0x78] sm:$0xff]  }
 0x5a3   : > { %7351 = vmatprep.mubr.msk.bf16.mxu1 %vm1165_vm5, %v9145_v51  ;;  %7317 = vmatprep.mubr.msk.bf16.mxu0 %vm1165_vm5, %v7544_v2  ;;  %v7550_v51 = vld [vmem:[#allocation2 + $0x40] sm:$0xff]  }
 0x5aa   : > { %7352 = vmatmul.mubr.msk.bf16.vlgmr.msra.gmra.mxu1 %vm1165_vm5, %v9143_v9  ;;  %7318 = vmatmul.mubr.msk.bf16.vlgmr.msra.gmra.mxu0 %vm1165_vm5, %v7545_v62  ;;  %v7549_v9 = vld [vmem:[#allocation2 + $0x38] sm:$0xff]  }
 0x5ab   : > { %7355 = vmatprep.mubr.msk.bf16.mxu1 %vm1165_vm5, %v9173_v14  ;;  %7321 = vmatprep.mubr.msk.bf16.mxu0 %vm1165_vm5, %v7546_v6  ;;  %v7552_v14 = vld [vmem:[#allocation2 + $0x50] sm:$0xff]  }
 0x5b2   : > { %7356 = vmatmul.mubr.msk.bf16.gmra.mxu1 %vm1165_vm5, %v9171_v40  ;;  %7322 = vmatmul.mubr.msk.bf16.gmra.mxu0 %vm1165_vm5, %v7547_v56  ;;  %v7551_v40 = vld [vmem:[#allocation2 + $0x48] sm:$0xff]  }
 0x5b3   : > { %7359 = vmatprep.mubr.msk.bf16.mxu1 %vm1165_vm5, %v9197_v45  ;;  %7325 = vmatprep.mubr.msk.bf16.mxu0 %vm1165_vm5, %v7548_v17  ;;  %v7554_v45 = vld [vmem:[#allocation2 + $0x60] sm:$0xff]  }
 0x5ba   : > { %7360 = vmatmul.mubr.msk.bf16.gmra.mxu1 %vm1165_vm5, %v9195_v42  ;;  %7326 = vmatmul.mubr.msk.bf16.gmra.mxu0 %vm1165_vm5, %v7549_v9  ;;  %v7553_v42 = vld [vmem:[#allocation2 + $0x58] sm:$0xff]  }
 0x5bb   : > { %7363 = vmatprep.mubr.msk.bf16.mxu1 %vm1165_vm5, %v9221_v32  ;;  %7329 = vmatprep.mubr.msk.bf16.mxu0 %vm1165_vm5, %v7550_v51  ;;  %v7556_v32 = vld [vmem:[#allocation2 + $0x70] sm:$0xff]  }
 0x5c2   : > { %7364 = vmatmul.mubr.msk.bf16.gmra.mxu1 %vm1165_vm5, %v9219_v61  ;;  %7330 = vmatmul.mubr.msk.bf16.gmra.mxu0 %vm1165_vm5, %v7551_v40  ;;  %v7555_v61 = vld [vmem:[#allocation2 + $0x68] sm:$0xff]  }
 0x5c3   : > { %7367 = vmatprep.mubr.msk.bf16.mxu1 %vm1165_vm5, %v9245_v5  ;;  %7333 = vmatprep.mubr.msk.bf16.mxu0 %vm1165_vm5, %v7552_v14 }
 0x5ca   : > { %7368 = vmatmul.mubr.msk.bf16.gmra.mxu1 %vm1165_vm5, %v9243_v12  ;;  %7334 = vmatmul.mubr.msk.bf16.gmra.mxu0 %vm1165_vm5, %v7553_v42 }
 0x5cb   : > { %7371 = vmatprep.mubr.msk.bf16.mxu1 %vm1165_vm5, %v9269_v21  ;;  %7337 = vmatprep.mubr.msk.bf16.mxu0 %vm1165_vm5, %v7554_v45 }
 0x5d2   : > { %7372 = vmatmul.mubr.msk.bf16.gmra.mxu1 %vm1165_vm5, %v9267_v1  ;;  %7338 = vmatmul.mubr.msk.bf16.gmra.mxu0 %vm1165_vm5, %v7555_v61 }
 0x5d3   : > { %7375 = vmatprep.mubr.msk.bf16.mxu1 %vm1165_vm5, %v7537_v3  ;;  %7341 = vmatprep.mubr.msk.bf16.mxu0 %vm1165_vm5, %v7556_v32 }
 0x5da   : > { %7376 = vmatmul.mubr.msk.bf16.gmra.mxu1 %vm1165_vm5, %v7539_v38  ;;  %7342 = vmatmul.mubr.msk.bf16.gmra.mxu0 %vm1165_vm5, %v7557_v36 }
 0x5db   : > { %7379 = vmatprep.mubr.msk.bf16.mxu1 %vm1165_vm5, %v7541_v10  ;;  %7345 = vmatprep.mubr.msk.bf16.mxu0 %vm1165_vm5, %v7558_v54 }
 0x5e2   : > { %7380 = vmatmul.mubr.msk.bf16.gmra.mxu1 %vm1165_vm5, %v7543_v55  ;;  %7346 = vmatmul.mubr.msk.bf16.gmra.mxu0 %vm1165_vm5, %v7559_v16 }
 0x62a   : > { %v7285_v22 = vpop.f32.mrf.mxu1  ;;  %v7251_v28 = vpop.f32.mrf.mxu0 }
 0x62b   : > { %v5476_v53 = vadd.f32 %v7285_v22, %v7251_v28 }
 0x62c   : > { %v5467_v11 = vpop.f32.mrf.mxu1  ;;  %v5170_v52 = vpop.f32.mrf.mxu0 }
 0x62d   : > { %v5603_v12 = vadd.f32 %v9348_v59, %v5476_v53  ;;  %v5468_v5 = vadd.f32 %v5467_v11, %v5170_v52 }
 0x62e   : > { %v7286_v31 = vpop.f32.mrf.mxu1  ;;  %v7252_v60 = vpop.f32.mrf.mxu0 }
 0x62f   : > { %5635 = vst.msk [vmem:[%s9353_s30 + $0x20] sm:$0xff] %vm833_vm10, %v5603_v12  ;;  %v5601_v25 = vadd.f32 %v9348_v59, %v5468_v5  ;;  %v5479_v24 = vadd.f32 %v7286_v31, %v7252_v60 }
 0x630   : > { %v5470_v39 = vpop.f32.mrf.mxu1  ;;  %v5173_v41 = vpop.f32.mrf.mxu0 }
 0x631   : > { %5633 = vst.msk [vmem:[%s9353_s30] sm:$0xff] %vm833_vm10, %v5601_v25  ;;  %v5604_v7 = vadd.f32 %v9348_v59, %v5479_v24  ;;  %v5471_v23 = vadd.f32 %v5470_v39, %v5173_v41 }
 0x632   : > { %v7289_v29 = vpop.f32.mrf.mxu1  ;;  %v7255_v4 = vpop.f32.mrf.mxu0 }
 0x633   : > { %5636 = vst.msk [vmem:[%s9353_s30 + $0x28] sm:$0xff] %vm833_vm10, %v5604_v7  ;;  %v5602_v50 = vadd.f32 %v9348_v59, %v5471_v23  ;;  %v5492_v20 = vadd.f32 %v7289_v29, %v7255_v4 }
 0x634   : > { %v5483_v48 = vpop.f32.mrf.mxu1  ;;  %v5186_v35 = vpop.f32.mrf.mxu0 }
 0x635   : > { %5634 = vst.msk [vmem:[%s9353_s30 + $0x8] sm:$0xff] %vm833_vm10, %v5602_v50  ;;  %v5607_v33 = vadd.f32 %v9348_v59, %v5492_v20  ;;  %v5484_v63 = vadd.f32 %v5483_v48, %v5186_v35 }
 0x636   : > { %v7290_v1 = vpop.f32.mrf.mxu1  ;;  %v7256_v21 = vpop.f32.mrf.mxu0 }
 0x637   : > { %5639 = vst.msk [vmem:[%s9353_s30 + $0x60] sm:$0xff] %vm833_vm10, %v5607_v33  ;;  %v5605_v57 = vadd.f32 %v9348_v59, %v5484_v63  ;;  %v5495_v34 = vadd.f32 %v7290_v1, %v7256_v21 }
 0x638   : > { %v5486_v27 = vpop.f32.mrf.mxu1  ;;  %v5189_v44 = vpop.f32.mrf.mxu0 }
 0x639   : > { %5637 = vst.msk [vmem:[%s9353_s30 + $0x40] sm:$0xff] %vm833_vm10, %v5605_v57  ;;  %v5608_v8 = vadd.f32 %v9348_v59, %v5495_v34  ;;  %v5487_v26 = vadd.f32 %v5486_v27, %v5189_v44 }
 0x63a   : > { %v7293_v46 = vpop.f32.mrf.mxu1  ;;  %v7259_v49 = vpop.f32.mrf.mxu0 }
 0x63b   : > { %5640 = vst.msk [vmem:[%s9353_s30 + $0x68] sm:$0xff] %vm833_vm10, %v5608_v8  ;;  %v5606_v30 = vadd.f32 %v9348_v59, %v5487_v26  ;;  %v5508_v47 = vadd.f32 %v7293_v46, %v7259_v49 }
 0x63c   : > { %v5499_v18 = vpop.f32.mrf.mxu1  ;;  %v5202_v37 = vpop.f32.mrf.mxu0 }
 0x63d   : > { %5638 = vst.msk [vmem:[%s9353_s30 + $0x48] sm:$0xff] %vm833_vm10, %v5606_v30  ;;  %v5611_v43 = vadd.f32 %v9348_v59, %v5508_v47  ;;  %v5500_v19 = vadd.f32 %v5499_v18, %v5202_v37 }
 0x63e   : > { %v7294_v0 = vpop.f32.mrf.mxu1  ;;  %v7260_v38 = vpop.f32.mrf.mxu0 }
 0x63f   : > { %5643 = vst.msk [vmem:[%s9353_s30 + $0xa0] sm:$0xff] %vm833_vm10, %v5611_v43  ;;  %v5609_v3 = vadd.f32 %v9348_v59, %v5500_v19  ;;  %v5511_v13 = vadd.f32 %v7294_v0, %v7260_v38 }
 0x640   : > { %v5502_v15 = vpop.f32.mrf.mxu1  ;;  %v5205_v55 = vpop.f32.mrf.mxu0 }
 0x641   : > { %5641 = vst.msk [vmem:[%s9353_s30 + $0x80] sm:$0xff] %vm833_vm10, %v5609_v3  ;;  %v5612_v10 = vadd.f32 %v9348_v59, %v5511_v13  ;;  %v5503_v58 = vadd.f32 %v5502_v15, %v5205_v55 }
 0x642   : > { %v7297_v2 = vpop.f32.mrf.mxu1  ;;  %v7263_v62 = vpop.f32.mrf.mxu0 }
 0x643   : > { %5644 = vst.msk [vmem:[%s9353_s30 + $0xa8] sm:$0xff] %vm833_vm10, %v5612_v10  ;;  %v5610_v6 = vadd.f32 %v9348_v59, %v5503_v58  ;;  %v5524_v56 = vadd.f32 %v7297_v2, %v7263_v62 }
 0x644   : > { %v5515_v17 = vpop.f32.mrf.mxu1  ;;  %v5218_v9 = vpop.f32.mrf.mxu0 }
 0x645   : > { %5642 = vst.msk [vmem:[%s9353_s30 + $0x88] sm:$0xff] %vm833_vm10, %v5610_v6  ;;  %v5615_v51 = vadd.f32 %v9348_v59, %v5524_v56  ;;  %v5516_v40 = vadd.f32 %v5515_v17, %v5218_v9 }
 0x646   : > { %v7298_v14 = vpop.f32.mrf.mxu1  ;;  %v7264_v42 = vpop.f32.mrf.mxu0 }
 0x647   : > { %5647 = vst.msk [vmem:[%s9353_s30 + $0xe0] sm:$0xff] %vm833_vm10, %v5615_v51  ;;  %v5613_v45 = vadd.f32 %v9348_v59, %v5516_v40  ;;  %v5527_v61 = vadd.f32 %v7298_v14, %v7264_v42 }
 0x648   : > { %v5518_v32 = vpop.f32.mrf.mxu1  ;;  %v5221_v36 = vpop.f32.mrf.mxu0 }
 0x649   : > { %5645 = vst.msk [vmem:[%s9353_s30 + $0xc0] sm:$0xff] %vm833_vm10, %v5613_v45  ;;  %v5616_v54 = vadd.f32 %v9348_v59, %v5527_v61  ;;  %v5519_v16 = vadd.f32 %v5518_v32, %v5221_v36 }
 0x64a   : > { %v7301_v22 = vpop.f32.mrf.mxu1  ;;  %v7267_v28 = vpop.f32.mrf.mxu0 }
 0x64b   : > { %5648 = vst.msk [vmem:[%s9353_s30 + $0xe8] sm:$0xff] %vm833_vm10, %v5616_v54  ;;  %v5614_v53 = vadd.f32 %v9348_v59, %v5519_v16  ;;  %v5540_v11 = vadd.f32 %v7301_v22, %v7267_v28 }
 0x64c   : > { %v5531_v52 = vpop.f32.mrf.mxu1  ;;  %v5234_v12 = vpop.f32.mrf.mxu0 }
 0x64d   : > { %5646 = vst.msk [vmem:[%s9353_s30 + $0xc8] sm:$0xff] %vm833_vm10, %v5614_v53  ;;  %v5619_v5 = vadd.f32 %v9348_v59, %v5540_v11  ;;  %v5532_v31 = vadd.f32 %v5531_v52, %v5234_v12 }
 0x64e   : > { %v7302_v60 = vpop.f32.mrf.mxu1  ;;  %v7268_v25 = vpop.f32.mrf.mxu0 }
 0x64f   : > { %5651 = vst.msk [vmem:[%s9353_s30 + $0x120] sm:$0xff] %vm833_vm10, %v5619_v5  ;;  %v5617_v24 = vadd.f32 %v9348_v59, %v5532_v31  ;;  %v5543_v39 = vadd.f32 %v7302_v60, %v7268_v25 }
 0x650   : > { %v5534_v41 = vpop.f32.mrf.mxu1  ;;  %v5237_v7 = vpop.f32.mrf.mxu0 }
 0x651   : > { %5649 = vst.msk [vmem:[%s9353_s30 + $0x100] sm:$0xff] %vm833_vm10, %v5617_v24  ;;  %v5620_v23 = vadd.f32 %v9348_v59, %v5543_v39  ;;  %v5535_v29 = vadd.f32 %v5534_v41, %v5237_v7 }
 0x652   : > { %v7305_v4 = vpop.f32.mrf.mxu1  ;;  %v7271_v50 = vpop.f32.mrf.mxu0 }
 0x653   : > { %5652 = vst.msk [vmem:[%s9353_s30 + $0x128] sm:$0xff] %vm833_vm10, %v5620_v23  ;;  %v5618_v20 = vadd.f32 %v9348_v59, %v5535_v29  ;;  %v5556_v48 = vadd.f32 %v7305_v4, %v7271_v50 }
 0x654   : > { %v5547_v35 = vpop.f32.mrf.mxu1  ;;  %v5250_v33 = vpop.f32.mrf.mxu0 }
 0x655   : > { %5650 = vst.msk [vmem:[%s9353_s30 + $0x108] sm:$0xff] %vm833_vm10, %v5618_v20  ;;  %v5623_v63 = vadd.f32 %v9348_v59, %v5556_v48  ;;  %v5548_v1 = vadd.f32 %v5547_v35, %v5250_v33 }
 0x656   : > { %v7306_v21 = vpop.f32.mrf.mxu1  ;;  %v7272_v57 = vpop.f32.mrf.mxu0 }
 0x657   : > { %5655 = vst.msk [vmem:[%s9353_s30 + $0x160] sm:$0xff] %vm833_vm10, %v5623_v63  ;;  %v5621_v34 = vadd.f32 %v9348_v59, %v5548_v1  ;;  %v5559_v27 = vadd.f32 %v7306_v21, %v7272_v57 }
 0x658   : > { %v5550_v44 = vpop.f32.mrf.mxu1  ;;  %v5253_v8 = vpop.f32.mrf.mxu0 }
 0x659   : > { %5653 = vst.msk [vmem:[%s9353_s30 + $0x140] sm:$0xff] %vm833_vm10, %v5621_v34  ;;  %v5624_v26 = vadd.f32 %v9348_v59, %v5559_v27  ;;  %v5551_v46 = vadd.f32 %v5550_v44, %v5253_v8 }
 0x65a   : > { %v7309_v49 = vpop.f32.mrf.mxu1  ;;  %v7275_v30 = vpop.f32.mrf.mxu0 }
 0x65b   : > { %5656 = vst.msk [vmem:[%s9353_s30 + $0x168] sm:$0xff] %vm833_vm10, %v5624_v26  ;;  %v5622_v47 = vadd.f32 %v9348_v59, %v5551_v46  ;;  %v5572_v18 = vadd.f32 %v7309_v49, %v7275_v30 }
 0x65c   : > { %v5563_v37 = vpop.f32.mrf.mxu1  ;;  %v5266_v43 = vpop.f32.mrf.mxu0 }
 0x65d   : > { %5654 = vst.msk [vmem:[%s9353_s30 + $0x148] sm:$0xff] %vm833_vm10, %v5622_v47  ;;  %v5627_v19 = vadd.f32 %v9348_v59, %v5572_v18  ;;  %v5564_v0 = vadd.f32 %v5563_v37, %v5266_v43 }
 0x65e   : > { %v7310_v38 = vpop.f32.mrf.mxu1  ;;  %v7276_v3 = vpop.f32.mrf.mxu0 }
 0x65f   : > { %5659 = vst.msk [vmem:[%s9353_s30 + $0x1a0] sm:$0xff] %vm833_vm10, %v5627_v19  ;;  %v5625_v13 = vadd.f32 %v9348_v59, %v5564_v0  ;;  %v5575_v15 = vadd.f32 %v7310_v38, %v7276_v3 }
 0x660   : > { %v5566_v55 = vpop.f32.mrf.mxu1  ;;  %v5269_v10 = vpop.f32.mrf.mxu0 }
 0x661   : > { %5657 = vst.msk [vmem:[%s9353_s30 + $0x180] sm:$0xff] %vm833_vm10, %v5625_v13  ;;  %v5628_v58 = vadd.f32 %v9348_v59, %v5575_v15  ;;  %v5567_v2 = vadd.f32 %v5566_v55, %v5269_v10 }
 0x662   : > { %v7313_v62 = vpop.f32.mrf.mxu1  ;;  %v7279_v6 = vpop.f32.mrf.mxu0 }
 0x663   : > { %5660 = vst.msk [vmem:[%s9353_s30 + $0x1a8] sm:$0xff] %vm833_vm10, %v5628_v58  ;;  %v5626_v56 = vadd.f32 %v9348_v59, %v5567_v2  ;;  %v5588_v17 = vadd.f32 %v7313_v62, %v7279_v6 }
 0x664   : > { %v5579_v9 = vpop.f32.mrf.mxu1  ;;  %v5282_v51 = vpop.f32.mrf.mxu0 }
 0x665   : > { %5658 = vst.msk [vmem:[%s9353_s30 + $0x188] sm:$0xff] %vm833_vm10, %v5626_v56  ;;  %v5631_v40 = vadd.f32 %v9348_v59, %v5588_v17  ;;  %v5580_v14 = vadd.f32 %v5579_v9, %v5282_v51 }
 0x666   : > { %v7314_v42 = vpop.f32.mrf.mxu1  ;;  %v7280_v45 = vpop.f32.mrf.mxu0 }
 0x667   : > { %5663 = vst.msk [vmem:[%s9353_s30 + $0x1e0] sm:$0xff] %vm833_vm10, %v5631_v40  ;;  %v5629_v61 = vadd.f32 %v9348_v59, %v5580_v14  ;;  %v5591_v32 = vadd.f32 %v7314_v42, %v7280_v45 }
 0x668   : > { %v5582_v36 = vpop.f32.mrf.mxu1  ;;  %v5285_v54 = vpop.f32.mrf.mxu0 }
 0x669   : > { %5661 = vst.msk [vmem:[%s9353_s30 + $0x1c0] sm:$0xff] %vm833_vm10, %v5629_v61  ;;  %v5632_v16 = vadd.f32 %v9348_v59, %v5591_v32  ;;  %v5583_v22 = vadd.f32 %v5582_v36, %v5285_v54 }
 0x66a   : > { %v7353_v28 = vpop.f32.mrf.mxu1  ;;  %v7319_v53 = vpop.f32.mrf.mxu0 }
 0x66b   : > { %5664 = vst.msk [vmem:[%s9353_s30 + $0x1e8] sm:$0xff] %vm833_vm10, %v5632_v16  ;;  %v5630_v11 = vadd.f32 %v9348_v59, %v5583_v22  ;;  %v6019_v52 = vadd.f32 %v7353_v28, %v7319_v53 }
 0x66c   : > { %v6010_v12 = vpop.f32.mrf.mxu1  ;;  %v5841_v5 = vpop.f32.mrf.mxu0 }
 0x66d   : > { %5662 = vst.msk [vmem:[%s9353_s30 + $0x1c8] sm:$0xff] %vm833_vm10, %v5630_v11  ;;  %v6146_v31 = vadd.f32 %v9348_v59, %v6019_v52  ;;  %v6011_v60 = vadd.f32 %v6010_v12, %v5841_v5 }
 0x66e   : > { %v7354_v25 = vpop.f32.mrf.mxu1  ;;  %v7320_v24 = vpop.f32.mrf.mxu0 }
 0x66f   : > { %6737 = vst.msk [vmem:[%s9353_s30 + $0x30] sm:$0xff] %vm833_vm10, %v6146_v31  ;;  %v6144_v39 = vadd.f32 %v9348_v59, %v6011_v60  ;;  %v6022_v41 = vadd.f32 %v7354_v25, %v7320_v24 }
 0x670   : > { %v6013_v7 = vpop.f32.mrf.mxu1  ;;  %v5844_v23 = vpop.f32.mrf.mxu0 }
 0x671   : > { %6735 = vst.msk [vmem:[%s9353_s30 + $0x10] sm:$0xff] %vm833_vm10, %v6144_v39  ;;  %v6147_v29 = vadd.f32 %v9348_v59, %v6022_v41  ;;  %v6014_v4 = vadd.f32 %v6013_v7, %v5844_v23 }
 0x672   : > { %v7357_v50 = vpop.f32.mrf.mxu1  ;;  %v7323_v20 = vpop.f32.mrf.mxu0 }
 0x673   : > { %6738 = vst.msk [vmem:[%s9353_s30 + $0x38] sm:$0xff] %vm833_vm10, %v6147_v29  ;;  %v6145_v48 = vadd.f32 %v9348_v59, %v6014_v4  ;;  %v6035_v35 = vadd.f32 %v7357_v50, %v7323_v20 }
 0x674   : > { %v6026_v33 = vpop.f32.mrf.mxu1  ;;  %v5857_v63 = vpop.f32.mrf.mxu0 }
 0x675   : > { %6736 = vst.msk [vmem:[%s9353_s30 + $0x18] sm:$0xff] %vm833_vm10, %v6145_v48  ;;  %v6150_v1 = vadd.f32 %v9348_v59, %v6035_v35  ;;  %v6027_v21 = vadd.f32 %v6026_v33, %v5857_v63 }
 0x676   : > { %v7358_v57 = vpop.f32.mrf.mxu1  ;;  %v7324_v34 = vpop.f32.mrf.mxu0 }
 0x677   : > { %6741 = vst.msk [vmem:[%s9353_s30 + $0x70] sm:$0xff] %vm833_vm10, %v6150_v1  ;;  %v6148_v27 = vadd.f32 %v9348_v59, %v6027_v21  ;;  %v6038_v44 = vadd.f32 %v7358_v57, %v7324_v34 }
 0x678   : > { %v6029_v8 = vpop.f32.mrf.mxu1  ;;  %v5860_v26 = vpop.f32.mrf.mxu0 }
 0x679   : > { %6739 = vst.msk [vmem:[%s9353_s30 + $0x50] sm:$0xff] %vm833_vm10, %v6148_v27  ;;  %v6151_v46 = vadd.f32 %v9348_v59, %v6038_v44  ;;  %v6030_v49 = vadd.f32 %v6029_v8, %v5860_v26 }
 0x67a   : > { %v7361_v30 = vpop.f32.mrf.mxu1  ;;  %v7327_v47 = vpop.f32.mrf.mxu0 }
 0x67b   : > { %6742 = vst.msk [vmem:[%s9353_s30 + $0x78] sm:$0xff] %vm833_vm10, %v6151_v46  ;;  %v6149_v18 = vadd.f32 %v9348_v59, %v6030_v49  ;;  %v6051_v37 = vadd.f32 %v7361_v30, %v7327_v47 }
 0x67c   : > { %v6042_v43 = vpop.f32.mrf.mxu1  ;;  %v5873_v19 = vpop.f32.mrf.mxu0 }
 0x67d   : > { %6740 = vst.msk [vmem:[%s9353_s30 + $0x58] sm:$0xff] %vm833_vm10, %v6149_v18  ;;  %v6154_v0 = vadd.f32 %v9348_v59, %v6051_v37  ;;  %v6043_v38 = vadd.f32 %v6042_v43, %v5873_v19 }
 0x67e   : > { %v7362_v3 = vpop.f32.mrf.mxu1  ;;  %v7328_v13 = vpop.f32.mrf.mxu0 }
 0x67f   : > { %6745 = vst.msk [vmem:[%s9353_s30 + $0xb0] sm:$0xff] %vm833_vm10, %v6154_v0  ;;  %v6152_v15 = vadd.f32 %v9348_v59, %v6043_v38  ;;  %v6054_v55 = vadd.f32 %v7362_v3, %v7328_v13 }
 0x680   : > { %v6045_v10 = vpop.f32.mrf.mxu1  ;;  %v5876_v58 = vpop.f32.mrf.mxu0 }
 0x681   : > { %6743 = vst.msk [vmem:[%s9353_s30 + $0x90] sm:$0xff] %vm833_vm10, %v6152_v15  ;;  %v6155_v2 = vadd.f32 %v9348_v59, %v6054_v55  ;;  %v6046_v62 = vadd.f32 %v6045_v10, %v5876_v58 }
 0x682   : > { %v7365_v6 = vpop.f32.mrf.mxu1  ;;  %v7331_v56 = vpop.f32.mrf.mxu0 }
 0x683   : > { %6746 = vst.msk [vmem:[%s9353_s30 + $0xb8] sm:$0xff] %vm833_vm10, %v6155_v2  ;;  %v6153_v17 = vadd.f32 %v9348_v59, %v6046_v62  ;;  %v6067_v9 = vadd.f32 %v7365_v6, %v7331_v56 }
 0x684   : > { %v6058_v51 = vpop.f32.mrf.mxu1  ;;  %v5889_v40 = vpop.f32.mrf.mxu0 }
 0x685   : > { %6744 = vst.msk [vmem:[%s9353_s30 + $0x98] sm:$0xff] %vm833_vm10, %v6153_v17  ;;  %v6158_v14 = vadd.f32 %v9348_v59, %v6067_v9  ;;  %v6059_v42 = vadd.f32 %v6058_v51, %v5889_v40 }
 0x686   : > { %v7366_v45 = vpop.f32.mrf.mxu1  ;;  %v7332_v61 = vpop.f32.mrf.mxu0 }
 0x687   : > { %6749 = vst.msk [vmem:[%s9353_s30 + $0xf0] sm:$0xff] %vm833_vm10, %v6158_v14  ;;  %v6156_v32 = vadd.f32 %v9348_v59, %v6059_v42  ;;  %v6070_v36 = vadd.f32 %v7366_v45, %v7332_v61 }
 0x688   : > { %v6061_v54 = vpop.f32.mrf.mxu1  ;;  %v5892_v16 = vpop.f32.mrf.mxu0 }
 0x689   : > { %6747 = vst.msk [vmem:[%s9353_s30 + $0xd0] sm:$0xff] %vm833_vm10, %v6156_v32  ;;  %v6159_v22 = vadd.f32 %v9348_v59, %v6070_v36  ;;  %v6062_v28 = vadd.f32 %v6061_v54, %v5892_v16 }
 0x68a   : > { %v7369_v53 = vpop.f32.mrf.mxu1  ;;  %v7335_v11 = vpop.f32.mrf.mxu0 }
 0x68b   : > { %6750 = vst.msk [vmem:[%s9353_s30 + $0xf8] sm:$0xff] %vm833_vm10, %v6159_v22  ;;  %v6157_v52 = vadd.f32 %v9348_v59, %v6062_v28  ;;  %v6083_v12 = vadd.f32 %v7369_v53, %v7335_v11 }
 0x68c   : > { %v6074_v5 = vpop.f32.mrf.mxu1  ;;  %v5905_v31 = vpop.f32.mrf.mxu0 }
 0x68d   : > { %6748 = vst.msk [vmem:[%s9353_s30 + $0xd8] sm:$0xff] %vm833_vm10, %v6157_v52  ;;  %v6162_v60 = vadd.f32 %v9348_v59, %v6083_v12  ;;  %v6075_v25 = vadd.f32 %v6074_v5, %v5905_v31 }
 0x68e   : > { %v7370_v24 = vpop.f32.mrf.mxu1  ;;  %v7336_v39 = vpop.f32.mrf.mxu0 }
 0x68f   : > { %6753 = vst.msk [vmem:[%s9353_s30 + $0x130] sm:$0xff] %vm833_vm10, %v6162_v60  ;;  %v6160_v41 = vadd.f32 %v9348_v59, %v6075_v25  ;;  %v6086_v7 = vadd.f32 %v7370_v24, %v7336_v39 }
 0x690   : > { %v6077_v23 = vpop.f32.mrf.mxu1  ;;  %v5908_v29 = vpop.f32.mrf.mxu0 }
 0x691   : > { %6751 = vst.msk [vmem:[%s9353_s30 + $0x110] sm:$0xff] %vm833_vm10, %v6160_v41  ;;  %v6163_v4 = vadd.f32 %v9348_v59, %v6086_v7  ;;  %v6078_v50 = vadd.f32 %v6077_v23, %v5908_v29 }
 0x692   : > { %v7373_v20 = vpop.f32.mrf.mxu1  ;;  %v7339_v48 = vpop.f32.mrf.mxu0 }
 0x693   : > { %6754 = vst.msk [vmem:[%s9353_s30 + $0x138] sm:$0xff] %vm833_vm10, %v6163_v4  ;;  %v6161_v35 = vadd.f32 %v9348_v59, %v6078_v50  ;;  %v6099_v33 = vadd.f32 %v7373_v20, %v7339_v48 }
 0x694   : > { %v6090_v63 = vpop.f32.mrf.mxu1  ;;  %v5921_v1 = vpop.f32.mrf.mxu0 }
 0x695   : > { %6752 = vst.msk [vmem:[%s9353_s30 + $0x118] sm:$0xff] %vm833_vm10, %v6161_v35  ;;  %v6166_v21 = vadd.f32 %v9348_v59, %v6099_v33  ;;  %v6091_v57 = vadd.f32 %v6090_v63, %v5921_v1 }
 0x696   : > { %v7374_v34 = vpop.f32.mrf.mxu1  ;;  %v7340_v27 = vpop.f32.mrf.mxu0 }
 0x697   : > { %6757 = vst.msk [vmem:[%s9353_s30 + $0x170] sm:$0xff] %vm833_vm10, %v6166_v21  ;;  %v6164_v44 = vadd.f32 %v9348_v59, %v6091_v57  ;;  %v6102_v8 = vadd.f32 %v7374_v34, %v7340_v27 }
 0x698   : > { %v6093_v26 = vpop.f32.mrf.mxu1  ;;  %v5924_v46 = vpop.f32.mrf.mxu0 }
 0x699   : > { %6755 = vst.msk [vmem:[%s9353_s30 + $0x150] sm:$0xff] %vm833_vm10, %v6164_v44  ;;  %v6167_v49 = vadd.f32 %v9348_v59, %v6102_v8  ;;  %v6094_v30 = vadd.f32 %v6093_v26, %v5924_v46 }
 0x69a   : > { %v7377_v47 = vpop.f32.mrf.mxu1  ;;  %v7343_v18 = vpop.f32.mrf.mxu0 }
 0x69b   : > { %6758 = vst.msk [vmem:[%s9353_s30 + $0x178] sm:$0xff] %vm833_vm10, %v6167_v49  ;;  %v6165_v37 = vadd.f32 %v9348_v59, %v6094_v30  ;;  %v6115_v43 = vadd.f32 %v7377_v47, %v7343_v18 }
 0x69c   : > { %v6106_v19 = vpop.f32.mrf.mxu1  ;;  %v5937_v0 = vpop.f32.mrf.mxu0 }
 0x69d   : > { %6756 = vst.msk [vmem:[%s9353_s30 + $0x158] sm:$0xff] %vm833_vm10, %v6165_v37  ;;  %v6170_v38 = vadd.f32 %v9348_v59, %v6115_v43  ;;  %v6107_v3 = vadd.f32 %v6106_v19, %v5937_v0 }
 0x69e   : > { %v7378_v13 = vpop.f32.mrf.mxu1  ;;  %v7344_v15 = vpop.f32.mrf.mxu0 }
 0x69f   : > { %6761 = vst.msk [vmem:[%s9353_s30 + $0x1b0] sm:$0xff] %vm833_vm10, %v6170_v38  ;;  %v6168_v55 = vadd.f32 %v9348_v59, %v6107_v3  ;;  %v6118_v10 = vadd.f32 %v7378_v13, %v7344_v15 }
 0x6a0   : > { %v6109_v58 = vpop.f32.mrf.mxu1  ;;  %v5940_v2 = vpop.f32.mrf.mxu0 }
 0x6a1   : > { %6759 = vst.msk [vmem:[%s9353_s30 + $0x190] sm:$0xff] %vm833_vm10, %v6168_v55  ;;  %v6171_v62 = vadd.f32 %v9348_v59, %v6118_v10  ;;  %v6110_v6 = vadd.f32 %v6109_v58, %v5940_v2 }
 0x6a2   : > { %v7381_v56 = vpop.f32.mrf.mxu1  ;;  %v7347_v17 = vpop.f32.mrf.mxu0 }
 0x6a3   : > { %6762 = vst.msk [vmem:[%s9353_s30 + $0x1b8] sm:$0xff] %vm833_vm10, %v6171_v62  ;;  %v6169_v9 = vadd.f32 %v9348_v59, %v6110_v6  ;;  %v6131_v51 = vadd.f32 %v7381_v56, %v7347_v17 }
 0x6a4   : > { %v6122_v40 = vpop.f32.mrf.mxu1  ;;  %v5953_v14 = vpop.f32.mrf.mxu0 }
 0x6a5   : > { %6760 = vst.msk [vmem:[%s9353_s30 + $0x198] sm:$0xff] %vm833_vm10, %v6169_v9  ;;  %v6174_v42 = vadd.f32 %v9348_v59, %v6131_v51  ;;  %v6123_v45 = vadd.f32 %v6122_v40, %v5953_v14 }
 0x6a6   : > { %v7382_v61 = vpop.f32.mrf.mxu1  ;;  %v7348_v32 = vpop.f32.mrf.mxu0 }
 0x6a7   : > { %6765 = vst.msk [vmem:[%s9353_s30 + $0x1f0] sm:$0xff] %vm833_vm10, %v6174_v42  ;;  %v6172_v36 = vadd.f32 %v9348_v59, %v6123_v45  ;;  %v6134_v54 = vadd.f32 %v7382_v61, %v7348_v32 }
 0x6a8   : > { %v6125_v16 = vpop.f32.mrf.mxu1  ;;  %v5956_v22 = vpop.f32.mrf.mxu0 }
 0x6a9   : > { %6763 = vst.msk [vmem:[%s9353_s30 + $0x1d0] sm:$0xff] %vm833_vm10, %v6172_v36  ;;  %v6175_v28 = vadd.f32 %v9348_v59, %v6134_v54  ;;  %v6126_v53 = vadd.f32 %v6125_v16, %v5956_v22 }
 0x6ab   : > { %6766 = vst.msk [vmem:[%s9353_s30 + $0x1f8] sm:$0xff] %vm833_vm10, %v6175_v28  ;;  %v6173_v11 = vadd.f32 %v9348_v59, %v6126_v53 }
 0x6ad   : > { %6764 = vst.msk [vmem:[%s9353_s30 + $0x1d8] sm:$0xff] %vm833_vm10, %v6173_v11 }
 0x6ae PF: > { %s21_s17 = sadd.s32 1, %s7598_s17  }
 0x6af   : > { %p18_p4 = scmp.ge.s32.totalorder %s21_s17, 4  }
 0x6b1   :  { %20 = sbr.rel (!%p18_p4) target bundleno = 1 (0x1), region = 105 }

</bundles_post_ra>
